<compile_context>
chip_gen: v6e
topology: v6e:2x2x1
jax: 0.10.0
libtpu: 0.0.40
codegen_flags: <defaults>
</compile_context>

<pallas_src>
import jax
import jax.numpy as jnp
from jax.experimental import pallas as pl
from jax.experimental.pallas import tpu as pltpu

EPS = 1e-5


def _build_banded_weight(w_hwio, w_out):
    """Fold the kernel-width taps of a 3x3 conv into a block-banded matmul weight.

    w_hwio: (3, 3, Cin, Cout).  Returns (3*(w_out+2)*Cin, w_out*Cout) bf16 such that, for a
    zero-padded lane-folded activation row block LHS of shape (rows, (w_out+2)*Cin),
    LHS @ Wb[dh*K:(dh+1)*K] contributes the dh-th kernel row of the convolution for every
    output column at once.
    """
    _, kw, cin, cout = w_hwio.shape
    wp = w_out + 2
    iw = jnp.arange(wp)[:, None, None]
    j = jnp.arange(w_out)[None, :, None]
    k = jnp.arange(kw)[None, None, :]
    ind = (iw == j + k).astype(w_hwio.dtype)                 # (Wp, W, 3)
    wb = jnp.einsum('wjk,hkio->hwijo', ind, w_hwio)          # (3, Wp, Cin, W, Cout)
    return wb.reshape(3 * wp * cin, w_out * cout).astype(jnp.bfloat16)


def _fold_lane_blocks(r, w, co):
    """Sum the W lane blocks of a (1, W*CO) row down to (1, CO).

    Uses a log2(W) pairwise halving tree when W is a power of two (lane offsets stay
    CO-aligned at every step), otherwise a plain linear fold.
    """
    if w == 1:
        return r
    if (w & (w - 1)) == 0:
        width = w * co
        while width > co:
            width //= 2
            r = r[:, :width] + r[:, width:2 * width]
        return r
    s = r[:, :co]
    for j in range(1, w):
        s = s + r[:, j * co:(j + 1) * co]
    return s


def conv4_forward(x_nchw, params):
    """Conv4 forward.  x_nchw: (N, Cin, H, W) f32; params: list of (w_hwio, gamma, beta)."""
    nb, cin0, h0, w0 = x_nchw.shape
    L = len(params)
    cout = params[0][0].shape[-1]

    # Static per-layer geometry: (H, W, Cin, Cout) of each layer's (pre-pool) conv.
    dims = []
    h, w, cin = h0, w0, cin0
    for (wt, _, _) in params:
        dims.append((h, w, cin, wt.shape[-1]))
        h, w, cin = h // 2, w // 2, wt.shape[-1]
    h_last, w_last = h, w

    # ---- wrapper-side packing (tiny, once per call) ------------------------------------
    # lane-folded layout: rows = spatial_row * N + n, cols = w * Cin + ci, zero-padded by 1.
    x = jnp.transpose(x_nchw, (2, 0, 3, 1)).astype(jnp.float32)     # (H, N, W, Cin)
    x = x.reshape(h0, nb, w0 * cin0)
    x = jnp.pad(x, ((1, 1), (0, 0), (cin0, cin0)))
    x2d = x.reshape((h0 + 2) * nb, (w0 + 2) * cin0).astype(jnp.bfloat16)

    wbs = [_build_banded_weight(wt, d[1]) for (wt, _, _), d in zip(params, dims)]
    gam = jnp.stack([g for (_, g, _) in params]).astype(jnp.float32)   # (L, C)
    bet = jnp.stack([b for (_, _, b) in params]).astype(jnp.float32)   # (L, C)

    def kernel(x_ref, *refs):
        w_refs = refs[:L]
        g_ref, b_ref, o_ref = refs[L], refs[L + 1], refs[L + 2]
        a_scrs = refs[L + 3:]

        # Padded-activation scratches: borders must be zero (interior is overwritten below).
        for a in a_scrs:
            a[...] = jnp.zeros(a.shape, a.dtype)

        in_ref = x_ref
        for l, (H, W, CIN, CO) in enumerate(dims):
            K = (W + 2) * CIN                     # folded (padded) input row width
            Ho, Wo = H // 2, W // 2

            # -- 3x3 conv as 3 block-banded MXU matmuls (bf16 operands, f32 accumulation) --
            # LHS row-shifts are static ref slices of the VMEM-resident padded activation.
            acc = jnp.zeros((H * nb, W * CO), jnp.float32)
            for dh in range(3):
                lhs = in_ref[dh * nb: dh * nb + H * nb, :]
                acc = acc + jnp.dot(lhs, w_refs[l][dh * K:(dh + 1) * K, :],
                                    preferred_element_type=jnp.float32)

            # -- BatchNorm2d (training mode): batch mean / biased variance over (N, H, W) --
            r1 = jnp.sum(acc, axis=0, keepdims=True)            # (1, W*CO)
            r2 = jnp.sum(acc * acc, axis=0, keepdims=True)
            s1 = _fold_lane_blocks(r1, W, CO)                   # (1, CO)
            s2 = _fold_lane_blocks(r2, W, CO)
            inv_cnt = 1.0 / float(nb * H * W)
            mean = s1 * inv_cnt
            var = jnp.maximum(s2 * inv_cnt - mean * mean, 0.0)
            scale = g_ref[l:l + 1, :] * jax.lax.rsqrt(var + EPS)    # (1, CO)
            shift = b_ref[l:l + 1, :] - mean * scale
            if W > 1:
                scale_b = jnp.concatenate([scale] * W, axis=1)      # (1, W*CO), built once
                shift_b = jnp.concatenate([shift] * W, axis=1)
            else:
                scale_b, shift_b = scale, shift

            # -- BN affine + ReLU --
            z = jnp.maximum(acc * scale_b + shift_b, 0.0)           # (H*N, W*CO)

            # -- MaxPool2d(2): width = adjacent lane blocks, height = adjacent row blocks --
            zw = [jnp.maximum(z[:, (2 * jo) * CO:(2 * jo + 1) * CO],
                              z[:, (2 * jo + 1) * CO:(2 * jo + 2) * CO])
                  for jo in range(Wo)]
            zw = zw[0] if Wo == 1 else jnp.concatenate(zw, axis=1)  # (H*N, Wo*CO)

            zh = [jnp.maximum(zw[(2 * io) * nb:(2 * io + 1) * nb, :],
                              zw[(2 * io + 1) * nb:(2 * io + 2) * nb, :])
                  for io in range(Ho)]
            pooled = zh[0] if Ho == 1 else jnp.concatenate(zh, axis=0)   # (Ho*N, Wo*CO)

            # -- single store of the pooled activation --
            if l == L - 1:
                o_ref[...] = pooled
            else:
                a_next = a_scrs[l]
                a_next[nb:(Ho + 1) * nb, CO:CO + Wo * CO] = pooled.astype(a_next.dtype)
                in_ref = a_next

    # VMEM scratch: padded lane-folded activations of layers 2..L (bf16, never leave VMEM).
    scratch = [pltpu.VMEM(((hh + 2) * nb, (ww + 2) * cc), jnp.bfloat16)
               for (hh, ww, cc, _) in dims[1:]]

    out2d = pl.pallas_call(
        kernel,
        out_shape=jax.ShapeDtypeStruct((h_last * nb, w_last * cout), jnp.float32),
        grid=(1,),
        in_specs=[pl.BlockSpec(x2d.shape, lambda i: (0, 0))]
                 + [pl.BlockSpec(wb.shape, lambda i: (0, 0)) for wb in wbs]
                 + [pl.BlockSpec(gam.shape, lambda i: (0, 0)),
                    pl.BlockSpec(bet.shape, lambda i: (0, 0))],
        out_specs=pl.BlockSpec((h_last * nb, w_last * cout), lambda i: (0, 0)),
        scratch_shapes=scratch,
        compiler_params=pltpu.CompilerParams(dimension_semantics=("arbitrary",)),
    )(x2d, *wbs, gam, bet)

    out = out2d.reshape(h_last, nb, w_last, cout)
    return jnp.transpose(out, (1, 3, 0, 2))                     # back to NCHW


def init_params(key, in_channels=1, hidden=64, n_layers=4):
    """PyTorch-default Conv2d / BatchNorm2d init.  Conv bias omitted: it cancels exactly under
    the train-mode BatchNorm that immediately follows each conv."""
    params = []
    cin = in_channels
    for _ in range(n_layers):
        key, kw = jax.random.split(key)
        fan_in = 3 * 3 * cin
        bound = 1.0 / (fan_in ** 0.5)
        w = jax.random.uniform(kw, (3, 3, cin, hidden), jnp.float32, -bound, bound)
        gamma = jnp.ones((hidden,), jnp.float32)
        beta = jnp.zeros((hidden,), jnp.float32)
        params.append((w, gamma, beta))
        cin = hidden
    return params


def conv4_reference(x_nchw, params, eps=EPS):
    """Pure-JAX reference (same bf16 operand rounding as the kernel) for a correctness check."""
    x = jnp.transpose(x_nchw, (0, 2, 3, 1)).astype(jnp.float32)      # NHWC
    for (w, g, b) in params:
        xb = x.astype(jnp.bfloat16).astype(jnp.float32)
        wb = w.astype(jnp.bfloat16).astype(jnp.float32)
        y = jax.lax.conv_general_dilated(
            xb, wb, window_strides=(1, 1), padding=((1, 1), (1, 1)),
            dimension_numbers=('NHWC', 'HWIO', 'NHWC'))
        mean = jnp.mean(y, axis=(0, 1, 2))
        var = jnp.mean(jnp.square(y - mean), axis=(0, 1, 2))
        y = (y - mean) * (g / jnp.sqrt(var + eps)) + b
        y = jnp.maximum(y, 0.0)
        n, hh, ww, c = y.shape
        x = y.reshape(n, hh // 2, 2, ww // 2, 2, c).max(axis=(2, 4))
    return jnp.transpose(x, (0, 3, 1, 2))


if __name__ == "__main__":
    key = jax.random.PRNGKey(0)
    kx, kp = jax.random.split(key)
    # Conv4 takes single-channel images; 16x16 spatial survives four MaxPool2d(2) stages.
    x = jax.random.normal(kx, (2, 1, 16, 16), jnp.float32)
    params = init_params(kp)

    out = jax.block_until_ready(jax.jit(conv4_forward)(x, params))

    assert out.shape == (2, 64, 1, 1), out.shape
    assert bool(jnp.all(jnp.isfinite(out)))

    ref = jax.block_until_ready(conv4_reference(x, params))
    max_err = float(jnp.max(jnp.abs(out - ref)))
    assert max_err < 5e-2, f"kernel vs reference max abs diff = {max_err}"

    print("KERNEL_OK")
</pallas_src>

<mosaic_0001>
module attributes {stable_mosaic.version = 11 : i64} {
  func.func @kernel(%arg0: i32, %arg1: memref<36x18xbf16, #tpu.memory_space<vmem>>, %arg2: memref<54x1024xbf16, #tpu.memory_space<vmem>>, %arg3: memref<1920x512xbf16, #tpu.memory_space<vmem>>, %arg4: memref<1152x256xbf16, #tpu.memory_space<vmem>>, %arg5: memref<768x128xbf16, #tpu.memory_space<vmem>>, %arg6: memref<4x64xf32, #tpu.memory_space<vmem>>, %arg7: memref<4x64xf32, #tpu.memory_space<vmem>>, %arg8: memref<2x64xf32, #tpu.memory_space<vmem>>, %arg9: memref<20x640xbf16, #tpu.memory_space<vmem>>, %arg10: memref<12x384xbf16, #tpu.memory_space<vmem>>, %arg11: memref<8x256xbf16, #tpu.memory_space<vmem>>) attributes {dimension_semantics = [#tpu.dimension_semantics<arbitrary>], iteration_bounds = array<i64: 1>, scalar_prefetch = 0 : i64, scratch_operands = 3 : i64, tpu.core_type = #tpu.core_type<tc>, window_params = [{pipeline_mode = #tpu.pipeline_mode<synchronous>, transform_indices = @transform_0, window_bounds = array<i64: 36, 18>}, {pipeline_mode = #tpu.pipeline_mode<synchronous>, transform_indices = @transform_1, window_bounds = array<i64: 54, 1024>}, {pipeline_mode = #tpu.pipeline_mode<synchronous>, transform_indices = @transform_2, window_bounds = array<i64: 1920, 512>}, {pipeline_mode = #tpu.pipeline_mode<synchronous>, transform_indices = @transform_3, window_bounds = array<i64: 1152, 256>}, {pipeline_mode = #tpu.pipeline_mode<synchronous>, transform_indices = @transform_4, window_bounds = array<i64: 768, 128>}, {pipeline_mode = #tpu.pipeline_mode<synchronous>, transform_indices = @transform_5, window_bounds = array<i64: 4, 64>}, {pipeline_mode = #tpu.pipeline_mode<synchronous>, transform_indices = @transform_6, window_bounds = array<i64: 4, 64>}, {pipeline_mode = #tpu.pipeline_mode<synchronous>, transform_indices = @transform_7, window_bounds = array<i64: 2, 64>}]} {
    %cst = arith.constant 0.000000e+00 : bf16
    %0 = vector.broadcast %cst : bf16 to vector<20x640xbf16>
    %c0 = arith.constant 0 : index
    %c0_0 = arith.constant 0 : index
    %1 = vector.load %arg9[%c0, %c0_0] : memref<20x640xbf16, #tpu.memory_space<vmem>>, vector<20x640xbf16>
    tpu.vector_store %arg9[%c0, %c0_0], %0 {strides = array<i32>} : memref<20x640xbf16, #tpu.memory_space<vmem>>, vector<20x640xbf16>,
    %cst_1 = arith.constant 0.000000e+00 : bf16
    %2 = vector.broadcast %cst_1 : bf16 to vector<12x384xbf16>
    %c0_2 = arith.constant 0 : index
    %c0_3 = arith.constant 0 : index
    %3 = vector.load %arg10[%c0_2, %c0_3] : memref<12x384xbf16, #tpu.memory_space<vmem>>, vector<12x384xbf16>
    tpu.vector_store %arg10[%c0_2, %c0_3], %2 {strides = array<i32>} : memref<12x384xbf16, #tpu.memory_space<vmem>>, vector<12x384xbf16>,
    %cst_4 = arith.constant 0.000000e+00 : bf16
    %4 = vector.broadcast %cst_4 : bf16 to vector<8x256xbf16>
    %c0_5 = arith.constant 0 : index
    %c0_6 = arith.constant 0 : index
    %5 = vector.load %arg11[%c0_5, %c0_6] : memref<8x256xbf16, #tpu.memory_space<vmem>>, vector<8x256xbf16>
    tpu.vector_store %arg11[%c0_5, %c0_6], %4 {strides = array<i32>} : memref<8x256xbf16, #tpu.memory_space<vmem>>, vector<8x256xbf16>,
    %cst_7 = arith.constant 0.000000e+00 : f32
    %6 = vector.broadcast %cst_7 : f32 to vector<32x1024xf32>
    %c0_8 = arith.constant 0 : index
    %c0_9 = arith.constant 0 : index
    %7 = vector.load %arg1[%c0_8, %c0_9] : memref<36x18xbf16, #tpu.memory_space<vmem>>, vector<32x18xbf16>
    %c0_10 = arith.constant 0 : index
    %c0_11 = arith.constant 0 : index
    %8 = vector.load %arg2[%c0_10, %c0_11] : memref<54x1024xbf16, #tpu.memory_space<vmem>>, vector<18x1024xbf16>
    %cst_12 = arith.constant dense<0.000000e+00> : vector<32x1024xf32>
    %9 = tpu.matmul %7, %8, %cst_12 {dimension_numbers = #tpu.dot_dimension_numbers<[1], [0], [0], [1], [0, 0, 1, 1], [], []>} : vector<32x18xbf16>, vector<18x1024xbf16>, vector<32x1024xf32> -> vector<32x1024xf32>
    %10 = arith.addf %6, %9 : vector<32x1024xf32>
    %c2 = arith.constant 2 : index
    %c0_13 = arith.constant 0 : index
    %11 = vector.load %arg1[%c2, %c0_13] : memref<36x18xbf16, #tpu.memory_space<vmem>>, vector<32x18xbf16>
    %c18 = arith.constant 18 : index
    %c0_14 = arith.constant 0 : index
    %12 = vector.load %arg2[%c18, %c0_14] : memref<54x1024xbf16, #tpu.memory_space<vmem>>, vector<18x1024xbf16>
    %cst_15 = arith.constant dense<0.000000e+00> : vector<32x1024xf32>
    %13 = tpu.matmul %11, %12, %cst_15 {dimension_numbers = #tpu.dot_dimension_numbers<[1], [0], [0], [1], [0, 0, 1, 1], [], []>} : vector<32x18xbf16>, vector<18x1024xbf16>, vector<32x1024xf32> -> vector<32x1024xf32>
    %14 = arith.addf %10, %13 : vector<32x1024xf32>
    %c4 = arith.constant 4 : index
    %c0_16 = arith.constant 0 : index
    %15 = vector.load %arg1[%c4, %c0_16] : memref<36x18xbf16, #tpu.memory_space<vmem>>, vector<32x18xbf16>
    %c36 = arith.constant 36 : index
    %c0_17 = arith.constant 0 : index
    %16 = vector.load %arg2[%c36, %c0_17] : memref<54x1024xbf16, #tpu.memory_space<vmem>>, vector<18x1024xbf16>
    %cst_18 = arith.constant dense<0.000000e+00> : vector<32x1024xf32>
    %17 = tpu.matmul %15, %16, %cst_18 {dimension_numbers = #tpu.dot_dimension_numbers<[1], [0], [0], [1], [0, 0, 1, 1], [], []>} : vector<32x18xbf16>, vector<18x1024xbf16>, vector<32x1024xf32> -> vector<32x1024xf32>
    %18 = arith.addf %14, %17 : vector<32x1024xf32>
    %cst_19 = arith.constant dense<0.000000e+00> : vector<1024xf32>
    %19 = vector.multi_reduction <add>, %18, %cst_19 [0] : vector<32x1024xf32> to vector<1024xf32>
    %20 = vector.shape_cast %19 : vector<1024xf32> to vector<1x1024xf32>
    %21 = arith.mulf %18, %18 : vector<32x1024xf32>
    %cst_20 = arith.constant dense<0.000000e+00> : vector<1024xf32>
    %22 = vector.multi_reduction <add>, %21, %cst_20 [0] : vector<32x1024xf32> to vector<1024xf32>
    %23 = vector.shape_cast %22 : vector<1024xf32> to vector<1x1024xf32>
    %24 = vector.extract_strided_slice %20 {offsets = [0, 0], sizes = [1, 512], strides = [1, 1]} : vector<1x1024xf32> to vector<1x512xf32>
    %25 = vector.extract_strided_slice %20 {offsets = [0, 512], sizes = [1, 512], strides = [1, 1]} : vector<1x1024xf32> to vector<1x512xf32>
    %26 = arith.addf %24, %25 : vector<1x512xf32>
    %27 = vector.extract_strided_slice %26 {offsets = [0, 0], sizes = [1, 256], strides = [1, 1]} : vector<1x512xf32> to vector<1x256xf32>
    %28 = vector.extract_strided_slice %26 {offsets = [0, 256], sizes = [1, 256], strides = [1, 1]} : vector<1x512xf32> to vector<1x256xf32>
    %29 = arith.addf %27, %28 : vector<1x256xf32>
    %30 = vector.extract_strided_slice %29 {offsets = [0, 0], sizes = [1, 128], strides = [1, 1]} : vector<1x256xf32> to vector<1x128xf32>
    %31 = vector.extract_strided_slice %29 {offsets = [0, 128], sizes = [1, 128], strides = [1, 1]} : vector<1x256xf32> to vector<1x128xf32>
    %32 = arith.addf %30, %31 : vector<1x128xf32>
    %33 = vector.extract_strided_slice %32 {offsets = [0, 0], sizes = [1, 64], strides = [1, 1]} : vector<1x128xf32> to vector<1x64xf32>
    %34 = vector.extract_strided_slice %32 {offsets = [0, 64], sizes = [1, 64], strides = [1, 1]} : vector<1x128xf32> to vector<1x64xf32>
    %35 = arith.addf %33, %34 : vector<1x64xf32>
    %36 = vector.extract_strided_slice %23 {offsets = [0, 0], sizes = [1, 512], strides = [1, 1]} : vector<1x1024xf32> to vector<1x512xf32>
    %37 = vector.extract_strided_slice %23 {offsets = [0, 512], sizes = [1, 512], strides = [1, 1]} : vector<1x1024xf32> to vector<1x512xf32>
    %38 = arith.addf %36, %37 : vector<1x512xf32>
    %39 = vector.extract_strided_slice %38 {offsets = [0, 0], sizes = [1, 256], strides = [1, 1]} : vector<1x512xf32> to vector<1x256xf32>
    %40 = vector.extract_strided_slice %38 {offsets = [0, 256], sizes = [1, 256], strides = [1, 1]} : vector<1x512xf32> to vector<1x256xf32>
    %41 = arith.addf %39, %40 : vector<1x256xf32>
    %42 = vector.extract_strided_slice %41 {offsets = [0, 0], sizes = [1, 128], strides = [1, 1]} : vector<1x256xf32> to vector<1x128xf32>
    %43 = vector.extract_strided_slice %41 {offsets = [0, 128], sizes = [1, 128], strides = [1, 1]} : vector<1x256xf32> to vector<1x128xf32>
    %44 = arith.addf %42, %43 : vector<1x128xf32>
    %45 = vector.extract_strided_slice %44 {offsets = [0, 0], sizes = [1, 64], strides = [1, 1]} : vector<1x128xf32> to vector<1x64xf32>
    %46 = vector.extract_strided_slice %44 {offsets = [0, 64], sizes = [1, 64], strides = [1, 1]} : vector<1x128xf32> to vector<1x64xf32>
    %47 = arith.addf %45, %46 : vector<1x64xf32>
    %cst_21 = arith.constant 0.001953125 : f32
    %48 = vector.broadcast %cst_21 : f32 to vector<1x64xf32>
    %49 = arith.mulf %35, %48 : vector<1x64xf32>
    %cst_22 = arith.constant 0.001953125 : f32
    %50 = vector.broadcast %cst_22 : f32 to vector<1x64xf32>
    %51 = arith.mulf %47, %50 : vector<1x64xf32>
    %52 = arith.mulf %49, %49 : vector<1x64xf32>
    %53 = arith.subf %51, %52 : vector<1x64xf32>
    %cst_23 = arith.constant 0.000000e+00 : f32
    %54 = vector.broadcast %cst_23 : f32 to vector<1x64xf32>
    %55 = arith.maximumf %53, %54 : vector<1x64xf32>
    %c0_24 = arith.constant 0 : index
    %c0_25 = arith.constant 0 : index
    %56 = vector.load %arg6[%c0_24, %c0_25] : memref<4x64xf32, #tpu.memory_space<vmem>>, vector<1x64xf32>
    %cst_26 = arith.constant 9.99999974E-6 : f32
    %57 = vector.broadcast %cst_26 : f32 to vector<1x64xf32>
    %58 = arith.addf %55, %57 : vector<1x64xf32>
    %59 = math.rsqrt %58 : vector<1x64xf32>
    %60 = arith.mulf %56, %59 : vector<1x64xf32>
    %c0_27 = arith.constant 0 : index
    %c0_28 = arith.constant 0 : index
    %61 = vector.load %arg7[%c0_27, %c0_28] : memref<4x64xf32, #tpu.memory_space<vmem>>, vector<1x64xf32>
    %62 = arith.mulf %49, %60 : vector<1x64xf32>
    %63 = arith.subf %61, %62 : vector<1x64xf32>
    %64 = tpu.concatenate %60, %60, %60, %60, %60, %60, %60, %60, %60, %60, %60, %60, %60, %60, %60, %60 in 1 : vector<1x64xf32>, vector<1x64xf32>, vector<1x64xf32>, vector<1x64xf32>, vector<1x64xf32>, vector<1x64xf32>, vector<1x64xf32>, vector<1x64xf32>, vector<1x64xf32>, vector<1x64xf32>, vector<1x64xf32>, vector<1x64xf32>, vector<1x64xf32>, vector<1x64xf32>, vector<1x64xf32>, vector<1x64xf32> -> vector<1x1024xf32>
    %65 = tpu.concatenate %63, %63, %63, %63, %63, %63, %63, %63, %63, %63, %63, %63, %63, %63, %63, %63 in 1 : vector<1x64xf32>, vector<1x64xf32>, vector<1x64xf32>, vector<1x64xf32>, vector<1x64xf32>, vector<1x64xf32>, vector<1x64xf32>, vector<1x64xf32>, vector<1x64xf32>, vector<1x64xf32>, vector<1x64xf32>, vector<1x64xf32>, vector<1x64xf32>, vector<1x64xf32>, vector<1x64xf32>, vector<1x64xf32> -> vector<1x1024xf32>
    %66 = vector.broadcast %64 : vector<1x1024xf32> to vector<32x1024xf32>
    %67 = arith.mulf %18, %66 : vector<32x1024xf32>
    %68 = vector.broadcast %65 : vector<1x1024xf32> to vector<32x1024xf32>
    %69 = arith.addf %67, %68 : vector<32x1024xf32>
    %cst_29 = arith.constant 0.000000e+00 : f32
    %70 = vector.broadcast %cst_29 : f32 to vector<32x1024xf32>
    %71 = arith.maximumf %69, %70 : vector<32x1024xf32>
    %72 = vector.extract_strided_slice %71 {offsets = [0, 0], sizes = [32, 64], strides = [1, 1]} : vector<32x1024xf32> to vector<32x64xf32>
    %73 = vector.extract_strided_slice %71 {offsets = [0, 64], sizes = [32, 64], strides = [1, 1]} : vector<32x1024xf32> to vector<32x64xf32>
    %74 = arith.maximumf %72, %73 : vector<32x64xf32>
    %75 = vector.extract_strided_slice %71 {offsets = [0, 128], sizes = [32, 64], strides = [1, 1]} : vector<32x1024xf32> to vector<32x64xf32>
    %76 = vector.extract_strided_slice %71 {offsets = [0, 192], sizes = [32, 64], strides = [1, 1]} : vector<32x1024xf32> to vector<32x64xf32>
    %77 = arith.maximumf %75, %76 : vector<32x64xf32>
    %78 = vector.extract_strided_slice %71 {offsets = [0, 256], sizes = [32, 64], strides = [1, 1]} : vector<32x1024xf32> to vector<32x64xf32>
    %79 = vector.extract_strided_slice %71 {offsets = [0, 320], sizes = [32, 64], strides = [1, 1]} : vector<32x1024xf32> to vector<32x64xf32>
    %80 = arith.maximumf %78, %79 : vector<32x64xf32>
    %81 = vector.extract_strided_slice %71 {offsets = [0, 384], sizes = [32, 64], strides = [1, 1]} : vector<32x1024xf32> to vector<32x64xf32>
    %82 = vector.extract_strided_slice %71 {offsets = [0, 448], sizes = [32, 64], strides = [1, 1]} : vector<32x1024xf32> to vector<32x64xf32>
    %83 = arith.maximumf %81, %82 : vector<32x64xf32>
    %84 = vector.extract_strided_slice %71 {offsets = [0, 512], sizes = [32, 64], strides = [1, 1]} : vector<32x1024xf32> to vector<32x64xf32>
    %85 = vector.extract_strided_slice %71 {offsets = [0, 576], sizes = [32, 64], strides = [1, 1]} : vector<32x1024xf32> to vector<32x64xf32>
    %86 = arith.maximumf %84, %85 : vector<32x64xf32>
    %87 = vector.extract_strided_slice %71 {offsets = [0, 640], sizes = [32, 64], strides = [1, 1]} : vector<32x1024xf32> to vector<32x64xf32>
    %88 = vector.extract_strided_slice %71 {offsets = [0, 704], sizes = [32, 64], strides = [1, 1]} : vector<32x1024xf32> to vector<32x64xf32>
    %89 = arith.maximumf %87, %88 : vector<32x64xf32>
    %90 = vector.extract_strided_slice %71 {offsets = [0, 768], sizes = [32, 64], strides = [1, 1]} : vector<32x1024xf32> to vector<32x64xf32>
    %91 = vector.extract_strided_slice %71 {offsets = [0, 832], sizes = [32, 64], strides = [1, 1]} : vector<32x1024xf32> to vector<32x64xf32>
    %92 = arith.maximumf %90, %91 : vector<32x64xf32>
    %93 = vector.extract_strided_slice %71 {offsets = [0, 896], sizes = [32, 64], strides = [1, 1]} : vector<32x1024xf32> to vector<32x64xf32>
    %94 = vector.extract_strided_slice %71 {offsets = [0, 960], sizes = [32, 64], strides = [1, 1]} : vector<32x1024xf32> to vector<32x64xf32>
    %95 = arith.maximumf %93, %94 : vector<32x64xf32>
    %96 = tpu.concatenate %74, %77, %80, %83, %86, %89, %92, %95 in 1 : vector<32x64xf32>, vector<32x64xf32>, vector<32x64xf32>, vector<32x64xf32>, vector<32x64xf32>, vector<32x64xf32>, vector<32x64xf32>, vector<32x64xf32> -> vector<32x512xf32>
    %97 = vector.extract_strided_slice %96 {offsets = [0, 0], sizes = [2, 512], strides = [1, 1]} : vector<32x512xf32> to vector<2x512xf32>
    %98 = vector.extract_strided_slice %96 {offsets = [2, 0], sizes = [2, 512], strides = [1, 1]} : vector<32x512xf32> to vector<2x512xf32>
    %99 = arith.maximumf %97, %98 : vector<2x512xf32>
    %100 = vector.extract_strided_slice %96 {offsets = [4, 0], sizes = [2, 512], strides = [1, 1]} : vector<32x512xf32> to vector<2x512xf32>
    %101 = vector.extract_strided_slice %96 {offsets = [6, 0], sizes = [2, 512], strides = [1, 1]} : vector<32x512xf32> to vector<2x512xf32>
    %102 = arith.maximumf %100, %101 : vector<2x512xf32>
    %103 = vector.extract_strided_slice %96 {offsets = [8, 0], sizes = [2, 512], strides = [1, 1]} : vector<32x512xf32> to vector<2x512xf32>
    %104 = vector.extract_strided_slice %96 {offsets = [10, 0], sizes = [2, 512], strides = [1, 1]} : vector<32x512xf32> to vector<2x512xf32>
    %105 = arith.maximumf %103, %104 : vector<2x512xf32>
    %106 = vector.extract_strided_slice %96 {offsets = [12, 0], sizes = [2, 512], strides = [1, 1]} : vector<32x512xf32> to vector<2x512xf32>
    %107 = vector.extract_strided_slice %96 {offsets = [14, 0], sizes = [2, 512], strides = [1, 1]} : vector<32x512xf32> to vector<2x512xf32>
    %108 = arith.maximumf %106, %107 : vector<2x512xf32>
    %109 = vector.extract_strided_slice %96 {offsets = [16, 0], sizes = [2, 512], strides = [1, 1]} : vector<32x512xf32> to vector<2x512xf32>
    %110 = vector.extract_strided_slice %96 {offsets = [18, 0], sizes = [2, 512], strides = [1, 1]} : vector<32x512xf32> to vector<2x512xf32>
    %111 = arith.maximumf %109, %110 : vector<2x512xf32>
    %112 = vector.extract_strided_slice %96 {offsets = [20, 0], sizes = [2, 512], strides = [1, 1]} : vector<32x512xf32> to vector<2x512xf32>
    %113 = vector.extract_strided_slice %96 {offsets = [22, 0], sizes = [2, 512], strides = [1, 1]} : vector<32x512xf32> to vector<2x512xf32>
    %114 = arith.maximumf %112, %113 : vector<2x512xf32>
    %115 = vector.extract_strided_slice %96 {offsets = [24, 0], sizes = [2, 512], strides = [1, 1]} : vector<32x512xf32> to vector<2x512xf32>
    %116 = vector.extract_strided_slice %96 {offsets = [26, 0], sizes = [2, 512], strides = [1, 1]} : vector<32x512xf32> to vector<2x512xf32>
    %117 = arith.maximumf %115, %116 : vector<2x512xf32>
    %118 = vector.extract_strided_slice %96 {offsets = [28, 0], sizes = [2, 512], strides = [1, 1]} : vector<32x512xf32> to vector<2x512xf32>
    %119 = vector.extract_strided_slice %96 {offsets = [30, 0], sizes = [2, 512], strides = [1, 1]} : vector<32x512xf32> to vector<2x512xf32>
    %120 = arith.maximumf %118, %119 : vector<2x512xf32>
    %121 = tpu.concatenate %99, %102, %105, %108, %111, %114, %117, %120 in 0 : vector<2x512xf32>, vector<2x512xf32>, vector<2x512xf32>, vector<2x512xf32>, vector<2x512xf32>, vector<2x512xf32>, vector<2x512xf32>, vector<2x512xf32> -> vector<16x512xf32>
    %122 = arith.truncf %121 : vector<16x512xf32> to vector<16x512xbf16>
    %c2_30 = arith.constant 2 : index
    %c64 = arith.constant 64 : index
    %123 = vector.load %arg9[%c2_30, %c64] : memref<20x640xbf16, #tpu.memory_space<vmem>>, vector<16x512xbf16>
    tpu.vector_store %arg9[%c2_30, %c64], %122 {strides = array<i32>} : memref<20x640xbf16, #tpu.memory_space<vmem>>, vector<16x512xbf16>,
    %cst_31 = arith.constant 0.000000e+00 : f32
    %124 = vector.broadcast %cst_31 : f32 to vector<16x512xf32>
    %c0_32 = arith.constant 0 : index
    %c0_33 = arith.constant 0 : index
    %125 = vector.load %arg9[%c0_32, %c0_33] : memref<20x640xbf16, #tpu.memory_space<vmem>>, vector<16x640xbf16>
    %c0_34 = arith.constant 0 : index
    %c0_35 = arith.constant 0 : index
    %126 = vector.load %arg3[%c0_34, %c0_35] : memref<1920x512xbf16, #tpu.memory_space<vmem>>, vector<640x512xbf16>
    %cst_36 = arith.constant dense<0.000000e+00> : vector<16x512xf32>
    %127 = tpu.matmul %125, %126, %cst_36 {dimension_numbers = #tpu.dot_dimension_numbers<[1], [0], [0], [1], [0, 0, 1, 1], [], []>} : vector<16x640xbf16>, vector<640x512xbf16>, vector<16x512xf32> -> vector<16x512xf32>
    %128 = arith.addf %124, %127 : vector<16x512xf32>
    %c2_37 = arith.constant 2 : index
    %c0_38 = arith.constant 0 : index
    %129 = vector.load %arg9[%c2_37, %c0_38] : memref<20x640xbf16, #tpu.memory_space<vmem>>, vector<16x640xbf16>
    %c640 = arith.constant 640 : index
    %c0_39 = arith.constant 0 : index
    %130 = vector.load %arg3[%c640, %c0_39] : memref<1920x512xbf16, #tpu.memory_space<vmem>>, vector<640x512xbf16>
    %cst_40 = arith.constant dense<0.000000e+00> : vector<16x512xf32>
    %131 = tpu.matmul %129, %130, %cst_40 {dimension_numbers = #tpu.dot_dimension_numbers<[1], [0], [0], [1], [0, 0, 1, 1], [], []>} : vector<16x640xbf16>, vector<640x512xbf16>, vector<16x512xf32> -> vector<16x512xf32>
    %132 = arith.addf %128, %131 : vector<16x512xf32>
    %c4_41 = arith.constant 4 : index
    %c0_42 = arith.constant 0 : index
    %133 = vector.load %arg9[%c4_41, %c0_42] : memref<20x640xbf16, #tpu.memory_space<vmem>>, vector<16x640xbf16>
    %c1280 = arith.constant 1280 : index
    %c0_43 = arith.constant 0 : index
    %134 = vector.load %arg3[%c1280, %c0_43] : memref<1920x512xbf16, #tpu.memory_space<vmem>>, vector<640x512xbf16>
    %cst_44 = arith.constant dense<0.000000e+00> : vector<16x512xf32>
    %135 = tpu.matmul %133, %134, %cst_44 {dimension_numbers = #tpu.dot_dimension_numbers<[1], [0], [0], [1], [0, 0, 1, 1], [], []>} : vector<16x640xbf16>, vector<640x512xbf16>, vector<16x512xf32> -> vector<16x512xf32>
    %136 = arith.addf %132, %135 : vector<16x512xf32>
    %cst_45 = arith.constant dense<0.000000e+00> : vector<512xf32>
    %137 = vector.multi_reduction <add>, %136, %cst_45 [0] : vector<16x512xf32> to vector<512xf32>
    %138 = vector.shape_cast %137 : vector<512xf32> to vector<1x512xf32>
    %139 = arith.mulf %136, %136 : vector<16x512xf32>
    %cst_46 = arith.constant dense<0.000000e+00> : vector<512xf32>
    %140 = vector.multi_reduction <add>, %139, %cst_46 [0] : vector<16x512xf32> to vector<512xf32>
    %141 = vector.shape_cast %140 : vector<512xf32> to vector<1x512xf32>
    %142 = vector.extract_strided_slice %138 {offsets = [0, 0], sizes = [1, 256], strides = [1, 1]} : vector<1x512xf32> to vector<1x256xf32>
    %143 = vector.extract_strided_slice %138 {offsets = [0, 256], sizes = [1, 256], strides = [1, 1]} : vector<1x512xf32> to vector<1x256xf32>
    %144 = arith.addf %142, %143 : vector<1x256xf32>
    %145 = vector.extract_strided_slice %144 {offsets = [0, 0], sizes = [1, 128], strides = [1, 1]} : vector<1x256xf32> to vector<1x128xf32>
    %146 = vector.extract_strided_slice %144 {offsets = [0, 128], sizes = [1, 128], strides = [1, 1]} : vector<1x256xf32> to vector<1x128xf32>
    %147 = arith.addf %145, %146 : vector<1x128xf32>
    %148 = vector.extract_strided_slice %147 {offsets = [0, 0], sizes = [1, 64], strides = [1, 1]} : vector<1x128xf32> to vector<1x64xf32>
    %149 = vector.extract_strided_slice %147 {offsets = [0, 64], sizes = [1, 64], strides = [1, 1]} : vector<1x128xf32> to vector<1x64xf32>
    %150 = arith.addf %148, %149 : vector<1x64xf32>
    %151 = vector.extract_strided_slice %141 {offsets = [0, 0], sizes = [1, 256], strides = [1, 1]} : vector<1x512xf32> to vector<1x256xf32>
    %152 = vector.extract_strided_slice %141 {offsets = [0, 256], sizes = [1, 256], strides = [1, 1]} : vector<1x512xf32> to vector<1x256xf32>
    %153 = arith.addf %151, %152 : vector<1x256xf32>
    %154 = vector.extract_strided_slice %153 {offsets = [0, 0], sizes = [1, 128], strides = [1, 1]} : vector<1x256xf32> to vector<1x128xf32>
    %155 = vector.extract_strided_slice %153 {offsets = [0, 128], sizes = [1, 128], strides = [1, 1]} : vector<1x256xf32> to vector<1x128xf32>
    %156 = arith.addf %154, %155 : vector<1x128xf32>
    %157 = vector.extract_strided_slice %156 {offsets = [0, 0], sizes = [1, 64], strides = [1, 1]} : vector<1x128xf32> to vector<1x64xf32>
    %158 = vector.extract_strided_slice %156 {offsets = [0, 64], sizes = [1, 64], strides = [1, 1]} : vector<1x128xf32> to vector<1x64xf32>
    %159 = arith.addf %157, %158 : vector<1x64xf32>
    %cst_47 = arith.constant 7.812500e-03 : f32
    %160 = vector.broadcast %cst_47 : f32 to vector<1x64xf32>
    %161 = arith.mulf %150, %160 : vector<1x64xf32>
    %cst_48 = arith.constant 7.812500e-03 : f32
    %162 = vector.broadcast %cst_48 : f32 to vector<1x64xf32>
    %163 = arith.mulf %159, %162 : vector<1x64xf32>
    %164 = arith.mulf %161, %161 : vector<1x64xf32>
    %165 = arith.subf %163, %164 : vector<1x64xf32>
    %cst_49 = arith.constant 0.000000e+00 : f32
    %166 = vector.broadcast %cst_49 : f32 to vector<1x64xf32>
    %167 = arith.maximumf %165, %166 : vector<1x64xf32>
    %c1 = arith.constant 1 : index
    %c0_50 = arith.constant 0 : index
    %168 = vector.load %arg6[%c1, %c0_50] : memref<4x64xf32, #tpu.memory_space<vmem>>, vector<1x64xf32>
    %cst_51 = arith.constant 9.99999974E-6 : f32
    %169 = vector.broadcast %cst_51 : f32 to vector<1x64xf32>
    %170 = arith.addf %167, %169 : vector<1x64xf32>
    %171 = math.rsqrt %170 : vector<1x64xf32>
    %172 = arith.mulf %168, %171 : vector<1x64xf32>
    %c1_52 = arith.constant 1 : index
    %c0_53 = arith.constant 0 : index
    %173 = vector.load %arg7[%c1_52, %c0_53] : memref<4x64xf32, #tpu.memory_space<vmem>>, vector<1x64xf32>
    %174 = arith.mulf %161, %172 : vector<1x64xf32>
    %175 = arith.subf %173, %174 : vector<1x64xf32>
    %176 = tpu.concatenate %172, %172, %172, %172, %172, %172, %172, %172 in 1 : vector<1x64xf32>, vector<1x64xf32>, vector<1x64xf32>, vector<1x64xf32>, vector<1x64xf32>, vector<1x64xf32>, vector<1x64xf32>, vector<1x64xf32> -> vector<1x512xf32>
    %177 = tpu.concatenate %175, %175, %175, %175, %175, %175, %175, %175 in 1 : vector<1x64xf32>, vector<1x64xf32>, vector<1x64xf32>, vector<1x64xf32>, vector<1x64xf32>, vector<1x64xf32>, vector<1x64xf32>, vector<1x64xf32> -> vector<1x512xf32>
    %178 = vector.broadcast %176 : vector<1x512xf32> to vector<16x512xf32>
    %179 = arith.mulf %136, %178 : vector<16x512xf32>
    %180 = vector.broadcast %177 : vector<1x512xf32> to vector<16x512xf32>
    %181 = arith.addf %179, %180 : vector<16x512xf32>
    %cst_54 = arith.constant 0.000000e+00 : f32
    %182 = vector.broadcast %cst_54 : f32 to vector<16x512xf32>
    %183 = arith.maximumf %181, %182 : vector<16x512xf32>
    %184 = vector.extract_strided_slice %183 {offsets = [0, 0], sizes = [16, 64], strides = [1, 1]} : vector<16x512xf32> to vector<16x64xf32>
    %185 = vector.extract_strided_slice %183 {offsets = [0, 64], sizes = [16, 64], strides = [1, 1]} : vector<16x512xf32> to vector<16x64xf32>
    %186 = arith.maximumf %184, %185 : vector<16x64xf32>
    %187 = vector.extract_strided_slice %183 {offsets = [0, 128], sizes = [16, 64], strides = [1, 1]} : vector<16x512xf32> to vector<16x64xf32>
    %188 = vector.extract_strided_slice %183 {offsets = [0, 192], sizes = [16, 64], strides = [1, 1]} : vector<16x512xf32> to vector<16x64xf32>
    %189 = arith.maximumf %187, %188 : vector<16x64xf32>
    %190 = vector.extract_strided_slice %183 {offsets = [0, 256], sizes = [16, 64], strides = [1, 1]} : vector<16x512xf32> to vector<16x64xf32>
    %191 = vector.extract_strided_slice %183 {offsets = [0, 320], sizes = [16, 64], strides = [1, 1]} : vector<16x512xf32> to vector<16x64xf32>
    %192 = arith.maximumf %190, %191 : vector<16x64xf32>
    %193 = vector.extract_strided_slice %183 {offsets = [0, 384], sizes = [16, 64], strides = [1, 1]} : vector<16x512xf32> to vector<16x64xf32>
    %194 = vector.extract_strided_slice %183 {offsets = [0, 448], sizes = [16, 64], strides = [1, 1]} : vector<16x512xf32> to vector<16x64xf32>
    %195 = arith.maximumf %193, %194 : vector<16x64xf32>
    %196 = tpu.concatenate %186, %189, %192, %195 in 1 : vector<16x64xf32>, vector<16x64xf32>, vector<16x64xf32>, vector<16x64xf32> -> vector<16x256xf32>
    %197 = vector.extract_strided_slice %196 {offsets = [0, 0], sizes = [2, 256], strides = [1, 1]} : vector<16x256xf32> to vector<2x256xf32>
    %198 = vector.extract_strided_slice %196 {offsets = [2, 0], sizes = [2, 256], strides = [1, 1]} : vector<16x256xf32> to vector<2x256xf32>
    %199 = arith.maximumf %197, %198 : vector<2x256xf32>
    %200 = vector.extract_strided_slice %196 {offsets = [4, 0], sizes = [2, 256], strides = [1, 1]} : vector<16x256xf32> to vector<2x256xf32>
    %201 = vector.extract_strided_slice %196 {offsets = [6, 0], sizes = [2, 256], strides = [1, 1]} : vector<16x256xf32> to vector<2x256xf32>
    %202 = arith.maximumf %200, %201 : vector<2x256xf32>
    %203 = vector.extract_strided_slice %196 {offsets = [8, 0], sizes = [2, 256], strides = [1, 1]} : vector<16x256xf32> to vector<2x256xf32>
    %204 = vector.extract_strided_slice %196 {offsets = [10, 0], sizes = [2, 256], strides = [1, 1]} : vector<16x256xf32> to vector<2x256xf32>
    %205 = arith.maximumf %203, %204 : vector<2x256xf32>
    %206 = vector.extract_strided_slice %196 {offsets = [12, 0], sizes = [2, 256], strides = [1, 1]} : vector<16x256xf32> to vector<2x256xf32>
    %207 = vector.extract_strided_slice %196 {offsets = [14, 0], sizes = [2, 256], strides = [1, 1]} : vector<16x256xf32> to vector<2x256xf32>
    %208 = arith.maximumf %206, %207 : vector<2x256xf32>
    %209 = tpu.concatenate %199, %202, %205, %208 in 0 : vector<2x256xf32>, vector<2x256xf32>, vector<2x256xf32>, vector<2x256xf32> -> vector<8x256xf32>
    %210 = arith.truncf %209 : vector<8x256xf32> to vector<8x256xbf16>
    %c2_55 = arith.constant 2 : index
    %c64_56 = arith.constant 64 : index
    %211 = vector.load %arg10[%c2_55, %c64_56] : memref<12x384xbf16, #tpu.memory_space<vmem>>, vector<8x256xbf16>
    tpu.vector_store %arg10[%c2_55, %c64_56], %210 {strides = array<i32>} : memref<12x384xbf16, #tpu.memory_space<vmem>>, vector<8x256xbf16>,
    %cst_57 = arith.constant 0.000000e+00 : f32
    %212 = vector.broadcast %cst_57 : f32 to vector<8x256xf32>
    %c0_58 = arith.constant 0 : index
    %c0_59 = arith.constant 0 : index
    %213 = vector.load %arg10[%c0_58, %c0_59] : memref<12x384xbf16, #tpu.memory_space<vmem>>, vector<8x384xbf16>
    %c0_60 = arith.constant 0 : index
    %c0_61 = arith.constant 0 : index
    %214 = vector.load %arg4[%c0_60, %c0_61] : memref<1152x256xbf16, #tpu.memory_space<vmem>>, vector<384x256xbf16>
    %cst_62 = arith.constant dense<0.000000e+00> : vector<8x256xf32>
    %215 = tpu.matmul %213, %214, %cst_62 {dimension_numbers = #tpu.dot_dimension_numbers<[1], [0], [0], [1], [0, 0, 1, 1], [], []>} : vector<8x384xbf16>, vector<384x256xbf16>, vector<8x256xf32> -> vector<8x256xf32>
    %216 = arith.addf %212, %215 : vector<8x256xf32>
    %c2_63 = arith.constant 2 : index
    %c0_64 = arith.constant 0 : index
    %217 = vector.load %arg10[%c2_63, %c0_64] : memref<12x384xbf16, #tpu.memory_space<vmem>>, vector<8x384xbf16>
    %c384 = arith.constant 384 : index
    %c0_65 = arith.constant 0 : index
    %218 = vector.load %arg4[%c384, %c0_65] : memref<1152x256xbf16, #tpu.memory_space<vmem>>, vector<384x256xbf16>
    %cst_66 = arith.constant dense<0.000000e+00> : vector<8x256xf32>
    %219 = tpu.matmul %217, %218, %cst_66 {dimension_numbers = #tpu.dot_dimension_numbers<[1], [0], [0], [1], [0, 0, 1, 1], [], []>} : vector<8x384xbf16>, vector<384x256xbf16>, vector<8x256xf32> -> vector<8x256xf32>
    %220 = arith.addf %216, %219 : vector<8x256xf32>
    %c4_67 = arith.constant 4 : index
    %c0_68 = arith.constant 0 : index
    %221 = vector.load %arg10[%c4_67, %c0_68] : memref<12x384xbf16, #tpu.memory_space<vmem>>, vector<8x384xbf16>
    %c768 = arith.constant 768 : index
    %c0_69 = arith.constant 0 : index
    %222 = vector.load %arg4[%c768, %c0_69] : memref<1152x256xbf16, #tpu.memory_space<vmem>>, vector<384x256xbf16>
    %cst_70 = arith.constant dense<0.000000e+00> : vector<8x256xf32>
    %223 = tpu.matmul %221, %222, %cst_70 {dimension_numbers = #tpu.dot_dimension_numbers<[1], [0], [0], [1], [0, 0, 1, 1], [], []>} : vector<8x384xbf16>, vector<384x256xbf16>, vector<8x256xf32> -> vector<8x256xf32>
    %224 = arith.addf %220, %223 : vector<8x256xf32>
    %cst_71 = arith.constant dense<0.000000e+00> : vector<256xf32>
    %225 = vector.multi_reduction <add>, %224, %cst_71 [0] : vector<8x256xf32> to vector<256xf32>
    %226 = vector.shape_cast %225 : vector<256xf32> to vector<1x256xf32>
    %227 = arith.mulf %224, %224 : vector<8x256xf32>
    %cst_72 = arith.constant dense<0.000000e+00> : vector<256xf32>
    %228 = vector.multi_reduction <add>, %227, %cst_72 [0] : vector<8x256xf32> to vector<256xf32>
    %229 = vector.shape_cast %228 : vector<256xf32> to vector<1x256xf32>
    %230 = vector.extract_strided_slice %226 {offsets = [0, 0], sizes = [1, 128], strides = [1, 1]} : vector<1x256xf32> to vector<1x128xf32>
    %231 = vector.extract_strided_slice %226 {offsets = [0, 128], sizes = [1, 128], strides = [1, 1]} : vector<1x256xf32> to vector<1x128xf32>
    %232 = arith.addf %230, %231 : vector<1x128xf32>
    %233 = vector.extract_strided_slice %232 {offsets = [0, 0], sizes = [1, 64], strides = [1, 1]} : vector<1x128xf32> to vector<1x64xf32>
    %234 = vector.extract_strided_slice %232 {offsets = [0, 64], sizes = [1, 64], strides = [1, 1]} : vector<1x128xf32> to vector<1x64xf32>
    %235 = arith.addf %233, %234 : vector<1x64xf32>
    %236 = vector.extract_strided_slice %229 {offsets = [0, 0], sizes = [1, 128], strides = [1, 1]} : vector<1x256xf32> to vector<1x128xf32>
    %237 = vector.extract_strided_slice %229 {offsets = [0, 128], sizes = [1, 128], strides = [1, 1]} : vector<1x256xf32> to vector<1x128xf32>
    %238 = arith.addf %236, %237 : vector<1x128xf32>
    %239 = vector.extract_strided_slice %238 {offsets = [0, 0], sizes = [1, 64], strides = [1, 1]} : vector<1x128xf32> to vector<1x64xf32>
    %240 = vector.extract_strided_slice %238 {offsets = [0, 64], sizes = [1, 64], strides = [1, 1]} : vector<1x128xf32> to vector<1x64xf32>
    %241 = arith.addf %239, %240 : vector<1x64xf32>
    %cst_73 = arith.constant 3.125000e-02 : f32
    %242 = vector.broadcast %cst_73 : f32 to vector<1x64xf32>
    %243 = arith.mulf %235, %242 : vector<1x64xf32>
    %cst_74 = arith.constant 3.125000e-02 : f32
    %244 = vector.broadcast %cst_74 : f32 to vector<1x64xf32>
    %245 = arith.mulf %241, %244 : vector<1x64xf32>
    %246 = arith.mulf %243, %243 : vector<1x64xf32>
    %247 = arith.subf %245, %246 : vector<1x64xf32>
    %cst_75 = arith.constant 0.000000e+00 : f32
    %248 = vector.broadcast %cst_75 : f32 to vector<1x64xf32>
    %249 = arith.maximumf %247, %248 : vector<1x64xf32>
    %c2_76 = arith.constant 2 : index
    %c0_77 = arith.constant 0 : index
    %250 = vector.load %arg6[%c2_76, %c0_77] : memref<4x64xf32, #tpu.memory_space<vmem>>, vector<1x64xf32>
    %cst_78 = arith.constant 9.99999974E-6 : f32
    %251 = vector.broadcast %cst_78 : f32 to vector<1x64xf32>
    %252 = arith.addf %249, %251 : vector<1x64xf32>
    %253 = math.rsqrt %252 : vector<1x64xf32>
    %254 = arith.mulf %250, %253 : vector<1x64xf32>
    %c2_79 = arith.constant 2 : index
    %c0_80 = arith.constant 0 : index
    %255 = vector.load %arg7[%c2_79, %c0_80] : memref<4x64xf32, #tpu.memory_space<vmem>>, vector<1x64xf32>
    %256 = arith.mulf %243, %254 : vector<1x64xf32>
    %257 = arith.subf %255, %256 : vector<1x64xf32>
    %258 = tpu.concatenate %254, %254, %254, %254 in 1 : vector<1x64xf32>, vector<1x64xf32>, vector<1x64xf32>, vector<1x64xf32> -> vector<1x256xf32>
    %259 = tpu.concatenate %257, %257, %257, %257 in 1 : vector<1x64xf32>, vector<1x64xf32>, vector<1x64xf32>, vector<1x64xf32> -> vector<1x256xf32>
    %260 = vector.broadcast %258 : vector<1x256xf32> to vector<8x256xf32>
    %261 = arith.mulf %224, %260 : vector<8x256xf32>
    %262 = vector.broadcast %259 : vector<1x256xf32> to vector<8x256xf32>
    %263 = arith.addf %261, %262 : vector<8x256xf32>
    %cst_81 = arith.constant 0.000000e+00 : f32
    %264 = vector.broadcast %cst_81 : f32 to vector<8x256xf32>
    %265 = arith.maximumf %263, %264 : vector<8x256xf32>
    %266 = vector.extract_strided_slice %265 {offsets = [0, 0], sizes = [8, 64], strides = [1, 1]} : vector<8x256xf32> to vector<8x64xf32>
    %267 = vector.extract_strided_slice %265 {offsets = [0, 64], sizes = [8, 64], strides = [1, 1]} : vector<8x256xf32> to vector<8x64xf32>
    %268 = arith.maximumf %266, %267 : vector<8x64xf32>
    %269 = vector.extract_strided_slice %265 {offsets = [0, 128], sizes = [8, 64], strides = [1, 1]} : vector<8x256xf32> to vector<8x64xf32>
    %270 = vector.extract_strided_slice %265 {offsets = [0, 192], sizes = [8, 64], strides = [1, 1]} : vector<8x256xf32> to vector<8x64xf32>
    %271 = arith.maximumf %269, %270 : vector<8x64xf32>
    %272 = tpu.concatenate %268, %271 in 1 : vector<8x64xf32>, vector<8x64xf32> -> vector<8x128xf32>
    %273 = vector.extract_strided_slice %272 {offsets = [0, 0], sizes = [2, 128], strides = [1, 1]} : vector<8x128xf32> to vector<2x128xf32>
    %274 = vector.extract_strided_slice %272 {offsets = [2, 0], sizes = [2, 128], strides = [1, 1]} : vector<8x128xf32> to vector<2x128xf32>
    %275 = arith.maximumf %273, %274 : vector<2x128xf32>
    %276 = vector.extract_strided_slice %272 {offsets = [4, 0], sizes = [2, 128], strides = [1, 1]} : vector<8x128xf32> to vector<2x128xf32>
    %277 = vector.extract_strided_slice %272 {offsets = [6, 0], sizes = [2, 128], strides = [1, 1]} : vector<8x128xf32> to vector<2x128xf32>
    %278 = arith.maximumf %276, %277 : vector<2x128xf32>
    %279 = tpu.concatenate %275, %278 in 0 : vector<2x128xf32>, vector<2x128xf32> -> vector<4x128xf32>
    %280 = arith.truncf %279 : vector<4x128xf32> to vector<4x128xbf16>
    %c2_82 = arith.constant 2 : index
    %c64_83 = arith.constant 64 : index
    %281 = vector.load %arg11[%c2_82, %c64_83] : memref<8x256xbf16, #tpu.memory_space<vmem>>, vector<4x128xbf16>
    tpu.vector_store %arg11[%c2_82, %c64_83], %280 {strides = array<i32>} : memref<8x256xbf16, #tpu.memory_space<vmem>>, vector<4x128xbf16>,
    %cst_84 = arith.constant 0.000000e+00 : f32
    %282 = vector.broadcast %cst_84 : f32 to vector<4x128xf32>
    %c0_85 = arith.constant 0 : index
    %c0_86 = arith.constant 0 : index
    %283 = vector.load %arg11[%c0_85, %c0_86] : memref<8x256xbf16, #tpu.memory_space<vmem>>, vector<4x256xbf16>
    %c0_87 = arith.constant 0 : index
    %c0_88 = arith.constant 0 : index
    %284 = vector.load %arg5[%c0_87, %c0_88] : memref<768x128xbf16, #tpu.memory_space<vmem>>, vector<256x128xbf16>
    %cst_89 = arith.constant dense<0.000000e+00> : vector<4x128xf32>
    %285 = tpu.matmul %283, %284, %cst_89 {dimension_numbers = #tpu.dot_dimension_numbers<[1], [0], [0], [1], [0, 0, 1, 1], [], []>} : vector<4x256xbf16>, vector<256x128xbf16>, vector<4x128xf32> -> vector<4x128xf32>
    %286 = arith.addf %282, %285 : vector<4x128xf32>
    %c2_90 = arith.constant 2 : index
    %c0_91 = arith.constant 0 : index
    %287 = vector.load %arg11[%c2_90, %c0_91] : memref<8x256xbf16, #tpu.memory_space<vmem>>, vector<4x256xbf16>
    %c256 = arith.constant 256 : index
    %c0_92 = arith.constant 0 : index
    %288 = vector.load %arg5[%c256, %c0_92] : memref<768x128xbf16, #tpu.memory_space<vmem>>, vector<256x128xbf16>
    %cst_93 = arith.constant dense<0.000000e+00> : vector<4x128xf32>
    %289 = tpu.matmul %287, %288, %cst_93 {dimension_numbers = #tpu.dot_dimension_numbers<[1], [0], [0], [1], [0, 0, 1, 1], [], []>} : vector<4x256xbf16>, vector<256x128xbf16>, vector<4x128xf32> -> vector<4x128xf32>
    %290 = arith.addf %286, %289 : vector<4x128xf32>
    %c4_94 = arith.constant 4 : index
    %c0_95 = arith.constant 0 : index
    %291 = vector.load %arg11[%c4_94, %c0_95] : memref<8x256xbf16, #tpu.memory_space<vmem>>, vector<4x256xbf16>
    %c512 = arith.constant 512 : index
    %c0_96 = arith.constant 0 : index
    %292 = vector.load %arg5[%c512, %c0_96] : memref<768x128xbf16, #tpu.memory_space<vmem>>, vector<256x128xbf16>
    %cst_97 = arith.constant dense<0.000000e+00> : vector<4x128xf32>
    %293 = tpu.matmul %291, %292, %cst_97 {dimension_numbers = #tpu.dot_dimension_numbers<[1], [0], [0], [1], [0, 0, 1, 1], [], []>} : vector<4x256xbf16>, vector<256x128xbf16>, vector<4x128xf32> -> vector<4x128xf32>
    %294 = arith.addf %290, %293 : vector<4x128xf32>
    %cst_98 = arith.constant dense<0.000000e+00> : vector<128xf32>
    %295 = vector.multi_reduction <add>, %294, %cst_98 [0] : vector<4x128xf32> to vector<128xf32>
    %296 = vector.shape_cast %295 : vector<128xf32> to vector<1x128xf32>
    %297 = arith.mulf %294, %294 : vector<4x128xf32>
    %cst_99 = arith.constant dense<0.000000e+00> : vector<128xf32>
    %298 = vector.multi_reduction <add>, %297, %cst_99 [0] : vector<4x128xf32> to vector<128xf32>
    %299 = vector.shape_cast %298 : vector<128xf32> to vector<1x128xf32>
    %300 = vector.extract_strided_slice %296 {offsets = [0, 0], sizes = [1, 64], strides = [1, 1]} : vector<1x128xf32> to vector<1x64xf32>
    %301 = vector.extract_strided_slice %296 {offsets = [0, 64], sizes = [1, 64], strides = [1, 1]} : vector<1x128xf32> to vector<1x64xf32>
    %302 = arith.addf %300, %301 : vector<1x64xf32>
    %303 = vector.extract_strided_slice %299 {offsets = [0, 0], sizes = [1, 64], strides = [1, 1]} : vector<1x128xf32> to vector<1x64xf32>
    %304 = vector.extract_strided_slice %299 {offsets = [0, 64], sizes = [1, 64], strides = [1, 1]} : vector<1x128xf32> to vector<1x64xf32>
    %305 = arith.addf %303, %304 : vector<1x64xf32>
    %cst_100 = arith.constant 1.250000e-01 : f32
    %306 = vector.broadcast %cst_100 : f32 to vector<1x64xf32>
    %307 = arith.mulf %302, %306 : vector<1x64xf32>
    %cst_101 = arith.constant 1.250000e-01 : f32
    %308 = vector.broadcast %cst_101 : f32 to vector<1x64xf32>
    %309 = arith.mulf %305, %308 : vector<1x64xf32>
    %310 = arith.mulf %307, %307 : vector<1x64xf32>
    %311 = arith.subf %309, %310 : vector<1x64xf32>
    %cst_102 = arith.constant 0.000000e+00 : f32
    %312 = vector.broadcast %cst_102 : f32 to vector<1x64xf32>
    %313 = arith.maximumf %311, %312 : vector<1x64xf32>
    %c3 = arith.constant 3 : index
    %c0_103 = arith.constant 0 : index
    %314 = vector.load %arg6[%c3, %c0_103] : memref<4x64xf32, #tpu.memory_space<vmem>>, vector<1x64xf32>
    %cst_104 = arith.constant 9.99999974E-6 : f32
    %315 = vector.broadcast %cst_104 : f32 to vector<1x64xf32>
    %316 = arith.addf %313, %315 : vector<1x64xf32>
    %317 = math.rsqrt %316 : vector<1x64xf32>
    %318 = arith.mulf %314, %317 : vector<1x64xf32>
    %c3_105 = arith.constant 3 : index
    %c0_106 = arith.constant 0 : index
    %319 = vector.load %arg7[%c3_105, %c0_106] : memref<4x64xf32, #tpu.memory_space<vmem>>, vector<1x64xf32>
    %320 = arith.mulf %307, %318 : vector<1x64xf32>
    %321 = arith.subf %319, %320 : vector<1x64xf32>
    %322 = tpu.concatenate %318, %318 in 1 : vector<1x64xf32>, vector<1x64xf32> -> vector<1x128xf32>
    %323 = tpu.concatenate %321, %321 in 1 : vector<1x64xf32>, vector<1x64xf32> -> vector<1x128xf32>
    %324 = vector.broadcast %322 : vector<1x128xf32> to vector<4x128xf32>
    %325 = arith.mulf %294, %324 : vector<4x128xf32>
    %326 = vector.broadcast %323 : vector<1x128xf32> to vector<4x128xf32>
    %327 = arith.addf %325, %326 : vector<4x128xf32>
    %cst_107 = arith.constant 0.000000e+00 : f32
    %328 = vector.broadcast %cst_107 : f32 to vector<4x128xf32>
    %329 = arith.maximumf %327, %328 : vector<4x128xf32>
    %330 = vector.extract_strided_slice %329 {offsets = [0, 0], sizes = [4, 64], strides = [1, 1]} : vector<4x128xf32> to vector<4x64xf32>
    %331 = vector.extract_strided_slice %329 {offsets = [0, 64], sizes = [4, 64], strides = [1, 1]} : vector<4x128xf32> to vector<4x64xf32>
    %332 = arith.maximumf %330, %331 : vector<4x64xf32>
    %333 = vector.extract_strided_slice %332 {offsets = [0, 0], sizes = [2, 64], strides = [1, 1]} : vector<4x64xf32> to vector<2x64xf32>
    %334 = vector.extract_strided_slice %332 {offsets = [2, 0], sizes = [2, 64], strides = [1, 1]} : vector<4x64xf32> to vector<2x64xf32>
    %335 = arith.maximumf %333, %334 : vector<2x64xf32>
    %c0_108 = arith.constant 0 : index
    %c0_109 = arith.constant 0 : index
    %336 = vector.load %arg8[%c0_108, %c0_109] : memref<2x64xf32, #tpu.memory_space<vmem>>, vector<2x64xf32>
    tpu.vector_store %arg8[%c0_108, %c0_109], %335 {strides = array<i32>} : memref<2x64xf32, #tpu.memory_space<vmem>>, vector<2x64xf32>,
    return
  }
  func.func @transform_0(%arg0: i32) -> (i32, i32) {
    %c0_i32 = arith.constant 0 : i32
    %c0_i32_0 = arith.constant 0 : i32
    %c0_i32_1 = arith.constant 0 : i32
    return %c0_i32, %c0_i32_0 : i32, i32
  }
  func.func @transform_1(%arg0: i32) -> (i32, i32) {
    %c0_i32 = arith.constant 0 : i32
    %c0_i32_0 = arith.constant 0 : i32
    %c0_i32_1 = arith.constant 0 : i32
    return %c0_i32, %c0_i32_0 : i32, i32
  }
  func.func @transform_2(%arg0: i32) -> (i32, i32) {
    %c0_i32 = arith.constant 0 : i32
    %c0_i32_0 = arith.constant 0 : i32
    %c0_i32_1 = arith.constant 0 : i32
    return %c0_i32, %c0_i32_0 : i32, i32
  }
  func.func @transform_3(%arg0: i32) -> (i32, i32) {
    %c0_i32 = arith.constant 0 : i32
    %c0_i32_0 = arith.constant 0 : i32
    %c0_i32_1 = arith.constant 0 : i32
    return %c0_i32, %c0_i32_0 : i32, i32
  }
  func.func @transform_4(%arg0: i32) -> (i32, i32) {
    %c0_i32 = arith.constant 0 : i32
    %c0_i32_0 = arith.constant 0 : i32
    %c0_i32_1 = arith.constant 0 : i32
    return %c0_i32, %c0_i32_0 : i32, i32
  }
  func.func @transform_5(%arg0: i32) -> (i32, i32) {
    %c0_i32 = arith.constant 0 : i32
    %c0_i32_0 = arith.constant 0 : i32
    %c0_i32_1 = arith.constant 0 : i32
    return %c0_i32, %c0_i32_0 : i32, i32
  }
  func.func @transform_6(%arg0: i32) -> (i32, i32) {
    %c0_i32 = arith.constant 0 : i32
    %c0_i32_0 = arith.constant 0 : i32
    %c0_i32_1 = arith.constant 0 : i32
    return %c0_i32, %c0_i32_0 : i32, i32
  }
  func.func @transform_7(%arg0: i32) -> (i32, i32) {
    %c0_i32 = arith.constant 0 : i32
    %c0_i32_0 = arith.constant 0 : i32
    %c0_i32_1 = arith.constant 0 : i32
    return %c0_i32, %c0_i32_0 : i32, i32
  }
}

</mosaic_0001>

<bundles_post_ra>
// kernel: conv4_forward.1
= control target key start
LH: loop header
LB: loop body
LE: loop exit
PB: predicated region body
PF: predicated region fallthrough
CT: control target
= control target key end

     0   :  { %vm182_vm0 = vcmask 1040384   ;;  %vm85_vm1 = vcmask 1046528   ;;  %v9994_v29 = vmov 0   ;;  %vm175_vm2 = vcmask 146432   ;;  %s13535_s0 = inlined_call_operand.vmem [shape: bf16[36,18], index: 0, kind: input, shape index: {}]   ;;  %s13536_s1 = inlined_call_operand.vmem [shape: bf16[54,1024], index: 1, kind: input, shape index: {}]   ;;  %s13537_s2 = inlined_call_operand.vmem [shape: bf16[1920,512], index: 2, kind: input, shape index: {}]   ;;  %s13538_s3 = inlined_call_operand.vmem [shape: bf16[1152,256], index: 3, kind: input, shape index: {}]   ;;  %s13539_s4 = inlined_call_operand.vmem [shape: bf16[768,128], index: 4, kind: input, shape index: {}]   ;;  %s13540_s5 = inlined_call_operand.vmem [shape: f32[4,64], index: 5, kind: input, shape index: {}]   ;;  %s13541_s6 = inlined_call_operand.vmem [shape: f32[4,64], index: 6, kind: input, shape index: {}]   ;;  %s13542_s7 = inlined_call_operand.hbm [shape: f32[2,64], index: 7, kind: output, shape index: {}]  }
   0x1   :  { %v68_v0 = vld [vmem:[%s13536_s1 + $0x80] sm:$0x33]  ;;  %v69_v1 = vld [vmem:[%s13536_s1 + $0x88] sm:$0x33]  ;;  %28 = vst [vmem:[#allocation2] sm:$0xff] %v9994_v29  ;;  %29 = vst [vmem:[#allocation2 + $0x8] sm:$0xff] %v9994_v29  ;;  %239 = vmatprep.mubr.bf16.mxu0 %v9994_v29  ;;  %292 = vmatprep.mubr.bf16.mxu1 %v9994_v29 }
   0x2   :  { %v64_v2 = vld [vmem:[%s13536_s1 + $0x60] sm:$0xff]  ;;  %v7887_v3 = vcombine.high %v68_v0, %v68_v0  ;;  %v7889_v4 = vcombine.high %v69_v1, %v69_v1  ;;  %v7886_v5 = vcombine.low %v68_v0, %v68_v0  ;;  %v7888_v6 = vcombine.low %v69_v1, %v69_v1  ;;  %v61_v8 = vld [vmem:[%s13536_s1 + $0x48] sm:$0xee]  ;;  %30 = vst [vmem:[#allocation2 + $0x10] sm:$0xf] %v9994_v29  ;;  %v66_v31 = vld [vmem:[%s13536_s1 + $0x70] sm:$0xff] }
   0x3   :  { %v60_v7 = vld [vmem:[%s13536_s1 + $0x40] sm:$0xee]  ;;  %v65_v9 = vld [vmem:[%s13536_s1 + $0x68] sm:$0xff]  ;;  %31 = vst [vmem:[#allocation2 + $0x14] sm:$0xff] %v9994_v29  ;;  %33 = vst [vmem:[#allocation2 + $0x24] sm:$0xf] %v9994_v29 }
   0x4   :  { %v7879_v10 = vcombine.high %v60_v7, %v64_v2  ;;  %v7881_v11 = vcombine.high %v61_v8, %v65_v9  ;;  %v7878_v12 = vcombine.low %v60_v7, %v64_v2  ;;  %v10058_v13 = vld [vmem:[%s13535_s0 + $0x4] sm:$0xf]  ;;  %v10063_v14 = vld [vmem:[%s13535_s0 + $0x8] sm:$0xff]   ;;  %v147_v15 = vrot.slane %v7887_v3, 1  ;;  %v58_v25 = vld [vmem:[%s13535_s0] sm:$0xe] }
   0x5   :  { %v153_v16 = vrot.slane %v7889_v4, 1  ;;  %v144_v17 = vrot.slane %v7886_v5, 1  ;;  %v150_v18 = vrot.slane %v7888_v6, 1  ;;  %v7880_v22 = vcombine.low %v61_v8, %v65_v9  ;;  %34 = vst [vmem:[#allocation2 + $0x28] sm:$0x33] %v9994_v29  ;;  %37 = vst [vmem:[#allocation3] sm:$0xff] %v9994_v29 }
   0x6   :  { %v146_v19 = vrot.slane %v7879_v10, 1  ;;  %v152_v20 = vrot.slane %v7881_v11, 1  ;;  %v143_v21 = vrot.slane %v7878_v12, 1  ;;  %7894 = vmatprep.subr.msk.bf16.mxu0 %vm182_vm0, %v147_v15  ;;  %35 = vst [vmem:[#allocation2 + $0x30] sm:$0x33] %v9994_v29  ;;  %41 = vst [vmem:[#allocation4] sm:$0xff] %v9994_v29  ;;  %v7875_v33 = vcombine.low %v58_v25, %v10058_v13 }
   0x7   :  { %7897 = vmatprep.subr.msk.bf16.mxu1 %vm182_vm0, %v153_v16  ;;  %v184_v23 = vsel %vm182_vm0, %v144_v17, 0  ;;  %v190_v24 = vsel %vm182_vm0, %v150_v18, 0  ;;  %v149_v28 = vrot.slane %v7880_v22, 1  ;;  %36 = vst [vmem:[#allocation2 + $0x38] sm:$0x3] %v9994_v29  ;;  %v87_v34 = vrot.slane %v10063_v14, 1 }
   0x8   :  { %220 = vmatpush1.bf16.msra.mxu0 %v184_v23  ;;  %273 = vmatpush1.bf16.msra.mxu1 %v190_v24  ;;  %v148_v26 = vsel %vm85_vm1, %v146_v19, %v147_v15  ;;  %v154_v27 = vsel %vm85_vm1, %v152_v20, %v153_v16  ;;  %38 = vst [vmem:[#allocation3 + $0x8] sm:$0xf] %v9994_v29  ;;  %39 = vst [vmem:[#allocation3 + $0xc] sm:$0x33] %v9994_v29  ;;  %v70_v30 = vld [vmem:[%s13536_s1 + $0x90] sm:$0x33] }
   0x9   :  { %40 = vst [vmem:[#allocation3 + $0x14] sm:$0x3] %v9994_v29  ;;  %221 = vmatprep.subr.bf16.mxu0 %v148_v26  ;;  %274 = vmatprep.subr.bf16.mxu1 %v154_v27  ;;  %v145_v32 = vsel %vm85_vm1, %v143_v21, %v144_v17  ;;  %v71_v35 = vld [vmem:[%s13536_s1 + $0x98] sm:$0x33]  ;;  %v151_v37 = vsel %vm85_vm1, %v149_v28, %v150_v18  ;;  %v62_v40 = vld [vmem:[%s13536_s1 + $0x50] sm:$0xee] }
   0xa   :  { %v67_v36 = vld [vmem:[%s13536_s1 + $0x78] sm:$0xff]  ;;  %v7891_v38 = vcombine.high %v70_v30, %v70_v30  ;;  %v7893_v39 = vcombine.high %v71_v35, %v71_v35  ;;  %v86_v41 = vrot.slane %v7875_v33, 1  ;;  %v7890_v42 = vcombine.low %v70_v30, %v70_v30  ;;  %v8920_v48 = vld [vmem:[%s13535_s0 + $0x10] ss:$0 sps:$4 sm:$0x11]   ;;  %v46_v15 = vld [vmem:[%s13536_s1] sm:$0xff] }
   0xb   :  { %v7892_v43 = vcombine.low %v71_v35, %v71_v35  ;;  %v7883_v44 = vcombine.high %v62_v40, %v66_v31  ;;  %v63_v45 = vld [vmem:[%s13536_s1 + $0x58] sm:$0xee]  ;;  %v7882_v55 = vcombine.low %v62_v40, %v66_v31  ;;  %v54_v57 = vld [vmem:[%s13536_s1 + $0x40] sm:$0x11]  ;;  %v55_v58 = vld [vmem:[%s13536_s1 + $0x48] sm:$0x11] }
   0xc   :  { %222 = vmatpush1.bf16.msra.mxu0 %v145_v32  ;;  %275 = vmatpush1.bf16.msra.mxu1 %v151_v37  ;;  %v159_v46 = vrot.slane %v7891_v38, 1  ;;  %v165_v47 = vrot.slane %v7893_v39, 1  ;;  %v7885_v49 = vcombine.high %v63_v45, %v67_v36  ;;  %v88_v50 = vsel %vm85_vm1, %v86_v41, %v87_v34  ;;  %v724_v59 = vld [vmem:[%s13535_s0] sm:$0xc]  ;;  %v47_v17 = vld [vmem:[%s13536_s1 + $0x8] sm:$0xff]  ;;  %v52_v37 = vld [vmem:[%s13536_s1 + $0x30] sm:$0xff] }
   0xd   :  { %v156_v51 = vrot.slane %v7890_v42, 1  ;;  %v162_v52 = vrot.slane %v7892_v43, 1  ;;  %v158_v53 = vrot.slane %v7883_v44, 1  ;;  %v7884_v56 = vcombine.low %v63_v45, %v67_v36  ;;  %v50_v16 = vld [vmem:[%s13536_s1 + $0x20] sm:$0xff]  ;;  %v51_v18 = vld [vmem:[%s13536_s1 + $0x28] sm:$0xff]  ;;  %v48_v36 = vld [vmem:[%s13536_s1 + $0x10] sm:$0xff] }
   0xe   :  { %7900 = vmatprep.subr.msk.bf16.mxu0 %vm182_vm0, %v159_v46  ;;  %7903 = vmatprep.subr.msk.bf16.mxu1 %vm182_vm0, %v165_v47  ;;  %v164_v54 = vrot.slane %v7885_v49, 1  ;;  %v89_v63 = vrot.slane %v8920_v48, 1  ;;  %v155_v1 = vrot.slane %v7882_v55, 1  ;;  %v7916_v3 = vcombine.high %v54_v57, %v54_v57  ;;  %v56_v20 = vld [vmem:[%s13536_s1 + $0x50] sm:$0x11]  ;;  %v49_v38 = vld [vmem:[%s13536_s1 + $0x18] sm:$0xff] }
   0xf   :  { %7895 = vmatmul.mubr.msk.bf16.vlgmr.msra.gmra.mxu0 %vm175_vm2, %v88_v50  ;;  %7898 = vmatmul.mubr.msk.bf16.vlgmr.msra.gmra.mxu1 %vm175_vm2, %v88_v50  ;;  %v196_v60 = vsel %vm182_vm0, %v156_v51, 0  ;;  %v202_v61 = vsel %vm182_vm0, %v162_v52, 0  ;;  %v160_v62 = vsel %vm85_vm1, %v158_v53, %v159_v46  ;;  %v161_v2 = vrot.slane %v7884_v56, 1  ;;  %v57_v21 = vld [vmem:[%s13536_s1 + $0x58] sm:$0x11]  ;;  %v731_v53 = vld [vmem:[%s13536_s1 + $0xa8] sm:$0xff] }
  0x10   :  { %326 = vmatpush1.bf16.msra.mxu0 %v196_v60  ;;  %379 = vmatpush1.bf16.msra.mxu1 %v202_v61  ;;  %v166_v0 = vsel %vm85_vm1, %v164_v54, %v165_v47  ;;  %v7918_v4 = vcombine.high %v55_v58, %v55_v58  ;;  %v7935_v5 = vcombine.low %v724_v59, %v10058_v13  ;;  %v746_v10 = vrot.slane %v10063_v14, 2  ;;  %v42_v31 = vld [vmem:[%s13535_s0] sm:$0xf]  ;;  %v735_v33 = vld [vmem:[%s13536_s1 + $0xc8] sm:$0x77]  ;;  %v53_v39 = vld [vmem:[%s13536_s1 + $0x38] sm:$0xff] }
  0x11   :  { %249 = vmatprep.mubr.bf16.mxu0 %v9994_v29  ;;  %302 = vmatprep.mubr.bf16.mxu1 %v9994_v29  ;;  %v157_v6 = vsel %vm85_vm1, %v155_v1, %v156_v51  ;;  %v163_v7 = vsel %vm85_vm1, %v161_v2, %v162_v52  ;;  %v90_v8 = vsel %vm85_vm1, %v87_v34, %v89_v63  ;;  %vm744_vm3 = vcmask 1045504   ;;  %v734_v32 = vld [vmem:[%s13536_s1 + $0xc0] sm:$0x77]  ;;  %v727_v52 = vld [vmem:[%s13536_s1 + $0x88] sm:$0xcc] }
  0x12   :  { %327 = vmatprep.subr.bf16.mxu0 %v160_v62  ;;  %380 = vmatprep.subr.bf16.mxu1 %v166_v0  ;;  %v745_v9 = vrot.slane %v7935_v5, 2  ;;  %v7915_v11 = vcombine.low %v54_v57, %v54_v57  ;;  %v7917_v12 = vcombine.low %v55_v58, %v55_v58  ;;  %v7908_v24 = vcombine.high %v46_v15, %v50_v16  ;;  %v730_v51 = vld [vmem:[%s13536_s1 + $0xa0] sm:$0xff]  ;;  %v736_v60 = vld [vmem:[%s13536_s1 + $0xd0] sm:$0x77]  ;;  %v737_v61 = vld [vmem:[%s13536_s1 + $0xd8] sm:$0x77] }
  0x13   :  { %v7910_v25 = vcombine.high %v47_v17, %v51_v18  ;;  %v7907_v26 = vcombine.low %v46_v15, %v50_v16  ;;  %v7909_v27 = vcombine.low %v47_v17, %v51_v18  ;;  %v7920_v28 = vcombine.high %v56_v20, %v56_v20  ;;  %v728_v17 = vld [vmem:[%s13536_s1 + $0x90] sm:$0xcc] }
  0x14   :  { %328 = vmatpush1.bf16.msra.mxu0 %v157_v6  ;;  %381 = vmatpush1.bf16.msra.mxu1 %v163_v7  ;;  %v10160_v19 = vsel %vm744_vm3, %v745_v9, %v746_v10  ;;  %v489_v22 = vsel %vm182_vm0, %v7915_v11, 0  ;;  %v495_v23 = vsel %vm182_vm0, %v7917_v12, 0  ;;  %v7922_v30 = vcombine.high %v57_v21, %v57_v21  ;;  %v732_v18 = vld [vmem:[%s13536_s1 + $0xb0] sm:$0xff] }
  0x15   :  { %7923 = vmatprep.subr.msk.bf16.mxu0 %vm182_vm0, %v7916_v3  ;;  %7926 = vmatprep.subr.msk.bf16.mxu1 %vm182_vm0, %v7918_v4  ;;  %v7919_v34 = vcombine.low %v56_v20, %v56_v20  ;;  %v7921_v35 = vcombine.low %v57_v21, %v57_v21  ;;  %v7906_v40 = vcombine.low %v42_v31, %v10058_v13  ;;  %v729_v20 = vld [vmem:[%s13536_s1 + $0x98] sm:$0xcc]  ;;  %v8937_v31 = vld [vmem:[%s13535_s0 + $0x10] ss:$0 sps:$4 sm:$0x33]  }
  0x16   :  { %v7946_v43 = vcombine.high %v734_v32, %v734_v32  ;;  %v7948_v44 = vcombine.high %v735_v33, %v735_v33  ;;  %v7912_v45 = vcombine.high %v48_v36, %v52_v37  ;;  %v7914_v46 = vcombine.high %v49_v38, %v53_v39  ;;  %v733_v21 = vld [vmem:[%s13536_s1 + $0xb8] sm:$0xff] }
  0x17   :  { %7896 = vmatmul.mubr.msk.bf16.gmra.mxu0 %vm175_vm2, %v90_v8  ;;  %7899 = vmatmul.mubr.msk.bf16.gmra.mxu1 %vm175_vm2, %v90_v8  ;;  %v501_v41 = vsel %vm182_vm0, %v7919_v34, 0  ;;  %v507_v42 = vsel %vm182_vm0, %v7921_v35, 0  ;;  %v7911_v47 = vcombine.low %v48_v36, %v52_v37  ;;  %v7913_v48 = vcombine.low %v49_v38, %v53_v39 }
  0x18   :  { %345 = vmatprep.mubr.bf16.mxu0 %v9994_v29  ;;  %398 = vmatprep.mubr.bf16.mxu1 %v9994_v29  ;;  %v806_v13 = vrot.slane %v7946_v43, 2  ;;  %v812_v49 = vrot.slane %v7948_v44, 2  ;;  %v7945_v54 = vcombine.low %v734_v32, %v734_v32  ;;  %v7947_v55 = vcombine.low %v735_v33, %v735_v33 }
  0x19   :  { %v7940_v57 = vcombine.high %v727_v52, %v731_v53  ;;  %v7939_v63 = vcombine.low %v727_v52, %v731_v53  ;;  %v7950_v6 = vcombine.high %v736_v60, %v736_v60  ;;  %v7952_v7 = vcombine.high %v737_v61, %v737_v61 }
  0x1a   :  { %v803_v58 = vrot.slane %v7945_v54, 2  ;;  %v809_v62 = vrot.slane %v7947_v55, 2 }
  0x1b   :  { %v811_v1 = vrot.slane %v7940_v57, 2  ;;  %v808_v5 = vrot.slane %v7939_v63, 2  ;;  %v818_v15 = vrot.slane %v7950_v6, 2  ;;  %v824_v16 = vrot.slane %v7952_v7, 2 }
  0x1c   :  { %v841_v2 = vsel %vm182_vm0, %v803_v58, 0  ;;  %v847_v4 = vsel %vm182_vm0, %v809_v62, 0 }
  0x1d   :  { %v813_v9 = vsel %vm744_vm3, %v811_v1, %v812_v49  ;;  %v810_v12 = vsel %vm744_vm3, %v808_v5, %v809_v62 }
  0x1f   :  { %7901 = vmatmul.mubr.msk.bf16.vlgmr.msra.gmra.mxu0 %vm175_vm2, %v88_v50  ;;  %7904 = vmatmul.mubr.msk.bf16.vlgmr.msra.gmra.mxu1 %vm175_vm2, %v88_v50  ;;  %v726_v50 = vld [vmem:[%s13536_s1 + $0x80] sm:$0xcc] }
  0x20   :  { %525 = vmatpush1.bf16.msra.mxu0 %v489_v22  ;;  %578 = vmatpush1.bf16.msra.mxu1 %v495_v23  ;;  %v7938_v56 = vcombine.high %v726_v50, %v730_v51  ;;  %v7937_v59 = vcombine.low %v726_v50, %v730_v51  ;;  %v7949_v22 = vcombine.low %v736_v60, %v736_v60 }
  0x21   :  { %355 = vmatprep.mubr.bf16.mxu0 %v9994_v29  ;;  %408 = vmatprep.mubr.bf16.mxu1 %v9994_v29  ;;  %v7951_v23 = vcombine.low %v737_v61, %v737_v61 }
  0x22   :  { %526 = vmatprep.subr.bf16.mxu0 %v7908_v24  ;;  %579 = vmatprep.subr.bf16.mxu1 %v7910_v25  ;;  %v805_v0 = vrot.slane %v7938_v56, 2  ;;  %v802_v3 = vrot.slane %v7937_v59, 2  ;;  %v7942_v24 = vcombine.high %v728_v17, %v732_v18  ;;  %v7944_v25 = vcombine.high %v729_v20, %v733_v21 }
  0x24   :  { %527 = vmatpush1.bf16.msra.mxu0 %v7907_v26  ;;  %580 = vmatpush1.bf16.msra.mxu1 %v7909_v27  ;;  %v804_v11 = vsel %vm744_vm3, %v802_v3, %v803_v58  ;;  %v815_v26 = vrot.slane %v7949_v22, 2  ;;  %v821_v27 = vrot.slane %v7951_v23, 2  ;;  %v817_v32 = vrot.slane %v7942_v24, 2 }
  0x25   :  { %7929 = vmatprep.subr.msk.bf16.mxu0 %vm182_vm0, %v7920_v28  ;;  %7932 = vmatprep.subr.msk.bf16.mxu1 %vm182_vm0, %v7922_v30  ;;  %v7941_v28 = vcombine.low %v728_v17, %v732_v18  ;;  %v7943_v30 = vcombine.low %v729_v20, %v733_v21  ;;  %v823_v33 = vrot.slane %v7944_v25, 2 }
  0x26   :  { %v853_v34 = vsel %vm182_vm0, %v815_v26, 0  ;;  %v859_v35 = vsel %vm182_vm0, %v821_v27, 0  ;;  %v819_v38 = vsel %vm744_vm3, %v817_v32, %v818_v15 }
  0x27   :  { %7902 = vmatmul.mubr.msk.bf16.gmra.mxu0 %vm175_vm2, %v90_v8  ;;  %7905 = vmatmul.mubr.msk.bf16.gmra.mxu1 %vm175_vm2, %v90_v8  ;;  %v807_v8 = vsel %vm744_vm3, %v805_v0, %v806_v13  ;;  %v814_v36 = vrot.slane %v7941_v28, 2  ;;  %v820_v37 = vrot.slane %v7943_v30, 2  ;;  %v825_v39 = vsel %vm744_vm3, %v823_v33, %v824_v16 }
  0x28   :  { %544 = vmatprep.mubr.bf16.mxu0 %v9994_v29  ;;  %597 = vmatprep.mubr.bf16.mxu1 %v9994_v29 }
  0x2f   :  { %7924 = vmatmul.mubr.msk.bf16.vlgmr.msra.gmra.mxu0 %vm175_vm2, %v7906_v40  ;;  %7927 = vmatmul.mubr.msk.bf16.vlgmr.msra.gmra.mxu1 %vm175_vm2, %v7906_v40 }
  0x30   :  { %631 = vmatpush1.bf16.msra.mxu0 %v501_v41  ;;  %684 = vmatpush1.bf16.msra.mxu1 %v507_v42  ;;  %v816_v41 = vsel %vm744_vm3, %v814_v36, %v815_v26  ;;  %v822_v42 = vsel %vm744_vm3, %v820_v37, %v821_v27 }
  0x31   :  { %554 = vmatprep.mubr.bf16.mxu0 %v9994_v29  ;;  %607 = vmatprep.mubr.bf16.mxu1 %v9994_v29 }
  0x32   :  { %632 = vmatprep.subr.bf16.mxu0 %v7912_v45  ;;  %685 = vmatprep.subr.bf16.mxu1 %v7914_v46 }
  0x34   :  { %633 = vmatpush1.bf16.msra.mxu0 %v7911_v47  ;;  %686 = vmatpush1.bf16.msra.mxu1 %v7913_v48 }
  0x35   :  { %7953 = vmatprep.subr.msk.bf16.mxu0 %vm182_vm0, %v806_v13  ;;  %7956 = vmatprep.subr.msk.bf16.mxu1 %vm182_vm0, %v812_v49 }
  0x37   :  { %7925 = vmatmul.mubr.msk.bf16.gmra.mxu0 %vm175_vm2, %v10063_v14  ;;  %7928 = vmatmul.mubr.msk.bf16.gmra.mxu1 %vm175_vm2, %v10063_v14 }
  0x38   :  { %650 = vmatprep.mubr.bf16.mxu0 %v9994_v29  ;;  %703 = vmatprep.mubr.bf16.mxu1 %v9994_v29 }
  0x3f   :  { %7930 = vmatmul.mubr.msk.bf16.vlgmr.msra.gmra.mxu0 %vm175_vm2, %v7906_v40  ;;  %7933 = vmatmul.mubr.msk.bf16.vlgmr.msra.gmra.mxu1 %vm175_vm2, %v7906_v40  ;;  %v748_v40 = vrot.slane %v8937_v31, 2 }
  0x40   :  { %877 = vmatpush1.bf16.msra.mxu0 %v841_v2  ;;  %930 = vmatpush1.bf16.msra.mxu1 %v847_v4 }
  0x41   :  { %660 = vmatprep.mubr.bf16.mxu0 %v9994_v29  ;;  %713 = vmatprep.mubr.bf16.mxu1 %v9994_v29  ;;  %v749_v43 = vsel %vm744_vm3, %v746_v10, %v748_v40 }
  0x42   :  { %878 = vmatprep.subr.bf16.mxu0 %v807_v8  ;;  %931 = vmatprep.subr.bf16.mxu1 %v813_v9 }
  0x44   :  { %879 = vmatpush1.bf16.msra.mxu0 %v804_v11  ;;  %932 = vmatpush1.bf16.msra.mxu1 %v810_v12 }
  0x45   :  { %7959 = vmatprep.subr.msk.bf16.mxu0 %vm182_vm0, %v818_v15  ;;  %7962 = vmatprep.subr.msk.bf16.mxu1 %vm182_vm0, %v824_v16 }
  0x47   :  { %7931 = vmatmul.mubr.msk.bf16.gmra.mxu0 %vm175_vm2, %v10063_v14  ;;  %7934 = vmatmul.mubr.msk.bf16.gmra.mxu1 %vm175_vm2, %v10063_v14 }
  0x48   :  { %896 = vmatprep.mubr.bf16.mxu0 %v9994_v29  ;;  %949 = vmatprep.mubr.bf16.mxu1 %v9994_v29 }
  0x4f   :  { %7954 = vmatmul.mubr.msk.bf16.vlgmr.msra.gmra.mxu0 %vm175_vm2, %v10160_v19  ;;  %7957 = vmatmul.mubr.msk.bf16.vlgmr.msra.gmra.mxu1 %vm175_vm2, %v10160_v19 }
  0x50   :  { %983 = vmatpush1.bf16.msra.mxu0 %v853_v34  ;;  %1036 = vmatpush1.bf16.msra.mxu1 %v859_v35 }
  0x51   :  { %906 = vmatprep.mubr.bf16.mxu0 %v9994_v29  ;;  %959 = vmatprep.mubr.bf16.mxu1 %v9994_v29 }
  0x52   :  { %984 = vmatprep.subr.bf16.mxu0 %v819_v38  ;;  %1037 = vmatprep.subr.bf16.mxu1 %v825_v39 }
  0x54   :  { %985 = vmatpush1.bf16.msra.mxu0 %v816_v41  ;;  %1038 = vmatpush1.bf16.msra.mxu1 %v822_v42 }
  0x57   :  { %7955 = vmatmul.mubr.msk.bf16.gmra.mxu0 %vm175_vm2, %v749_v43  ;;  %7958 = vmatmul.mubr.msk.bf16.gmra.mxu1 %vm175_vm2, %v749_v43 }
  0x58   :  { %1002 = vmatprep.mubr.bf16.mxu0 %v9994_v29  ;;  %1055 = vmatprep.mubr.bf16.mxu1 %v9994_v29 }
  0x5f   :  { %7960 = vmatmul.mubr.msk.bf16.vlgmr.msra.gmra.mxu0 %vm175_vm2, %v10160_v19  ;;  %7963 = vmatmul.mubr.msk.bf16.vlgmr.msra.gmra.mxu1 %vm175_vm2, %v10160_v19 }
  0x60   :  { %1012 = vmatprep.mubr.bf16.mxu0 %v9994_v29  ;;  %1065 = vmatprep.mubr.bf16.mxu1 %v9994_v29 }
  0x67   :  { %7961 = vmatmul.mubr.msk.bf16.gmra.mxu0 %vm175_vm2, %v749_v43  ;;  %7964 = vmatmul.mubr.msk.bf16.gmra.mxu1 %vm175_vm2, %v749_v43 }
  0xcf   :  { %v10294_v14 = vpop.f32.mrf.mxu0  ;;  %v10296_v10 = vpop.f32.mrf.mxu1 }
  0xd1   :  { %v10298_v44 = vpop.f32.mrf.mxu0  ;;  %v10300_v45 = vpop.f32.mrf.mxu1 }
  0xd3   :  { %v10302_v46 = vpop.f32.mrf.mxu0  ;;  %v10304_v47 = vpop.f32.mrf.mxu1 }
  0xd5   :  { %v10306_v19 = vpop.f32.mrf.mxu0  ;;  %v10308_v48 = vpop.f32.mrf.mxu1 }
  0xd7   :  { %v10310_v29 = vpop.f32.mrf.mxu0  ;;  %v10312_v13 = vpop.f32.mrf.mxu1 }
  0xd9   :  { %v10314_v49 = vpop.f32.mrf.mxu0  ;;  %v10316_v50 = vpop.f32.mrf.mxu1 }
  0xdb   :  { %v10318_v51 = vpop.f32.mrf.mxu0  ;;  %v10320_v52 = vpop.f32.mrf.mxu1 }
  0xdd   :  { %v10322_v53 = vpop.f32.mrf.mxu0  ;;  %v10324_v54 = vpop.f32.mrf.mxu1 }
  0xdf   :  { %v10326_v55 = vpop.f32.mrf.mxu0  ;;  %v10328_v56 = vpop.f32.mrf.mxu1 }
  0xe1   :  { %v10330_v57 = vpop.f32.mrf.mxu0  ;;  %v10332_v58 = vpop.f32.mrf.mxu1 }
  0xe3   :  { %v10334_v59 = vpop.f32.mrf.mxu0  ;;  %v10336_v60 = vpop.f32.mrf.mxu1 }
  0xe5   :  { %v10338_v61 = vpop.f32.mrf.mxu0  ;;  %v10340_v62 = vpop.f32.mrf.mxu1 }
  0xe6   :  { %13573 = vst [vmem:[#allocation8_spill] sm:$0xff] %v10340_v62 }
  0xe7   :  { %v10342_v63 = vpop.f32.mrf.mxu0  ;;  %v10344_v0 = vpop.f32.mrf.mxu1 }
  0xe8   :  { %13574 = vst [vmem:[#allocation9_spill] sm:$0xff] %v10342_v63  ;;  %13575 = vst [vmem:[#allocation10_spill] sm:$0xff] %v10344_v0 }
  0xe9   :  { %v10346_v1 = vpop.f32.mrf.mxu0  ;;  %v10348_v2 = vpop.f32.mrf.mxu1 }
  0xea   :  { %13576 = vst [vmem:[#allocation11_spill] sm:$0xff] %v10346_v1  ;;  %13577 = vst [vmem:[#allocation12_spill] sm:$0xff] %v10348_v2 }
  0xeb   :  { %v10350_v3 = vpop.f32.mrf.mxu0  ;;  %v10352_v4 = vpop.f32.mrf.mxu1 }
  0xec   :  { %13578 = vst [vmem:[#allocation13_spill] sm:$0xff] %v10350_v3  ;;  %13579 = vst [vmem:[#allocation14_spill] sm:$0xff] %v10352_v4 }
  0xed   :  { %v10354_v5 = vpop.f32.mrf.mxu0  ;;  %v10356_v6 = vpop.f32.mrf.mxu1 }
  0xee   :  { %13580 = vst [vmem:[#allocation15_spill] sm:$0xff] %v10354_v5  ;;  %13581 = vst [vmem:[#allocation16_spill] sm:$0xff] %v10356_v6 }
  0xef   :  { %v546_v7 = vpop.f32.mrf.mxu0  ;;  %v599_v8 = vpop.f32.mrf.mxu1 }
  0xf1   :  { %v548_v9 = vpop.f32.mrf.mxu0  ;;  %v601_v11 = vpop.f32.mrf.mxu1 }
  0xf3   :  { %v550_v12 = vpop.f32.mrf.mxu0  ;;  %v603_v15 = vpop.f32.mrf.mxu1 }
  0xf5   :  { %v552_v16 = vpop.f32.mrf.mxu0  ;;  %v605_v17 = vpop.f32.mrf.mxu1 }
  0xf7   :  { %v556_v18 = vpop.f32.mrf.mxu0  ;;  %v609_v20 = vpop.f32.mrf.mxu1 }
  0xf9   :  { %v558_v21 = vpop.f32.mrf.mxu0  ;;  %v611_v22 = vpop.f32.mrf.mxu1 }
  0xfb   :  { %v560_v23 = vpop.f32.mrf.mxu0  ;;  %v613_v24 = vpop.f32.mrf.mxu1 }
  0xfd   :  { %v562_v25 = vpop.f32.mrf.mxu0  ;;  %v615_v26 = vpop.f32.mrf.mxu1 }
  0xff   :  { %v652_v27 = vpop.f32.mrf.mxu0  ;;  %v705_v28 = vpop.f32.mrf.mxu1 }
 0x101   :  { %v654_v30 = vpop.f32.mrf.mxu0  ;;  %v707_v31 = vpop.f32.mrf.mxu1 }
 0x103   :  { %v656_v32 = vpop.f32.mrf.mxu0  ;;  %v709_v33 = vpop.f32.mrf.mxu1 }
 0x105   :  { %v658_v34 = vpop.f32.mrf.mxu0  ;;  %v711_v35 = vpop.f32.mrf.mxu1 }
 0x106   :  { %12 = vsyncpa [#allocation6], 0  ;;  %v547_v42 = vadd.f32 %v546_v7, %v10294_v14  ;;  %v600_v43 = vadd.f32 %v599_v8, %v10296_v10  ;;  %v549_v6 = vadd.f32 %v548_v9, %v10298_v44  ;;  %v602_v5 = vadd.f32 %v601_v11, %v10300_v45  ;;  %s9995_s0 = smov 64  }
 0x107   :  { %v662_v36 = vpop.f32.mrf.mxu0  ;;  %v715_v37 = vpop.f32.mrf.mxu1  ;;  %v551_v4 = vadd.f32 %v550_v12, %v10302_v46  ;;  %v604_v3 = vadd.f32 %v603_v15, %v10304_v47  ;;  %v553_v2 = vadd.f32 %v552_v16, %v10306_v19  ;;  %v606_v1 = vadd.f32 %v605_v17, %v10308_v48  ;;  %v13585_v16 = vld [vmem:[#allocation11_spill] sm:$0xff] }
 0x108   :  { %v557_v62 = vadd.f32 %v556_v18, %v10310_v29  ;;  %v610_v14 = vadd.f32 %v609_v20, %v10312_v13  ;;  %v10369_v10 = vadd.f32 %v558_v21, %v10314_v49  ;;  %v10372_v44 = vadd.f32 %v611_v22, %v10316_v50  ;;  %v13586_v18 = vld [vmem:[#allocation12_spill] sm:$0xff]  ;;  %v13587_v22 = vld [vmem:[#allocation13_spill] sm:$0xff] }
 0x109   :  { %v664_v38 = vpop.f32.mrf.mxu0  ;;  %v717_v39 = vpop.f32.mrf.mxu1  ;;  %v10375_v45 = vadd.f32 %v560_v23, %v10318_v51  ;;  %v10378_v46 = vadd.f32 %v613_v24, %v10320_v52  ;;  %v10381_v47 = vadd.f32 %v562_v25, %v10322_v53  ;;  %v10384_v19 = vadd.f32 %v615_v26, %v10324_v54  ;;  %v13590_v26 = vld [vmem:[#allocation15_spill] sm:$0xff] }
 0x10a   :  { %v10387_v13 = vadd.f32 %v652_v27, %v10326_v55  ;;  %v10390_v49 = vadd.f32 %v705_v28, %v10328_v56  ;;  %v10393_v50 = vadd.f32 %v654_v30, %v10330_v57  ;;  %v10396_v51 = vadd.f32 %v707_v31, %v10332_v58  ;;  %v13582_v57 = vld [vmem:[#allocation8_spill] sm:$0xff] }
 0x10b   :  { %v666_v40 = vpop.f32.mrf.mxu0  ;;  %v719_v41 = vpop.f32.mrf.mxu1  ;;  %v10399_v52 = vadd.f32 %v656_v32, %v10334_v59  ;;  %v10402_v53 = vadd.f32 %v709_v33, %v10336_v60  ;;  %v10409_v56 = vadd.f32 %v658_v34, %v10338_v61  ;;  %v10412_v9 = vadd.f32 %v711_v35, %v13582_v57  ;;  %v13583_v59 = vld [vmem:[#allocation9_spill] sm:$0xff]  ;;  %v13584_v60 = vld [vmem:[#allocation10_spill] sm:$0xff]  ;;  %v13591_v28 = vld [vmem:[#allocation16_spill] sm:$0xff] }
 0x10c   :  { %v10419_v12 = vadd.f32 %v662_v36, %v13583_v59  ;;  %v10422_v15 = vadd.f32 %v715_v37, %v13584_v60  ;;  %v10425_v17 = vadd.f32 %v664_v38, %v13585_v16  ;;  %v10428_v20 = vadd.f32 %v717_v39, %v13586_v18 }
 0x10d   :  { %v668_v0 = vpop.f32.mrf.mxu0  ;;  %v721_v63 = vpop.f32.mrf.mxu1  ;;  %v10431_v23 = vadd.f32 %v666_v40, %v13587_v22  ;;  %vm1324_vm4 = vcmask 523264   ;;  %vm1803_vm5 = vcmask 1041408   ;;  %vm1808_vm6 = vcmask 1043456  }
 0x10e   :  { %v10441_v27 = vadd.f32 %v668_v0, %v13590_v26  ;;  %v10444_v30 = vadd.f32 %v721_v63, %v13591_v28  ;;  %vm1851_vm7 = vcmask 1044484   ;;  %vm1901_vm9 = vcmask 1043969  }
 0x10f   :  { %v898_v48 = vpop.f32.mrf.mxu0  ;;  %v951_v29 = vpop.f32.mrf.mxu1  ;;  %vm1852_vm8 = vmor %vm182_vm0, %vm1851_vm7  ;;  %vm1902_vm10 = vcmask 1047557   ;;  %vm1915_vm12 = vcmask 1040896   ;;  %vm1906_vm14 = vcmask 519169   ;;  %vm1908_vm15 = vcmask 1043968  }
 0x110   :  { %v10404_v54 = vadd.f32 %v898_v48, %v547_v42  ;;  %v10406_v7 = vadd.f32 %v951_v29, %v600_v43  ;;  %vm11324_vm11 = vmor %vm1902_vm10, %vm1901_vm9  ;;  %vm1909_vm0 = vcmask 1047556   ;;  %vm1913_vm2 = vcmask 519168  }
 0x111   :  { %v900_v55 = vpop.f32.mrf.mxu0  ;;  %v953_v8 = vpop.f32.mrf.mxu1  ;;  %vm11332_vm13 = vmor %vm1851_vm7, %vm1915_vm12 }
 0x112   :  { %v10414_v58 = vadd.f32 %v900_v55, %v549_v6  ;;  %v10416_v11 = vadd.f32 %v953_v8, %v602_v5  ;;  %v13588_v6 = vld [vmem:[#allocation14_spill] sm:$0xff]  ;;  %v1180_v31 = vmul.f32 %v10404_v54, %v10404_v54  ;;  %v1182_v32 = vmul.f32 %v10406_v7, %v10406_v7  ;;  %vm1910_vm7 = vmor %vm1909_vm0, %vm1908_vm15 }
 0x113   :  { %v902_v61 = vpop.f32.mrf.mxu0  ;;  %v955_v21 = vpop.f32.mrf.mxu1  ;;  %v10434_v5 = vadd.f32 %v719_v41, %v13588_v6 }
 0x114   :  { %v10436_v24 = vadd.f32 %v902_v61, %v551_v4  ;;  %v10438_v25 = vadd.f32 %v955_v21, %v604_v3  ;;  %v1181_v4 = vmul.f32 %v10414_v58, %v10414_v58  ;;  %v1183_v3 = vmul.f32 %v10416_v11, %v10416_v11 }
 0x115   :  { %v904_v33 = vpop.f32.mrf.mxu0  ;;  %v957_v34 = vpop.f32.mrf.mxu1 }
 0x116   :  { %13589 = vst [vmem:[#allocation8_spill] sm:$0xff] %v10438_v25  ;;  %v1188_v0 = vmul.f32 %v10436_v24, %v10436_v24  ;;  %v1190_v63 = vmul.f32 %v10438_v25, %v10438_v25  ;;  %v1108_v35 = vadd.f32 %v10436_v24, %v10404_v54  ;;  %v1126_v36 = vadd.f32 %v10438_v25, %v10406_v7 }
 0x117   :  { %v10462_v37 = vadd.f32 %v904_v33, %v553_v2  ;;  %v10464_v38 = vadd.f32 %v957_v34, %v606_v1  ;;  %v908_v39 = vpop.f32.mrf.mxu0  ;;  %v961_v40 = vpop.f32.mrf.mxu1 }
 0x118   :  { %v1212_v41 = vadd.f32 %v1188_v0, %v1180_v31  ;;  %v1230_v42 = vadd.f32 %v1190_v63, %v1182_v32  ;;  %v10466_v43 = vadd.f32 %v908_v39, %v557_v62  ;;  %v10468_v48 = vadd.f32 %v961_v40, %v610_v14 }
 0x119   :  { %v1117_v29 = vadd.f32 %v10462_v37, %v10414_v58  ;;  %v1189_v55 = vmul.f32 %v10462_v37, %v10462_v37  ;;  %v1135_v2 = vadd.f32 %v10464_v38, %v10416_v11  ;;  %v1191_v1 = vmul.f32 %v10464_v38, %v10464_v38  ;;  %v910_v8 = vpop.f32.mrf.mxu0  ;;  %v963_v57 = vpop.f32.mrf.mxu1 }
 0x11a   :  { %13592 = vst [vmem:[#allocation9_spill] sm:$0xff] %v10466_v43  ;;  %13593 = vst [vmem:[#allocation10_spill] sm:$0xff] %v10468_v48  ;;  %v1109_v59 = vadd.f32 %v1108_v35, %v10466_v43  ;;  %v1196_v62 = vmul.f32 %v10466_v43, %v10466_v43  ;;  %v1127_v14 = vadd.f32 %v1126_v36, %v10468_v48 }
 0x11b   :  { %v1198_v60 = vmul.f32 %v10468_v48, %v10468_v48  ;;  %v1221_v16 = vadd.f32 %v1189_v55, %v1181_v4  ;;  %v1239_v18 = vadd.f32 %v1191_v1, %v1183_v3  ;;  %v10485_v61 = vadd.f32 %v910_v8, %v10369_v10  ;;  %v912_v22 = vpop.f32.mrf.mxu0  ;;  %v965_v6 = vpop.f32.mrf.mxu1 }
 0x11c   :  { %v10488_v21 = vadd.f32 %v963_v57, %v10372_v44  ;;  %v1213_v26 = vadd.f32 %v1212_v41, %v1196_v62  ;;  %v10491_v31 = vadd.f32 %v912_v22, %v10375_v45  ;;  %v10494_v32 = vadd.f32 %v965_v6, %v10378_v46 }
 0x11d   :  { %v1231_v28 = vadd.f32 %v1230_v42, %v1198_v60  ;;  %v1118_v33 = vadd.f32 %v1117_v29, %v10485_v61  ;;  %v1197_v34 = vmul.f32 %v10485_v61, %v10485_v61  ;;  %v914_v4 = vpop.f32.mrf.mxu0  ;;  %v967_v3 = vpop.f32.mrf.mxu1 }
 0x11e   :  { %13594 = vst [vmem:[#allocation11_spill] sm:$0xff] %v10491_v31  ;;  %13595 = vst [vmem:[#allocation12_spill] sm:$0xff] %v10494_v32  ;;  %v1136_v10 = vadd.f32 %v1135_v2, %v10488_v21  ;;  %v1199_v44 = vmul.f32 %v10488_v21, %v10488_v21  ;;  %v1110_v0 = vadd.f32 %v1109_v59, %v10491_v31 }
 0x11f   :  { %v1204_v45 = vmul.f32 %v10491_v31, %v10491_v31  ;;  %v1128_v46 = vadd.f32 %v1127_v14, %v10494_v32  ;;  %v1206_v63 = vmul.f32 %v10494_v32, %v10494_v32  ;;  %v1222_v35 = vadd.f32 %v1221_v16, %v1197_v34  ;;  %v1004_v41 = vpop.f32.mrf.mxu0  ;;  %v1057_v42 = vpop.f32.mrf.mxu1 }
 0x120   :  { %v1240_v36 = vadd.f32 %v1239_v18, %v1199_v44  ;;  %v10509_v39 = vadd.f32 %v914_v4, %v10381_v47  ;;  %v10512_v40 = vadd.f32 %v967_v3, %v10384_v19  ;;  %v1111_v29 = vrot.slane %v1110_v0, 4 }
 0x121   :  { %v1214_v55 = vadd.f32 %v1213_v26, %v1204_v45  ;;  %v1129_v2 = vrot.slane %v1128_v46, 4  ;;  %v1232_v1 = vadd.f32 %v1231_v28, %v1206_v63  ;;  %v1006_v62 = vpop.f32.mrf.mxu0  ;;  %v1059_v14 = vpop.f32.mrf.mxu1 }
 0x122   :  { %v1119_v8 = vadd.f32 %v1118_v33, %v10509_v39  ;;  %v1205_v57 = vmul.f32 %v10509_v39, %v10509_v39  ;;  %v1137_v59 = vadd.f32 %v1136_v10, %v10512_v40  ;;  %v1207_v47 = vmul.f32 %v10512_v40, %v10512_v40 }
 0x123   :  { %v1112_v19 = vadd.f32 %v1111_v29, %v1110_v0  ;;  %v1215_v60 = vrot.slane %v1214_v55, 4  ;;  %v1130_v16 = vadd.f32 %v1129_v2, %v1128_v46  ;;  %v1233_v18 = vrot.slane %v1232_v1, 4  ;;  %v1008_v34 = vpop.f32.mrf.mxu0  ;;  %v1061_v33 = vpop.f32.mrf.mxu1 }
 0x124   :  { %v1120_v22 = vrot.slane %v1119_v8, 4  ;;  %v1223_v6 = vadd.f32 %v1222_v35, %v1205_v57  ;;  %v1138_v26 = vrot.slane %v1137_v59, 4  ;;  %v1241_v28 = vadd.f32 %v1240_v36, %v1207_v47 }
 0x125   :  { %v1113_v44 = vrot.slane %v1112_v19, 2  ;;  %v1216_v4 = vadd.f32 %v1215_v60, %v1214_v55  ;;  %v1131_v3 = vrot.slane %v1130_v16, 2  ;;  %v1234_v45 = vadd.f32 %v1233_v18, %v1232_v1  ;;  %v1010_v48 = vpop.f32.mrf.mxu0  ;;  %v1063_v25 = vpop.f32.mrf.mxu1 }
 0x126   :  { %v1121_v10 = vadd.f32 %v1120_v22, %v1119_v8  ;;  %v1224_v63 = vrot.slane %v1223_v6, 4  ;;  %v1139_v32 = vadd.f32 %v1138_v26, %v1137_v59  ;;  %v1242_v31 = vrot.slane %v1241_v28, 4 }
 0x127   :  { %v10520_v0 = vadd.f32 %v1113_v44, %v1112_v19  ;;  %v1217_v46 = vrot.slane %v1216_v4, 2  ;;  %v10522_v29 = vadd.f32 %v1131_v3, %v1130_v16  ;;  %v1235_v35 = vrot.slane %v1234_v45, 2  ;;  %v1014_v43 = vpop.f32.mrf.mxu0  ;;  %v1067_v55 = vpop.f32.mrf.mxu1 }
 0x128   :  { %v1122_v2 = vrot.slane %v1121_v10, 2  ;;  %v1225_v36 = vadd.f32 %v1224_v63, %v1223_v6  ;;  %v1140_v57 = vrot.slane %v1139_v32, 2  ;;  %v1243_v47 = vadd.f32 %v1242_v31, %v1241_v28 }
 0x129   :  { %v10524_v60 = vadd.f32 %v1217_v46, %v1216_v4  ;;  %v10526_v1 = vadd.f32 %v1235_v35, %v1234_v45  ;;  %v10529_v8 = vadd.f32 %v1004_v41, %v10387_v13  ;;  %v10532_v59 = vadd.f32 %v1057_v42, %v10390_v49  ;;  %v1016_v6 = vpop.f32.mrf.mxu0  ;;  %v1069_v31 = vpop.f32.mrf.mxu1 }
 0x12a   :  { %v10534_v19 = vadd.f32 %v1122_v2, %v1121_v10  ;;  %v1226_v16 = vrot.slane %v1225_v36, 2  ;;  %v10536_v18 = vadd.f32 %v1140_v57, %v1139_v32  ;;  %v1244_v22 = vrot.slane %v1243_v47, 2 }
 0x12b   :  { %v1184_v26 = vmul.f32 %v10529_v8, %v10529_v8  ;;  %v1186_v28 = vmul.f32 %v10532_v59, %v10532_v59  ;;  %v10543_v13 = vadd.f32 %v1006_v62, %v10393_v50  ;;  %v10546_v49 = vadd.f32 %v1059_v14, %v10396_v51  ;;  %v1071_v3 = vpop.f32.mrf.mxu1 }
 0x12c   :  { %v10548_v41 = vadd.f32 %v1226_v16, %v1225_v36  ;;  %v10550_v42 = vadd.f32 %v1244_v22, %v1243_v47  ;;  %v10553_v32 = vadd.f32 %v1008_v34, %v10399_v52  ;;  %v10556_v44 = vadd.f32 %v1061_v33, %v10402_v53  ;;  %v1018_v33 = vpop.f32.mrf.mxu0 }
 0x12d   :  { %v1185_v4 = vmul.f32 %v10543_v13, %v10543_v13  ;;  %v1187_v50 = vmul.f32 %v10546_v49, %v10546_v49  ;;  %v10563_v62 = vadd.f32 %v1010_v48, %v10409_v56  ;;  %v10566_v51 = vadd.f32 %v1063_v25, %v10412_v9 }
 0x12e   :  { %13596 = vst [vmem:[#allocation13_spill] sm:$0xff] %v10556_v44  ;;  %v1144_v14 = vadd.f32 %v10553_v32, %v10529_v8  ;;  %v1192_v52 = vmul.f32 %v10553_v32, %v10553_v32  ;;  %v1162_v53 = vadd.f32 %v10556_v44, %v10532_v59  ;;  %v1194_v34 = vmul.f32 %v10556_v44, %v10556_v44 }
 0x12f   :  { %v1153_v56 = vadd.f32 %v10563_v62, %v10543_v13  ;;  %v1193_v9 = vmul.f32 %v10563_v62, %v10563_v62  ;;  %v1171_v25 = vadd.f32 %v10566_v51, %v10546_v49  ;;  %v1195_v48 = vmul.f32 %v10566_v51, %v10566_v51 }
 0x130   :  { %v1248_v45 = vadd.f32 %v1192_v52, %v1184_v26  ;;  %v1266_v10 = vadd.f32 %v1194_v34, %v1186_v28  ;;  %v10585_v63 = vadd.f32 %v1014_v43, %v10419_v12  ;;  %v10588_v46 = vadd.f32 %v1067_v55, %v10422_v15  ;;  %v1020_v15 = vpop.f32.mrf.mxu0  ;;  %v1073_v43 = vpop.f32.mrf.mxu1 }
 0x131   :  { %v1257_v35 = vadd.f32 %v1193_v9, %v1185_v4  ;;  %v1275_v2 = vadd.f32 %v1195_v48, %v1187_v50  ;;  %v10591_v36 = vadd.f32 %v1016_v6, %v10425_v17  ;;  %v10594_v57 = vadd.f32 %v1069_v31, %v10428_v20 }
 0x132   :  { %13597 = vst [vmem:[#allocation14_spill] sm:$0xff] %v10588_v46  ;;  %v1145_v47 = vadd.f32 %v1144_v14, %v10585_v63  ;;  %v1200_v16 = vmul.f32 %v10585_v63, %v10585_v63  ;;  %v1163_v22 = vadd.f32 %v1162_v53, %v10588_v46  ;;  %v1202_v12 = vmul.f32 %v10588_v46, %v10588_v46 }
 0x133   :  { %v1154_v55 = vadd.f32 %v1153_v56, %v10591_v36  ;;  %v1201_v17 = vmul.f32 %v10591_v36, %v10591_v36  ;;  %v1172_v20 = vadd.f32 %v1171_v25, %v10594_v57  ;;  %v1203_v6 = vmul.f32 %v10594_v57, %v10594_v57 }
 0x134   :  { %v1249_v31 = vadd.f32 %v1248_v45, %v1200_v16  ;;  %v1267_v26 = vadd.f32 %v1266_v10, %v1202_v12  ;;  %v10609_v28 = vadd.f32 %v1018_v33, %v10431_v23  ;;  %v10612_v4 = vadd.f32 %v1071_v3, %v10434_v5 }
 0x135   :  { %v1258_v50 = vadd.f32 %v1257_v35, %v1201_v17  ;;  %v1276_v14 = vadd.f32 %v1275_v2, %v1203_v6  ;;  %v10615_v52 = vadd.f32 %v1020_v15, %v10441_v27  ;;  %v10618_v53 = vadd.f32 %v1073_v43, %v10444_v30 }
 0x136   :  { %13598 = vst [vmem:[#allocation15_spill] sm:$0xff] %v10609_v28  ;;  %13599 = vst [vmem:[#allocation16_spill] sm:$0xff] %v10612_v4  ;;  %v1146_v34 = vadd.f32 %v1145_v47, %v10609_v28  ;;  %v1208_v56 = vmul.f32 %v10609_v28, %v10609_v28  ;;  %v1164_v9 = vadd.f32 %v1163_v22, %v10612_v4 }
 0x137   :  { %v1210_v23 = vmul.f32 %v10612_v4, %v10612_v4  ;;  %v1155_v5 = vadd.f32 %v1154_v55, %v10615_v52  ;;  %v1209_v33 = vmul.f32 %v10615_v52, %v10615_v52  ;;  %v1173_v27 = vadd.f32 %v1172_v20, %v10618_v53 }
 0x138   :  { %v1211_v30 = vmul.f32 %v10618_v53, %v10618_v53  ;;  %v1147_v3 = vrot.slane %v1146_v34, 4  ;;  %v1250_v25 = vadd.f32 %v1249_v31, %v1208_v56  ;;  %v1165_v48 = vrot.slane %v1164_v9, 4 }
 0x139   :  { %v1268_v45 = vadd.f32 %v1267_v26, %v1210_v23  ;;  %v1156_v10 = vrot.slane %v1155_v5, 4  ;;  %v1259_v35 = vadd.f32 %v1258_v50, %v1209_v33  ;;  %v1174_v2 = vrot.slane %v1173_v27, 4 }
 0x13a   :  { %v1277_v47 = vadd.f32 %v1276_v14, %v1211_v30  ;;  %v1148_v16 = vadd.f32 %v1147_v3, %v1146_v34  ;;  %v1251_v22 = vrot.slane %v1250_v25, 4  ;;  %v1166_v12 = vadd.f32 %v1165_v48, %v1164_v9 }
 0x13b   :  { %v1269_v15 = vrot.slane %v1268_v45, 4  ;;  %v1157_v43 = vadd.f32 %v1156_v10, %v1155_v5  ;;  %v1260_v55 = vrot.slane %v1259_v35, 4  ;;  %v1175_v17 = vadd.f32 %v1174_v2, %v1173_v27 }
 0x13c   :  { %v1278_v6 = vrot.slane %v1277_v47, 4  ;;  %v1149_v20 = vrot.slane %v1148_v16, 2  ;;  %v1252_v4 = vadd.f32 %v1251_v22, %v1250_v25  ;;  %v1167_v28 = vrot.slane %v1166_v12, 2 }
 0x13d   :  { %v1270_v46 = vadd.f32 %v1269_v15, %v1268_v45  ;;  %v1158_v44 = vrot.slane %v1157_v43, 2  ;;  %v1261_v31 = vadd.f32 %v1260_v55, %v1259_v35  ;;  %v1176_v56 = vrot.slane %v1175_v17, 2 }
 0x13e   :  { %v1279_v26 = vadd.f32 %v1278_v6, %v1277_v47  ;;  %v1150_v23 = vadd.f32 %v1149_v20, %v1148_v16  ;;  %v1253_v50 = vrot.slane %v1252_v4, 2  ;;  %v1168_v33 = vadd.f32 %v1167_v28, %v1166_v12 }
 0x13f   :  { %v1271_v14 = vrot.slane %v1270_v46, 2  ;;  %v1159_v34 = vadd.f32 %v1158_v44, %v1157_v43  ;;  %v1262_v30 = vrot.slane %v1261_v31, 2  ;;  %v1177_v9 = vadd.f32 %v1176_v56, %v1175_v17 }
 0x140   :  { %v1280_v3 = vrot.slane %v1279_v26, 2  ;;  %v1254_v5 = vadd.f32 %v1253_v50, %v1252_v4  ;;  %v1115_v27 = vrot.slane %v10520_v0, 1  ;;  %v1124_v25 = vrot.slane %v10534_v19, 1 }
 0x141   :  { %v1272_v48 = vadd.f32 %v1271_v14, %v1270_v46  ;;  %v1263_v10 = vadd.f32 %v1262_v30, %v1261_v31  ;;  %v1133_v35 = vrot.slane %v10522_v29, 1  ;;  %v1142_v2 = vrot.slane %v10536_v18, 1 }
 0x142   :  { %v1281_v45 = vadd.f32 %v1280_v3, %v1279_v26  ;;  %v1116_v47 = vadd.f32 %v1115_v27, %v10520_v0  ;;  %v1125_v28 = vadd.f32 %v1124_v25, %v10534_v19  ;;  %v1151_v44 = vrot.slane %v1150_v23, 1 }
 0x143   :  { %v1160_v16 = vrot.slane %v1159_v34, 1  ;;  %v1134_v22 = vadd.f32 %v1133_v35, %v10522_v29  ;;  %v1143_v46 = vadd.f32 %v1142_v2, %v10536_v18  ;;  %v1169_v4 = vrot.slane %v1168_v33, 1 }
 0x144   :  { %v1178_v12 = vrot.slane %v1177_v9, 1  ;;  %v1152_v15 = vadd.f32 %v1151_v44, %v1150_v23  ;;  %v1219_v55 = vrot.slane %v10524_v60, 1  ;;  %v1228_v17 = vrot.slane %v10548_v41, 1 }
 0x145   :  { %v1161_v43 = vadd.f32 %v1160_v16, %v1159_v34  ;;  %v1170_v6 = vadd.f32 %v1169_v4, %v1168_v33  ;;  %v1237_v0 = vrot.slane %v10526_v1, 1  ;;  %v1246_v19 = vrot.slane %v10550_v42, 1 }
 0x146   :  { %v1179_v20 = vadd.f32 %v1178_v12, %v1177_v9  ;;  %v1284_v31 = vadd.f32 %v1152_v15, %v1116_v47  ;;  %v1220_v18 = vadd.f32 %v1219_v55, %v10524_v60  ;;  %v1229_v50 = vadd.f32 %v1228_v17, %v10548_v41  ;;  %v1313_v17 = vld [vmem:[%s13540_s5] sm:$0x1] }
 0x147   :  { %v1285_v56 = vadd.f32 %v1161_v43, %v1125_v28  ;;  %v1286_v26 = vadd.f32 %v1170_v6, %v1134_v22  ;;  %v1255_v23 = vrot.slane %v1254_v5, 1  ;;  %v1264_v14 = vrot.slane %v1263_v10, 1 }
 0x148   :  { %v1287_v29 = vadd.f32 %v1179_v20, %v1143_v46  ;;  %v1273_v34 = vrot.slane %v1272_v48, 1  ;;  %v1282_v30 = vrot.slane %v1281_v45, 1  ;;  %v1238_v33 = vadd.f32 %v1237_v0, %v10526_v1  ;;  %v1317_v0 = vld [vmem:[%s13541_s6] sm:$0x1] }
 0x149   :  { %v1288_v3 = vadd.f32 %v1286_v26, %v1284_v31  ;;  %v1247_v9 = vadd.f32 %v1246_v19, %v10550_v42  ;;  %v1256_v25 = vadd.f32 %v1255_v23, %v1254_v5  ;;  %v1265_v35 = vadd.f32 %v1264_v14, %v1263_v10 }
 0x14a   :  { %v1289_v27 = vadd.f32 %v1287_v29, %v1285_v56  ;;  %v1274_v2 = vadd.f32 %v1273_v34, %v1272_v48  ;;  %v1283_v47 = vadd.f32 %v1282_v30, %v1281_v45  ;;  %v1331_v56 = vlaneseq }
 0x14b   :  { %v1296_v44 = vadd.f32 %v1256_v25, %v1220_v18  ;;  %v1297_v16 = vadd.f32 %v1265_v35, %v1229_v50 }
 0x14c   :  { %v1290_v28 = vadd.f32 %v1289_v27, %v1288_v3  ;;  %v1298_v60 = vadd.f32 %v1274_v2, %v1238_v33  ;;  %v1299_v22 = vadd.f32 %v1283_v47, %v1247_v9  ;;  %v1332_v26 = vshrl.u32 %v1331_v56, 7 }
 0x14e   :  { %1292 = vrot.lane.b32.xlu0 %v1290_v28, %s9995_s0  ;;  %v1300_v41 = vadd.f32 %v1298_v60, %v1296_v44  ;;  %v1301_v46 = vadd.f32 %v1299_v22, %v1297_v16  ;;  %v10658_v18 = vsub.s32 0, %v1332_v26 }
 0x150   :  { %v1302_v4 = vadd.f32 %v1301_v46, %v1300_v41  ;;  %13600 = vst [vmem:[#allocation17_spill] sm:$0xff] %v10658_v18 }
 0x152   :  { %1304 = vrot.lane.b32.xlu0 %v1302_v4, %s9995_s0 }
 0x1c0   :  { %v1293_v1 = vpop.permute.xlu0 %1292 }
 0x1c1   :  { %v1295_v12 = vadd.f32 %v1293_v1, %v1290_v28 }
 0x1c3   :  { %v1308_v42 = vmul.f32 0.001953125, %v1295_v12 }
 0x1c4   :  { %v1305_v5 = vpop.permute.xlu0 %1304 }
 0x1c5   :  { %v1307_v10 = vadd.f32 %v1305_v5, %v1302_v4  ;;  %v1310_v48 = vmul.f32 %v1308_v42, %v1308_v42 }
 0x1c7   :  { %v1309_v45 = vmul.f32 0.001953125, %v1307_v10 }
 0x1c9   :  { %v1311_v15 = vsub.f32 %v1309_v45, %v1310_v48 }
 0x1cb   :  { %v1312_v43 = vmax.f32 %v1311_v15, 0.0 }
 0x1cd   :  { %v1314_v55 = vadd.f32 1e-05, %v1312_v43 }
 0x1cf   :  { %9958 = vrsqrt.f32 %v1314_v55 }
 0x1dc   :  { %v9959_v6 = vpop.eup %9958 }
 0x1dd   :  { %v1316_v20 = vmul.f32 %v9959_v6, %v1313_v17 }
 0x1df   :  { %1321 = vrot.lane.b32.xlu1 %v1316_v20, %s9995_s0  ;;  %v1318_v19 = vmul.f32 %v1316_v20, %v1308_v42 }
 0x1e1   :  { %v1319_v31 = vsub.f32 %v1317_v0, %v1318_v19 }
 0x1e3   :  { %1327 = vrot.lane.b32.xlu1 %v1319_v31, %s9995_s0 }
 0x251   :  { %v1322_v29 = vpop.permute.xlu1 %1321 }
 0x252   :  { %v1325_v50 = vsel %vm1324_vm4, %v1316_v20, %v1322_v29 }
 0x253   :  { %v10662_v23 = vrot.slane %v1325_v50, %v10658_v18 }
 0x255   :  { %v1328_v14 = vpop.permute.xlu1 %1327  ;;  %v1336_v34 = vmul.f32 %v10662_v23, %v10414_v58  ;;  %v1338_v30 = vmul.f32 %v10662_v23, %v10416_v11  ;;  %v1340_v3 = vmul.f32 %v10662_v23, %v10543_v13  ;;  %v1342_v27 = vmul.f32 %v10662_v23, %v10546_v49 }
 0x256   :  { %v1344_v33 = vmul.f32 %v10662_v23, %v10462_v37  ;;  %v1346_v9 = vmul.f32 %v10662_v23, %v10464_v38  ;;  %v1330_v25 = vsel %vm1324_vm4, %v1319_v31, %v1328_v14  ;;  %v1348_v58 = vmul.f32 %v10662_v23, %v10563_v62 }
 0x257   :  { %v1352_v11 = vmul.f32 %v10662_v23, %v10485_v61  ;;  %v1354_v13 = vmul.f32 %v10662_v23, %v10488_v21  ;;  %v10684_v35 = vrot.slane %v1330_v25, %v10658_v18  ;;  %v1356_v37 = vmul.f32 %v10662_v23, %v10591_v36 }
 0x258   :  { %v1360_v38 = vmul.f32 %v10662_v23, %v10509_v39  ;;  %v1362_v49 = vmul.f32 %v10662_v23, %v10512_v40  ;;  %v1364_v62 = vmul.f32 %v10662_v23, %v10615_v52  ;;  %v1350_v10 = vmul.f32 %v10662_v23, %v10566_v51 }
 0x259   :  { %v10695_v61 = vadd.f32 %v10684_v35, %v1344_v33  ;;  %v10698_v21 = vadd.f32 %v10684_v35, %v1352_v11  ;;  %v10701_v2 = vadd.f32 %v10684_v35, %v1336_v34  ;;  %v10704_v36 = vadd.f32 %v10684_v35, %v1338_v30  ;;  %v13601_v34 = vld [vmem:[#allocation9_spill] sm:$0xff] }
 0x25a   :  { %v10707_v39 = vadd.f32 %v10684_v35, %v1340_v3  ;;  %v10710_v40 = vadd.f32 %v10684_v35, %v1342_v27  ;;  %v10713_v52 = vadd.f32 %v10684_v35, %v1346_v9  ;;  %v10716_v47 = vadd.f32 %v10684_v35, %v1354_v13  ;;  %v13603_v13 = vld [vmem:[#allocation10_spill] sm:$0xff] }
 0x25b   :  { %v1412_v28 = vmax.f32 %v10695_v61, 0.0  ;;  %v1420_v44 = vmax.f32 %v10698_v21, 0.0  ;;  %v1404_v16 = vmax.f32 %v10701_v2, 0.0  ;;  %v1406_v60 = vmax.f32 %v10704_v36, 0.0 }
 0x25c   :  { %v1408_v22 = vmax.f32 %v10707_v39, 0.0  ;;  %v1410_v41 = vmax.f32 %v10710_v40, 0.0  ;;  %v1414_v46 = vmax.f32 %v10713_v52, 0.0  ;;  %v1422_v4 = vmax.f32 %v10716_v47, 0.0 }
 0x25d   :  { %v8763_v1 = vpack.i.bf16 %v1420_v44, %v1412_v28  ;;  %v8758_v12 = vpack.i.bf16 %v1406_v60, %v1404_v16  ;;  %v10735_v42 = vadd.f32 %v10684_v35, %v1348_v58  ;;  %v10738_v5 = vadd.f32 %v10684_v35, %v1356_v37  ;;  %v13602_v58 = vld [vmem:[#allocation8_spill] sm:$0xff] }
 0x25e   :  { %v1366_v48 = vmul.f32 %v10662_v23, %v10618_v53  ;;  %v10745_v45 = vadd.f32 %v10684_v35, %v1360_v38  ;;  %v10748_v15 = vadd.f32 %v10684_v35, %v1362_v49  ;;  %v1358_v43 = vmul.f32 %v10662_v23, %v10594_v57 }
 0x25f   :  { %8764 = vrot.lane.b32.xlu1 %v8763_v1, %s9995_s0  ;;  %8759 = vrot.lane.b32.xlu0 %v8758_v12, %s9995_s0  ;;  %v1416_v55 = vmax.f32 %v10735_v42, 0.0  ;;  %v1424_v51 = vmax.f32 %v10738_v5, 0.0  ;;  %v10757_v17 = vadd.f32 %v10684_v35, %v1364_v62  ;;  %v10765_v57 = vadd.f32 %v10684_v35, %v1350_v10 }
 0x260   :  { %v1428_v53 = vmax.f32 %v10745_v45, 0.0  ;;  %v1430_v6 = vmax.f32 %v10748_v15, 0.0  ;;  %v10762_v20 = vadd.f32 %v10684_v35, %v1366_v48  ;;  %v8773_v0 = vpack.i.bf16 %v1410_v41, %v1408_v22 }
 0x261   :  { %v8768_v19 = vpack.i.bf16 %v1422_v4, %v1414_v46  ;;  %v10776_v31 = vadd.f32 %v10684_v35, %v1358_v43  ;;  %v1335_v56 = vmul.f32 %v10662_v23, %v10404_v54  ;;  %v1337_v26 = vmul.f32 %v10662_v23, %v10406_v7 }
 0x262   :  { %v1339_v29 = vmul.f32 %v10662_v23, %v10529_v8  ;;  %v1343_v50 = vmul.f32 %v10662_v23, %v10436_v24  ;;  %v1341_v14 = vmul.f32 %v10662_v23, %v10532_v59  ;;  %v1351_v30 = vmul.f32 %v10662_v23, %v13601_v34 }
 0x263   :  { %8774 = vrot.lane.b32.xlu1 %v8773_v0, %s9995_s0  ;;  %8769 = vrot.lane.b32.xlu0 %v8768_v19, %s9995_s0  ;;  %v8783_v54 = vpack.i.bf16 %v1424_v51, %v1416_v55  ;;  %v13566_v7 = vmax.f32 %v10757_v17, 0.0  ;;  %v8778_v24 = vpack.i.bf16 %v1430_v6, %v1428_v53  ;;  %v1434_v8 = vmax.f32 %v10762_v20, 0.0  ;;  %v8940_v20 = vld [vmem:[%s13537_s2 + $0x5e4] ss:$16 sps:$4 sm:$0xff]  }
 0x264   :  { %v1418_v59 = vmax.f32 %v10765_v57, 0.0  ;;  %v10804_v3 = vadd.f32 %v10684_v35, %v1343_v50  ;;  %v1426_v27 = vmax.f32 %v10776_v31, 0.0  ;;  %v10808_v33 = vadd.f32 %v10684_v35, %v1351_v30  ;;  %v8938_v57 = vld [vmem:[%s13537_s2 + $0x5e0] ss:$16 sps:$4 sm:$0xff]   ;;  %3108 = vmatprep.subr.bf16.mxu0 %v8940_v20 }
 0x265   :  { %v10811_v9 = vadd.f32 %v10684_v35, %v1335_v56  ;;  %v10814_v25 = vadd.f32 %v10684_v35, %v1337_v26  ;;  %v1345_v11 = vmul.f32 %v10662_v23, %v13602_v58  ;;  %v1353_v37 = vmul.f32 %v10662_v23, %v13603_v13  ;;  %3109 = vmatpush1.bf16.msra.mxu0 %v8938_v57 }
 0x266   :  { %v10823_v38 = vadd.f32 %v10684_v35, %v1339_v29  ;;  %v10826_v49 = vadd.f32 %v10684_v35, %v1341_v14  ;;  %v8793_v62 = vpack.i.bf16 %v1434_v8, %v13566_v7  ;;  %v13558_v1 = vmax.f32 %v10804_v3, 0.0  ;;  %v13604_v29 = vld [vmem:[#allocation11_spill] sm:$0xff]  ;;  %v13605_v14 = vld [vmem:[#allocation12_spill] sm:$0xff] }
 0x267   :  { %8784 = vrot.lane.b32.xlu1 %v8783_v54, %s9995_s0  ;;  %8779 = vrot.lane.b32.xlu0 %v8778_v24, %s9995_s0  ;;  %v10834_v12 = vadd.f32 %v10684_v35, %v1345_v11  ;;  %v10837_v10 = vadd.f32 %v10684_v35, %v1353_v37  ;;  %v8788_v48 = vpack.i.bf16 %v1426_v27, %v1418_v59  ;;  %v13565_v43 = vmax.f32 %v10808_v33, 0.0 }
 0x268   :  { %v13552_v0 = vmax.f32 %v10811_v9, 0.0  ;;  %v13555_v19 = vmax.f32 %v10814_v25, 0.0  ;;  %v1347_v56 = vmul.f32 %v10662_v23, %v10553_v32  ;;  %v1355_v26 = vmul.f32 %v10662_v23, %v10585_v63 }
 0x269   :  { %v1359_v50 = vmul.f32 %v10662_v23, %v13604_v29  ;;  %v1361_v34 = vmul.f32 %v10662_v23, %v13605_v14  ;;  %v13553_v30 = vmax.f32 %v10823_v38, 0.0  ;;  %v13554_v54 = vmax.f32 %v10826_v49, 0.0 }
 0x26a   :  { %v13556_v24 = vmax.f32 %v10834_v12, 0.0  ;;  %v13557_v32 = vmax.f32 %v10837_v10, 0.0  ;;  %v10861_v63 = vadd.f32 %v10684_v35, %v1347_v56  ;;  %v10864_v58 = vadd.f32 %v10684_v35, %v1355_v26  ;;  %v13607_v26 = vld [vmem:[#allocation14_spill] sm:$0xff] }
 0x26b   :  { %8794 = vrot.lane.b32.xlu1 %v8793_v62, %s9995_s0  ;;  %8789 = vrot.lane.b32.xlu0 %v8788_v48, %s9995_s0  ;;  %v8803_v11 = vpack.i.bf16 %v13565_v43, %v13558_v1  ;;  %v8798_v13 = vpack.i.bf16 %v13555_v19, %v13552_v0  ;;  %v10875_v37 = vadd.f32 %v10684_v35, %v1359_v50  ;;  %v13606_v48 = vld [vmem:[#allocation13_spill] sm:$0xff]  ;;  %v13609_v19 = vld [vmem:[#allocation16_spill] sm:$0xff] }
 0x26c   :  { %v10878_v62 = vadd.f32 %v10684_v35, %v1361_v34  ;;  %v1349_v56 = vmul.f32 %v10662_v23, %v13606_v48  ;;  %v1357_v29 = vmul.f32 %v10662_v23, %v13607_v26  ;;  %v8813_v14 = vpack.i.bf16 %v13554_v54, %v13553_v30  ;;  %v13608_v30 = vld [vmem:[#allocation15_spill] sm:$0xff] }
 0x26d   :  { %v8808_v50 = vpack.i.bf16 %v13557_v32, %v13556_v24  ;;  %v13563_v34 = vmax.f32 %v10861_v63, 0.0  ;;  %v13564_v48 = vmax.f32 %v10864_v58, 0.0  ;;  %v13559_v26 = vmax.f32 %v10875_v37, 0.0 }
 0x26e   :  { %v10902_v0 = vadd.f32 %v10684_v35, %v1357_v29  ;;  %v1363_v54 = vmul.f32 %v10662_v23, %v13608_v30  ;;  %v1365_v24 = vmul.f32 %v10662_v23, %v13609_v19 }
 0x26f   :  { %8804 = vrot.lane.b32.xlu1 %v8803_v11, %s9995_s0  ;;  %8799 = vrot.lane.b32.xlu0 %v8798_v13, %s9995_s0  ;;  %v13560_v11 = vmax.f32 %v10878_v62, 0.0  ;;  %v10899_v13 = vadd.f32 %v10684_v35, %v1349_v56  ;;  %v8823_v56 = vpack.i.bf16 %v13564_v48, %v13563_v34 }
 0x270   :  { %v10911_v32 = vadd.f32 %v10684_v35, %v1363_v54  ;;  %v10914_v1 = vadd.f32 %v10684_v35, %v1365_v24  ;;  %v13562_v30 = vmax.f32 %v10902_v0, 0.0 }
 0x271   :  { %v8818_v23 = vpack.i.bf16 %v13560_v11, %v13559_v26  ;;  %v13561_v19 = vmax.f32 %v10899_v13, 0.0 }
 0x272   :  { %v13567_v54 = vmax.f32 %v10911_v32, 0.0  ;;  %v13568_v24 = vmax.f32 %v10914_v1, 0.0 }
 0x273   :  { %8814 = vrot.lane.b32.xlu1 %v8813_v14, %s9995_s0  ;;  %8809 = vrot.lane.b32.xlu0 %v8808_v50, %s9995_s0  ;;  %v8828_v35 = vpack.i.bf16 %v13562_v30, %v13561_v19 }
 0x274   :  { %v8833_v29 = vpack.i.bf16 %v13568_v24, %v13567_v54 }
 0x277   :  { %8824 = vrot.lane.b32.xlu1 %v8823_v56, %s9995_s0  ;;  %8819 = vrot.lane.b32.xlu0 %v8818_v23, %s9995_s0 }
 0x27b   :  { %8829 = vrot.lane.b32.xlu0 %v8828_v35, %s9995_s0 }
 0x27f   :  { %8834 = vrot.lane.b32.xlu0 %v8833_v29, %s9995_s0 }
 0x2d1   :  { %v8765_v14 = vpop.permute.xlu1 %8764  ;;  %v8760_v50 = vpop.permute.xlu0 %8759 }
 0x2d2   :  { %v8762_v56 = vunpack.i.h.bf16 %v8760_v50  ;;  %v8761_v23 = vunpack.i.l.bf16 %v8760_v50  ;;  %v8767_v26 = vunpack.i.h.bf16 %v8765_v14  ;;  %v8766_v11 = vunpack.i.l.bf16 %v8765_v14  ;;  %v8958_v14 = vld [vmem:[%s13537_s2 + $0x7a4] ss:$16 sps:$4 sm:$0xff]  }
 0x2d4   :  { %v1511_v19 = vmax.f32 %v1406_v60, %v8762_v56  ;;  %v1471_v30 = vmax.f32 %v1404_v16, %v8761_v23  ;;  %v1473_v29 = vmax.f32 %v1420_v44, %v8767_v26  ;;  %v1472_v50 = vmax.f32 %v1412_v28, %v8766_v11  ;;  %v8947_v56 = vld [vmem:[%s13537_s2 + $0x5a0] ss:$16 sps:$4 sm:$0xff]   ;;  %v8955_v23 = vld [vmem:[%s13537_s2 + $0x584] ss:$16 sps:$4 sm:$0xff]  }
 0x2d5   :  { %v8775_v35 = vpop.permute.xlu1 %8774  ;;  %v8770_v34 = vpop.permute.xlu0 %8769 }
 0x2d6   :  { %v8777_v48 = vunpack.i.h.bf16 %v8775_v35  ;;  %v8776_v43 = vunpack.i.l.bf16 %v8775_v35  ;;  %v8772_v7 = vunpack.i.h.bf16 %v8770_v34  ;;  %v8771_v54 = vunpack.i.l.bf16 %v8770_v34  ;;  %v8956_v35 = vld [vmem:[%s13537_s2 + $0x7a0] ss:$16 sps:$4 sm:$0xff]  }
 0x2d7   :  { %v8838_v24 = vpack.i.bf16 %v1511_v19, %v1471_v30  ;;  %v8843_v11 = vpack.i.bf16 %v1473_v29, %v1472_v50  ;;  %v8952_v30 = vld [vmem:[%s13537_s2 + $0x7c4] ss:$16 sps:$4 sm:$0xff]   ;;  %v8953_v50 = vld [vmem:[%s13537_s2 + $0x580] ss:$16 sps:$4 sm:$0xff]  }
 0x2d8   :  { %v1513_v36 = vmax.f32 %v1422_v4, %v8772_v7  ;;  %v1512_v2 = vmax.f32 %v1414_v46, %v8771_v54  ;;  %v1591_v16 = vmax.f32 %v1410_v41, %v8777_v48  ;;  %v1551_v21 = vmax.f32 %v1408_v22, %v8776_v43  ;;  %v8949_v54 = vld [vmem:[%s13537_s2 + $0x5a4] ss:$16 sps:$4 sm:$0xff]  }
 0x2d9   :  { %8839 = vrot.lane.b32.xlu1 %v8838_v24, %s9995_s0  ;;  %v8785_v60 = vpop.permute.xlu1 %8784  ;;  %v8780_v34 = vpop.permute.xlu0 %8779  ;;  %v8950_v24 = vld [vmem:[%s13537_s2 + $0x7c0] ss:$16 sps:$4 sm:$0xff]   ;;  %v8964_v29 = vld [vmem:[%s13537_s2 + $0x784] ss:$16 sps:$4 sm:$0xff]  }
 0x2da   :  { %v8787_v44 = vunpack.i.h.bf16 %v8785_v60  ;;  %v8782_v61 = vunpack.i.h.bf16 %v8780_v34  ;;  %v8781_v28 = vunpack.i.l.bf16 %v8780_v34  ;;  %v8786_v26 = vunpack.i.l.bf16 %v8785_v60  ;;  %v8959_v60 = vld [vmem:[%s13537_s2 + $0x560] ss:$16 sps:$4 sm:$0xff]   ;;  %v8967_v34 = vld [vmem:[%s13537_s2 + $0x544] ss:$16 sps:$4 sm:$0xff]  }
 0x2db   :  { %v8848_v47 = vpack.i.bf16 %v1513_v36, %v1512_v2  ;;  %v8853_v7 = vpack.i.bf16 %v1591_v16, %v1551_v21  ;;  %v8961_v36 = vld [vmem:[%s13537_s2 + $0x564] ss:$16 sps:$4 sm:$0xff]   ;;  %v8962_v2 = vld [vmem:[%s13537_s2 + $0x780] ss:$16 sps:$4 sm:$0xff]  }
 0x2dc   :  { %v1514_v52 = vmax.f32 %v1430_v6, %v8782_v61  ;;  %v1474_v40 = vmax.f32 %v1428_v53, %v8781_v28  ;;  %v1553_v39 = vmax.f32 %v1424_v51, %v8787_v44  ;;  %v1552_v43 = vmax.f32 %v1416_v55, %v8786_v26  ;;  %v8970_v16 = vld [vmem:[%s13537_s2 + $0x764] ss:$16 sps:$4 sm:$0xff]   ;;  %v8968_v21 = vld [vmem:[%s13537_s2 + $0x760] ss:$16 sps:$4 sm:$0xff]  }
 0x2dd   :  { %8844 = vrot.lane.b32.xlu1 %v8843_v11, %s9995_s0  ;;  %8849 = vrot.lane.b32.xlu0 %v8848_v47, %s9995_s0  ;;  %v8795_v41 = vpop.permute.xlu1 %8794  ;;  %v8790_v46 = vpop.permute.xlu0 %8789  ;;  %v13610_v51 = vmax.f32 %v10757_v17, 0.0  ;;  %v8943_v17 = vld [vmem:[%s13537_s2 + $0x5c4] ss:$16 sps:$4 sm:$0xff]   ;;  %v8965_v61 = vld [vmem:[%s13537_s2 + $0x540] ss:$16 sps:$4 sm:$0xff]  }
 0x2de   :  { %v8792_v22 = vunpack.i.h.bf16 %v8790_v46  ;;  %v8791_v4 = vunpack.i.l.bf16 %v8790_v46  ;;  %v8797_v15 = vunpack.i.h.bf16 %v8795_v41  ;;  %v8796_v6 = vunpack.i.l.bf16 %v8795_v41  ;;  %3110 = vmatprep.subr.bf16.mxu0 %v8943_v17  ;;  %v8976_v44 = vld [vmem:[%s13537_s2 + $0x744] ss:$16 sps:$4 sm:$0xff]   ;;  %v8974_v26 = vld [vmem:[%s13537_s2 + $0x740] ss:$16 sps:$4 sm:$0xff]  }
 0x2df   :  { %v8858_v48 = vpack.i.bf16 %v1514_v52, %v1474_v40  ;;  %v8863_v55 = vpack.i.bf16 %v1553_v39, %v1552_v43  ;;  %v8973_v28 = vld [vmem:[%s13537_s2 + $0x524] ss:$16 sps:$4 sm:$0xff]   ;;  %v8971_v47 = vld [vmem:[%s13537_s2 + $0x520] ss:$16 sps:$4 sm:$0xff]   ;;  %v13611_v17 = vmax.f32 %v10808_v33, 0.0  ;;  %v13616_v33 = vmax.f32 %v10823_v38, 0.0 }
 0x2e0   :  { %v1593_v45 = vmax.f32 %v1426_v27, %v8792_v22  ;;  %v1592_v53 = vmax.f32 %v1418_v59, %v8791_v4  ;;  %v1594_v5 = vmax.f32 %v1434_v8, %v8797_v15  ;;  %v1554_v42 = vmax.f32 %v13610_v51, %v8796_v6  ;;  %v8944_v8 = vld [vmem:[%s13537_s2 + $0x7e0] ss:$16 sps:$4 sm:$0xff]   ;;  %v8946_v59 = vld [vmem:[%s13537_s2 + $0x7e4] ss:$16 sps:$4 sm:$0xff]  }
 0x2e1   :  { %8854 = vrot.lane.b32.xlu1 %v8853_v7, %s9995_s0  ;;  %8859 = vrot.lane.b32.xlu0 %v8858_v48, %s9995_s0  ;;  %v8941_v27 = vld [vmem:[%s13537_s2 + $0x5c0] ss:$16 sps:$4 sm:$0xff]   ;;  %v8982_v11 = vld [vmem:[%s13537_s2 + $0x724] ss:$16 sps:$4 sm:$0xff]   ;;  %v8800_v7 = vpop.permute.xlu0 %8799  ;;  %v8805_v15 = vpop.permute.xlu1 %8804 }
 0x2e2   :  { %v8868_v19 = vpack.i.bf16 %v1593_v45, %v1592_v53  ;;  %v8873_v31 = vpack.i.bf16 %v1594_v5, %v1554_v42  ;;  %3151 = vmatprep.subr.bf16.mxu1 %v8946_v59  ;;  %3111 = vmatpush1.bf16.msra.mxu0 %v8941_v27  ;;  %v8979_v52 = vld [vmem:[%s13537_s2 + $0x504] ss:$16 sps:$4 sm:$0xff]   ;;  %v8980_v40 = vld [vmem:[%s13537_s2 + $0x720] ss:$16 sps:$4 sm:$0xff]   ;;  %v8807_v53 = vunpack.i.h.bf16 %v8805_v15  ;;  %v8806_v5 = vunpack.i.l.bf16 %v8805_v15 }
 0x2e3   :  { %3152 = vmatpush1.bf16.msra.mxu1 %v8944_v8  ;;  %3112 = vmatprep.subr.bf16.mxu0 %v8949_v54  ;;  %v8988_v41 = vld [vmem:[%s13537_s2 + $0x704] ss:$16 sps:$4 sm:$0xff]   ;;  %v8977_v46 = vld [vmem:[%s13537_s2 + $0x500] ss:$16 sps:$4 sm:$0xff]   ;;  %v8802_v51 = vunpack.i.h.bf16 %v8800_v7  ;;  %v8801_v42 = vunpack.i.l.bf16 %v8800_v7  ;;  %v13612_v59 = vmax.f32 %v10804_v3, 0.0 }
 0x2e4   :  { %3153 = vmatprep.subr.bf16.mxu1 %v8952_v30  ;;  %v8985_v39 = vld [vmem:[%s13537_s2 + $0x6e4] ss:$16 sps:$4 sm:$0xff]   ;;  %v8986_v22 = vld [vmem:[%s13537_s2 + $0x700] ss:$16 sps:$4 sm:$0xff]   ;;  %v1453_v8 = vmax.f32 %v13611_v17, %v8807_v53  ;;  %v13625_v53 = vmax.f32 %v10914_v1, 0.0 }
 0x2e5   :  { %8864 = vrot.lane.b32.xlu1 %v8863_v55, %s9995_s0  ;;  %8869 = vrot.lane.b32.xlu0 %v8868_v19, %s9995_s0  ;;  %v8983_v4 = vld [vmem:[%s13537_s2 + $0x6e0] ss:$16 sps:$4 sm:$0xff]   ;;  %v8810_v43 = vpop.permute.xlu0 %8809  ;;  %v8815_v48 = vpop.permute.xlu1 %8814  ;;  %v1452_v27 = vmax.f32 %v13612_v59, %v8806_v5 }
 0x2e6   :  { %3113 = vmatpush1.bf16.msra.mxu0 %v8947_v56  ;;  %v8817_v19 = vunpack.i.h.bf16 %v8815_v48  ;;  %v8812_v57 = vunpack.i.h.bf16 %v8810_v43  ;;  %v8811_v20 = vunpack.i.l.bf16 %v8810_v43  ;;  %v13614_v56 = vmax.f32 %v10811_v9, 0.0 }
 0x2e7   :  { %3154 = vmatpush1.bf16.msra.mxu1 %v8950_v24  ;;  %3114 = vmatprep.subr.bf16.mxu0 %v8955_v23  ;;  %v13613_v24 = vmax.f32 %v10814_v25, 0.0  ;;  %v13618_v25 = vmax.f32 %v10834_v12, 0.0 }
 0x2e8   :  { %3155 = vmatprep.subr.bf16.mxu1 %v8958_v14  ;;  %v1451_v23 = vmax.f32 %v13614_v56, %v8801_v42 }
 0x2e9   :  { %8874 = vrot.lane.b32.xlu1 %v8873_v31, %s9995_s0  ;;  %v8820_v6 = vpop.permute.xlu0 %8819  ;;  %v8825_v55 = vpop.permute.xlu1 %8824  ;;  %v8816_v31 = vunpack.i.l.bf16 %v8815_v48  ;;  %v1491_v14 = vmax.f32 %v13613_v24, %v8802_v51 }
 0x2ea   :  { %3115 = vmatpush1.bf16.msra.mxu0 %v8953_v50  ;;  %v8827_v30 = vunpack.i.h.bf16 %v8825_v55  ;;  %v8826_v54 = vunpack.i.l.bf16 %v8825_v55 }
 0x2eb   :  { %3156 = vmatpush1.bf16.msra.mxu1 %v8956_v35  ;;  %3116 = vmatprep.subr.bf16.mxu0 %v8961_v36  ;;  %v8822_v35 = vunpack.i.h.bf16 %v8820_v6  ;;  %v13615_v36 = vmax.f32 %v10826_v49, 0.0  ;;  %v13620_v49 = vmax.f32 %v10861_v63, 0.0  ;;  %v13624_v63 = vmax.f32 %v10899_v13, 0.0 }
 0x2ec   :  { %3157 = vmatprep.subr.bf16.mxu1 %v8964_v29  ;;  %v8821_v29 = vunpack.i.l.bf16 %v8820_v6 }
 0x2ed   :  { %v8830_v45 = vpop.permute.xlu0 %8829 }
 0x2ee   :  { %3117 = vmatpush1.bf16.msra.mxu0 %v8959_v60  ;;  %v8832_v60 = vunpack.i.h.bf16 %v8830_v45  ;;  %v8831_v3 = vunpack.i.l.bf16 %v8830_v45 }
 0x2ef   :  { %3158 = vmatpush1.bf16.msra.mxu1 %v8962_v2  ;;  %3118 = vmatprep.subr.bf16.mxu0 %v8967_v34  ;;  %v1571_v2 = vmax.f32 %v13615_v36, %v8817_v19 }
 0x2f0   :  { %3159 = vmatprep.subr.bf16.mxu1 %v8970_v16  ;;  %v1531_v16 = vmax.f32 %v13616_v33, %v8816_v31 }
 0x2f1   :  { %v8835_v50 = vpop.permute.xlu0 %8834 }
 0x2f2   :  { %3119 = vmatpush1.bf16.msra.mxu0 %v8965_v61  ;;  %v1492_v61 = vmax.f32 %v13618_v25, %v8811_v20  ;;  %v8837_v38 = vunpack.i.h.bf16 %v8835_v50 }
 0x2f3   :  { %3160 = vmatpush1.bf16.msra.mxu1 %v8968_v21  ;;  %3120 = vmatprep.subr.bf16.mxu0 %v8973_v28  ;;  %v13617_v21 = vmax.f32 %v10837_v10, 0.0  ;;  %v13622_v10 = vmax.f32 %v10875_v37, 0.0 }
 0x2f4   :  { %3161 = vmatprep.subr.bf16.mxu1 %v8976_v44  ;;  %v11122_v5 = vmax.f32 %v13625_v53, %v8837_v38 }
 0x2f5   :  { %v1493_v44 = vmax.f32 %v13617_v21, %v8812_v57 }
 0x2f6   :  { %3121 = vmatpush1.bf16.msra.mxu0 %v8971_v47  ;;  %v11104_v47 = vmax.f32 %v13620_v49, %v8826_v54 }
 0x2f7   :  { %3162 = vmatpush1.bf16.msra.mxu1 %v8974_v26  ;;  %3122 = vmatprep.subr.bf16.mxu0 %v8979_v52  ;;  %v13619_v26 = vmax.f32 %v10864_v58, 0.0  ;;  %v8836_v52 = vunpack.i.l.bf16 %v8835_v50  ;;  %v13623_v58 = vmax.f32 %v10902_v0, 0.0  ;;  %v13626_v0 = vmax.f32 %v10911_v32, 0.0 }
 0x2f8   :  { %3163 = vmatprep.subr.bf16.mxu1 %v8982_v11 }
 0x2f9   :  { %v11100_v11 = vmax.f32 %v13619_v26, %v8827_v30  ;;  %v11126_v51 = vmax.f32 %v13626_v0, %v8836_v52 }
 0x2fa   :  { %3123 = vmatpush1.bf16.msra.mxu0 %v8977_v46  ;;  %v1454_v46 = vmax.f32 %v13622_v10, %v8821_v29 }
 0x2fb   :  { %3164 = vmatpush1.bf16.msra.mxu1 %v8980_v40  ;;  %3124 = vmatprep.subr.bf16.mxu0 %v8985_v39  ;;  %v13621_v40 = vmax.f32 %v10878_v62, 0.0 }
 0x2fc   :  { %3165 = vmatprep.subr.bf16.mxu1 %v8988_v41 }
 0x2fd   :  { %v1494_v41 = vmax.f32 %v13621_v40, %v8822_v35 }
 0x2fe   :  { %3125 = vmatpush2.bf16.msra.mxu0 %v8983_v4  ;;  %v11118_v4 = vmax.f32 %v13624_v63, %v8831_v3 }
 0x2ff   :  { %3166 = vmatpush1.bf16.msra.mxu1 %v8986_v22  ;;  %v11114_v22 = vmax.f32 %v13623_v58, %v8832_v60 }
 0x34b   :  { %v8840_v34 = vpop.permute.xlu1 %8839 }
 0x34c   :  { %v8842_v9 = vunpack.i.h.bf16 %v8840_v34  ;;  %v8841_v28 = vunpack.i.l.bf16 %v8840_v34 }
 0x34e   :  { %v1659_v12 = vsel %vm1324_vm4, %v1451_v23, %v8841_v28  ;;  %v1663_v39 = vsel %vm1324_vm4, %v1491_v14, %v8842_v9 }
 0x34f   :  { %v1679_v7 = vrot.slane %v1659_v12, 2  ;;  %v1680_v43 = vrot.slane %v1663_v39, 2  ;;  %v8845_v15 = vpop.permute.xlu1 %8844  ;;  %v8850_v62 = vpop.permute.xlu0 %8849 }
 0x350   :  { %v8847_v6 = vunpack.i.h.bf16 %v8845_v15  ;;  %v8846_v37 = vunpack.i.l.bf16 %v8845_v15  ;;  %v8852_v48 = vunpack.i.h.bf16 %v8850_v62  ;;  %v8851_v45 = vunpack.i.l.bf16 %v8850_v62 }
 0x351   :  { %v11128_v13 = vmax.f32 %v1659_v12, %v1679_v7  ;;  %v11130_v42 = vmax.f32 %v1663_v39, %v1680_v43 }
 0x352   :  { %v1661_v55 = vsel %vm1324_vm4, %v1453_v8, %v8847_v6  ;;  %v1660_v19 = vsel %vm1324_vm4, %v1452_v27, %v8846_v37  ;;  %v1664_v31 = vsel %vm1324_vm4, %v1492_v61, %v8851_v45  ;;  %v1665_v57 = vsel %vm1324_vm4, %v1493_v44, %v8852_v48 }
 0x353   :  { %v1743_v1 = vrot.slane %v11128_v13, 2  ;;  %v1744_v20 = vrot.slane %v11130_v42, 2  ;;  %v1711_v17 = vrot.slane %v1661_v55, 2  ;;  %v1695_v32 = vrot.slane %v1660_v19, 2  ;;  %v8855_v59 = vpop.permute.xlu1 %8854  ;;  %v8860_v30 = vpop.permute.xlu0 %8859 }
 0x354   :  { %v1696_v54 = vrot.slane %v1664_v31, 2  ;;  %v1712_v24 = vrot.slane %v1665_v57, 2  ;;  %v8857_v14 = vunpack.i.h.bf16 %v8855_v59  ;;  %v8856_v56 = vunpack.i.l.bf16 %v8855_v59 }
 0x355   :  { %v1719_v23 = vmax.f32 %v1661_v55, %v1711_v17  ;;  %v11138_v8 = vmax.f32 %v1660_v19, %v1695_v32  ;;  %v8862_v27 = vunpack.i.h.bf16 %v8860_v30  ;;  %v8861_v35 = vunpack.i.l.bf16 %v8860_v30  ;;  %v8991_v30 = vld [vmem:[%s13537_s2 + $0x6c4] ss:$16 sps:$4 sm:$0xff]  }
 0x356   :  { %v11140_v29 = vmax.f32 %v1664_v31, %v1696_v54  ;;  %v1720_v50 = vmax.f32 %v1665_v57, %v1712_v24  ;;  %v1671_v36 = vsel %vm1324_vm4, %v1571_v2, %v8857_v14  ;;  %v1667_v33 = vsel %vm1324_vm4, %v1531_v16, %v8856_v56  ;;  %3126 = vmatprep.subr.bf16.mxu0 %v8991_v30 }
 0x357   :  { %v1775_v60 = vrot.slane %v1719_v23, 2  ;;  %v1755_v3 = vrot.slane %v11138_v8, 4  ;;  %v1763_v34 = vrot.slane %v11138_v8, 6  ;;  %v1682_v21 = vrot.slane %v1671_v36, 2  ;;  %v8865_v44 = vpop.permute.xlu1 %8864  ;;  %v8870_v26 = vpop.permute.xlu0 %8869 }
 0x358   :  { %v1756_v25 = vrot.slane %v11140_v29, 4  ;;  %v1764_v61 = vrot.slane %v11140_v29, 6  ;;  %v1776_v9 = vrot.slane %v1720_v50, 2  ;;  %v1681_v28 = vrot.slane %v1667_v33, 2  ;;  %v9003_v29 = vld [vmem:[%s13537_s2 + $0x684] ss:$16 sps:$4 sm:$0xff]  }
 0x359   :  { %v11149_v49 = vsel %vm1803_vm5, %v1719_v23, %v1775_v60  ;;  %v11151_v2 = vmax.f32 %v1671_v36, %v1682_v21  ;;  %v1662_v16 = vsel %vm1324_vm4, %v1454_v46, %v8861_v35  ;;  %v1666_v38 = vsel %vm1324_vm4, %v1494_v41, %v8862_v27  ;;  %v8992_v23 = vld [vmem:[%s13537_s2 + $0x8e0] ss:$16 sps:$4 sm:$0xff]   ;;  %v8994_v35 = vld [vmem:[%s13537_s2 + $0x8e4] ss:$16 sps:$4 sm:$0xff]  }
 0x35a   :  { %v11156_v52 = vsel %vm1803_vm5, %v1720_v50, %v1776_v9  ;;  %v11158_v40 = vmax.f32 %v1667_v33, %v1681_v28  ;;  %v1727_v10 = vrot.slane %v1662_v16, 2  ;;  %v1728_v12 = vrot.slane %v1666_v38, 2  ;;  %v8997_v50 = vld [vmem:[%s13537_s2 + $0x6a4] ss:$16 sps:$4 sm:$0xff]   ;;  %3167 = vmatprep.subr.bf16.mxu1 %v8994_v35 }
 0x35b   :  { %v1746_v39 = vrot.slane %v11151_v2, 2  ;;  %v8867_v58 = vunpack.i.h.bf16 %v8865_v44  ;;  %v8866_v63 = vunpack.i.l.bf16 %v8865_v44  ;;  %v8872_v7 = vunpack.i.h.bf16 %v8870_v26  ;;  %v8875_v43 = vpop.permute.xlu1 %8874  ;;  %v9000_v9 = vld [vmem:[%s13537_s2 + $0x8c4] ss:$16 sps:$4 sm:$0xff]   ;;  %3168 = vmatpush2.bf16.msra.mxu1 %v8992_v23 }
 0x35c   :  { %v1745_v15 = vrot.slane %v11158_v40, 2  ;;  %v11162_v62 = vmax.f32 %v1662_v16, %v1727_v10  ;;  %v11164_v46 = vmax.f32 %v1666_v38, %v1728_v12  ;;  %v8871_v41 = vunpack.i.l.bf16 %v8870_v26  ;;  %v8998_v10 = vld [vmem:[%s13537_s2 + $0x8c0] ss:$16 sps:$4 sm:$0xff]   ;;  %3169 = vmatprep.subr.bf16.mxu1 %v9000_v9  ;;  %v9048_v9 = vld [vmem:[%s13537_s2 + $0x5ec] ss:$16 sps:$4 sm:$0xff]  }
 0x35d   :  { %v1669_v6 = vsel %vm1324_vm4, %v11100_v11, %v8867_v58  ;;  %v1668_v37 = vsel %vm1324_vm4, %v11104_v47, %v8866_v63  ;;  %v1673_v48 = vsel %vm1324_vm4, %v11114_v22, %v8872_v7  ;;  %v8877_v45 = vunpack.i.h.bf16 %v8875_v43 }
 0x35e   :  { %v1787_v53 = vrot.slane %v11162_v62, 4  ;;  %v1788_v0 = vrot.slane %v11164_v46, 4  ;;  %v1795_v55 = vrot.slane %v11162_v62, 6  ;;  %v1796_v19 = vrot.slane %v11164_v46, 6  ;;  %v9001_v62 = vld [vmem:[%s13537_s2 + $0x680] ss:$16 sps:$4 sm:$0xff]  }
 0x35f   :  { %v1713_v31 = vrot.slane %v1669_v6, 2  ;;  %v1697_v57 = vrot.slane %v1668_v37, 2  ;;  %v1672_v11 = vsel %vm1324_vm4, %v11118_v4, %v8871_v41  ;;  %v1714_v17 = vrot.slane %v1673_v48, 2  ;;  %v8989_v4 = vld [vmem:[%s13537_s2 + $0x6c0] ss:$16 sps:$4 sm:$0xff]   ;;  %3170 = vmatpush2.bf16.msra.mxu1 %v8998_v10 }
 0x360   :  { %v1698_v32 = vrot.slane %v1672_v11, 2  ;;  %v8876_v47 = vunpack.i.l.bf16 %v8875_v43  ;;  %v1674_v22 = vsel %vm1324_vm4, %v11122_v5, %v8877_v45  ;;  %v1804_v59 = vsel %vm1803_vm5, %v11128_v13, %v1743_v1  ;;  %3127 = vmatpush2.bf16.msra.mxu0 %v8989_v4  ;;  %v9018_v4 = vld [vmem:[%s13537_s2 + $0x864] ss:$16 sps:$4 sm:$0xff]  }
 0x361   :  { %v1721_v54 = vmax.f32 %v1669_v6, %v1713_v31  ;;  %v1705_v24 = vmax.f32 %v1668_v37, %v1697_v57  ;;  %v1722_v14 = vmax.f32 %v1673_v48, %v1714_v17  ;;  %v1730_v56 = vrot.slane %v1674_v22, 2  ;;  %3128 = vmatprep.subr.bf16.mxu0 %v8997_v50  ;;  %v9004_v48 = vld [vmem:[%s13537_s2 + $0x8a0] ss:$16 sps:$4 sm:$0xff]  }
 0x362   :  { %v1706_v5 = vmax.f32 %v1672_v11, %v1698_v32  ;;  %v1670_v13 = vsel %vm1324_vm4, %v11126_v51, %v8876_v47  ;;  %v1805_v1 = vsel %vm1803_vm5, %v11130_v42, %v1744_v20  ;;  %v1809_v27 = vsel %vm1808_vm6, %v1804_v59, %v1755_v3  ;;  %v8995_v42 = vld [vmem:[%s13537_s2 + $0x6a0] ss:$16 sps:$4 sm:$0xff]   ;;  %v9012_v11 = vld [vmem:[%s13537_s2 + $0x884] ss:$16 sps:$4 sm:$0xff]  }
 0x363   :  { %v1777_v36 = vrot.slane %v1721_v54, 2  ;;  %v1757_v33 = vrot.slane %v1705_v24, 4  ;;  %v1765_v60 = vrot.slane %v1705_v24, 6  ;;  %v1778_v51 = vrot.slane %v1722_v14, 2  ;;  %v9007_v57 = vld [vmem:[%s13537_s2 + $0x660] ss:$16 sps:$4 sm:$0xff]  }
 0x364   :  { %v1758_v20 = vrot.slane %v1706_v5, 4  ;;  %v1766_v3 = vrot.slane %v1706_v5, 6  ;;  %v1729_v21 = vrot.slane %v1670_v13, 2  ;;  %v1738_v44 = vmax.f32 %v1674_v22, %v1730_v56  ;;  %3129 = vmatpush2.bf16.msra.mxu0 %v8995_v42  ;;  %v9010_v59 = vld [vmem:[%s13537_s2 + $0x880] ss:$16 sps:$4 sm:$0xff]  }
 0x365   :  { %v1820_v28 = vsel %vm1803_vm5, %v1721_v54, %v1777_v36  ;;  %v1821_v26 = vsel %vm1803_vm5, %v1722_v14, %v1778_v51  ;;  %v1810_v16 = vsel %vm1808_vm6, %v1805_v1, %v1756_v25  ;;  %v1814_v38 = vsel %vm744_vm3, %v1809_v27, %v1763_v34  ;;  %3130 = vmatprep.subr.bf16.mxu0 %v9003_v29  ;;  %v9013_v24 = vld [vmem:[%s13537_s2 + $0x640] ss:$16 sps:$4 sm:$0xff]   ;;  %v9015_v14 = vld [vmem:[%s13537_s2 + $0x644] ss:$16 sps:$4 sm:$0xff]  }
 0x366   :  { %v1737_v12 = vmax.f32 %v1670_v13, %v1729_v21  ;;  %v1790_v58 = vrot.slane %v1738_v44, 4  ;;  %v1798_v63 = vrot.slane %v1738_v44, 6  ;;  %v1815_v7 = vsel %vm744_vm3, %v1810_v16, %v1764_v61  ;;  %v9016_v5 = vld [vmem:[%s13537_s2 + $0x860] ss:$16 sps:$4 sm:$0xff]   ;;  %v9021_v13 = vld [vmem:[%s13537_s2 + $0x624] ss:$16 sps:$4 sm:$0xff]  }
 0x367   :  { %v8683_v43 = vpack.c.bf16 %v1815_v7, %v1814_v38  ;;  %v1822_v25 = vsel %vm1808_vm6, %v11149_v49, %v1787_v53  ;;  %v1823_v8 = vsel %vm1808_vm6, %v11156_v52, %v1788_v0  ;;  %v1806_v34 = vsel %vm1803_vm5, %v11158_v40, %v1745_v15  ;;  %v9006_v52 = vld [vmem:[%s13537_s2 + $0x8a4] ss:$16 sps:$4 sm:$0xff]   ;;  %v9019_v50 = vld [vmem:[%s13537_s2 + $0x620] ss:$16 sps:$4 sm:$0xff]  }
 0x368   :  { %v1789_v61 = vrot.slane %v1737_v12, 4  ;;  %v1797_v46 = vrot.slane %v1737_v12, 6  ;;  %v1826_v41 = vsel %vm744_vm3, %v1822_v25, %v1795_v55  ;;  %v1827_v49 = vsel %vm744_vm3, %v1823_v8, %v1796_v19  ;;  %3171 = vmatprep.subr.bf16.mxu1 %v9006_v52  ;;  %3131 = vmatpush2.bf16.msra.mxu0 %v9001_v62  ;;  %v9024_v27 = vld [vmem:[%s13537_s2 + $0x844] ss:$16 sps:$4 sm:$0xff]   ;;  %v9025_v42 = vld [vmem:[%s13537_s2 + $0x600] ss:$16 sps:$4 sm:$0xff]  }
 0x369   :  { %v1853_v40 = vrot.slane %v8683_v43, 7  ;;  %v8685_v15 = vpack.c.bf16 %v1827_v49, %v1826_v41  ;;  %v1807_v6 = vsel %vm1803_vm5, %v11151_v2, %v1746_v39  ;;  %v1811_v37 = vsel %vm1808_vm6, %v1806_v34, %v1757_v33  ;;  %v9009_v2 = vld [vmem:[%s13537_s2 + $0x664] ss:$16 sps:$4 sm:$0xff]   ;;  %3172 = vmatpush2.bf16.msra.mxu1 %v9004_v48  ;;  %v9022_v33 = vld [vmem:[%s13537_s2 + $0x840] ss:$16 sps:$4 sm:$0xff]  }
 0x36a   :  { %v1812_v45 = vsel %vm1808_vm6, %v1807_v6, %v1758_v20  ;;  %v1816_v53 = vsel %vm744_vm3, %v1811_v37, %v1765_v60  ;;  %v1824_v0 = vsel %vm1808_vm6, %v1820_v28, %v1789_v61  ;;  %v1825_v55 = vsel %vm1808_vm6, %v1821_v26, %v1790_v58  ;;  %3132 = vmatprep.subr.bf16.mxu0 %v9009_v2  ;;  %v9027_v36 = vld [vmem:[%s13537_s2 + $0x604] ss:$16 sps:$4 sm:$0xff]   ;;  %v9038_v44 = vld [vmem:[%s13537_s2 + $0x800] ss:$16 sps:$4 sm:$0xff]  }
 0x36b   :  { %1863 = vrot.lane.b32.xlu0 %v1853_v40, %s9995_s0  ;;  %v1856_v39 = vrot.slane %v8685_v15, 7  ;;  %v1817_v19 = vsel %vm744_vm3, %v1812_v45, %v1766_v3  ;;  %v1828_v31 = vsel %vm744_vm3, %v1824_v0, %v1797_v46  ;;  %v1829_v32 = vsel %vm744_vm3, %v1825_v55, %v1798_v63  ;;  %3173 = vmatprep.subr.bf16.mxu1 %v9012_v11  ;;  %v9030_v51 = vld [vmem:[%s13537_s2 + $0x824] ss:$16 sps:$4 sm:$0xff]   ;;  %v9028_v3 = vld [vmem:[%s13537_s2 + $0x820] ss:$16 sps:$4 sm:$0xff]  }
 0x36c   :  { %v8684_v17 = vpack.c.bf16 %v1817_v19, %v1816_v53  ;;  %v8686_v22 = vpack.c.bf16 %v1829_v32, %v1828_v31  ;;  %3133 = vmatpush2.bf16.msra.mxu0 %v9007_v57  ;;  %v1855_v23 = vrot.slane %v1853_v40, 4  ;;  %v9037_v20 = vld [vmem:[%s13537_s2 + $0x9e4] ss:$16 sps:$4 sm:$0xff]   ;;  %v13627_v26 = vmov 0 }
 0x36d   :  { %v1861_v47 = vrot.slane %v1856_v39, 4  ;;  %3174 = vmatpush2.bf16.msra.mxu1 %v9010_v59  ;;  %3134 = vmatprep.subr.bf16.mxu0 %v9015_v14  ;;  %v9040_v21 = vld [vmem:[%s13537_s2 + $0x804] ss:$16 sps:$4 sm:$0xff]   ;;  %v13628_v26 = vsel %vm11324_vm11, 4294967295, %v13627_v26  ;;  %v13630_v12 = vmov 0 }
 0x36e   :  { %v1854_v30 = vrot.slane %v8684_v17, 7  ;;  %v1859_v54 = vrot.slane %v8686_v22, 7  ;;  %3175 = vmatprep.subr.bf16.mxu1 %v9018_v4  ;;  %v1857_v35 = vsel %vm1852_vm8, %v1855_v23, %v1856_v39  ;;  %13629 = vst [vmem:[#allocation9_spill] sm:$0xff] %v13628_v26  ;;  %v13631_v12 = vsel %vm11332_vm13, 4294967295, %v13630_v12  ;;  %v9035_v17 = vld [vmem:[%s13537_s2 + $0x9e0] ss:$16 sps:$4 sm:$0xff]  }
 0x36f   :  { %1871 = vrot.lane.b32.xlu0 %v1861_v47, %s9995_s0  ;;  %13632 = vst [vmem:[#allocation8_spill] sm:$0xff] %v13631_v12 }
 0x370   :  { %1865 = vrot.lane.b32.xlu1 %v1854_v30, %s9995_s0  ;;  %v1858_v56 = vrot.slane %v1854_v30, 4  ;;  %3135 = vmatpush2.bf16.msra.mxu0 %v9013_v24  ;;  %v1862_v60 = vrot.slane %v1859_v54, 4  ;;  %v9043_v30 = vld [vmem:[%s13537_s2 + $0x9c4] ss:$16 sps:$4 sm:$0xff]  }
 0x371   :  { %3136 = vmatprep.subr.bf16.mxu0 %v9021_v13  ;;  %3176 = vmatpush2.bf16.msra.mxu1 %v9016_v5 }
 0x372   :  { %v1860_v1 = vsel %vm1852_vm8, %v1858_v56, %v1859_v54  ;;  %3177 = vmatprep.subr.bf16.mxu1 %v9024_v27  ;;  %vm1920_vm8 = vcmask 516096   ;;  %v9041_v56 = vld [vmem:[%s13537_s2 + $0x9c0] ss:$16 sps:$4 sm:$0xff]   ;;  %v9046_v27 = vld [vmem:[%s13537_s2 + $0x5e8] ss:$16 sps:$4 sm:$0xff]  }
 0x373   :  { %1869 = vrot.lane.b32.xlu0 %v1860_v1, %s9995_s0  ;;  %v11371_v1 = vld [vmem:[#allocation3] sm:$0xff] }
 0x374   :  { %1867 = vrot.lane.b32.xlu1 %v1857_v35, %s9995_s0  ;;  %3137 = vmatpush2.bf16.msra.mxu0 %v9019_v50 }
 0x375   :  { %3138 = vmatprep.subr.bf16.mxu0 %v9027_v36  ;;  %3178 = vmatpush2.bf16.msra.mxu1 %v9022_v33  ;;  %v9051_v36 = vld [vmem:[%s13537_s2 + $0x9a4] ss:$16 sps:$4 sm:$0xff]   ;;  %v9054_v33 = vld [vmem:[%s13537_s2 + $0x5cc] ss:$16 sps:$4 sm:$0xff]  }
 0x376   :  { %3179 = vmatprep.subr.bf16.mxu1 %v9030_v51  ;;  %v9052_v51 = vld [vmem:[%s13537_s2 + $0x5c8] ss:$16 sps:$4 sm:$0xff]  }
 0x378   :  { %1873 = vrot.lane.b32.xlu1 %v1862_v60, %s9995_s0  ;;  %3139 = vmatpush2.bf16.msra.mxu0 %v9025_v42  ;;  %v9049_v60 = vld [vmem:[%s13537_s2 + $0x9a0] ss:$16 sps:$4 sm:$0xff]   ;;  %v9057_v42 = vld [vmem:[%s13537_s2 + $0x984] ss:$16 sps:$4 sm:$0xff]  }
 0x379   :  { %3194 = vmatprep.subr.bf16.mxu0 %v9037_v20  ;;  %3180 = vmatpush2.bf16.msra.mxu1 %v9028_v3  ;;  %v9060_v20 = vld [vmem:[%s13537_s2 + $0x5ac] ss:$16 sps:$4 sm:$0xff]   ;;  %v9055_v3 = vld [vmem:[%s13537_s2 + $0x980] ss:$16 sps:$4 sm:$0xff]  }
 0x37a   :  { %3181 = vmatprep.subr.bf16.mxu1 %v9040_v21  ;;  %v9058_v21 = vld [vmem:[%s13537_s2 + $0x5a8] ss:$16 sps:$4 sm:$0xff]  }
 0x37d   :  { %3182 = vmatpush2.bf16.msra.mxu1 %v9038_v44  ;;  %v9063_v44 = vld [vmem:[%s13537_s2 + $0x964] ss:$16 sps:$4 sm:$0xff]  }
 0x37e   :  { %3237 = vmatprep.subr.bf16.mxu1 %v9048_v9  ;;  %v9066_v9 = vld [vmem:[%s13537_s2 + $0x58c] ss:$16 sps:$4 sm:$0xff]  }
 0x3dd   :  { %v1864_v28 = vpop.permute.xlu0 %1863 }
 0x3de   :  { %v1875_v16 = vrot.slane %v1864_v28, 4 }
 0x3e0   :  { %v1882_v38 = vsel %vm1324_vm4, %v1875_v16, %v1864_v28  ;;  %v9061_v28 = vld [vmem:[%s13537_s2 + $0x960] ss:$16 sps:$4 sm:$0xff]  }
 0x3e1   :  { %1904 = vst.msk [vmem:[#allocation2] sm:$0xee] %vm11324_vm11, %v1882_v38  ;;  %v1872_v10 = vpop.permute.xlu0 %1871  ;;  %v9069_v38 = vld [vmem:[%s13537_s2 + $0x944] ss:$16 sps:$4 sm:$0xff]  }
 0x3e2   :  { %v1879_v58 = vrot.slane %v1872_v10, 4  ;;  %v1866_v63 = vpop.permute.xlu1 %1865 }
 0x3e3   :  { %v1876_v7 = vrot.slane %v1866_v63, 4 }
 0x3e4   :  { %v1889_v43 = vsel %vm1324_vm4, %v1879_v58, %v1872_v10  ;;  %v9072_v10 = vld [vmem:[%s13537_s2 + $0x56c] ss:$16 sps:$4 sm:$0xff]  }
 0x3e5   :  { %1918 = vst.msk [vmem:[#allocation2 + $0x28] sm:$0x11] %vm11332_vm13, %v1889_v43  ;;  %v1884_v25 = vsel %vm1808_vm6, %v1875_v16, %v1876_v7  ;;  %v1870_v8 = vpop.permute.xlu0 %1869  ;;  %v9064_v16 = vld [vmem:[%s13537_s2 + $0x588] ss:$16 sps:$4 sm:$0xff]   ;;  %v9078_v43 = vld [vmem:[%s13537_s2 + $0x54c] ss:$16 sps:$4 sm:$0xff]  }
 0x3e6   :  { %1907 = vst.msk [vmem:[#allocation2 + $0x10] sm:$0xe] %vm1906_vm14, %v1876_v7  ;;  %v1885_v34 = vsel %vm1324_vm4, %v1884_v25, %v1866_v63  ;;  %v1868_v62 = vpop.permute.xlu1 %1867  ;;  %v1878_v29 = vrot.slane %v1870_v8, 4  ;;  %v9070_v63 = vld [vmem:[%s13537_s2 + $0x568] ss:$16 sps:$4 sm:$0xff]  }
 0x3e7   :  { %1905 = vst [vmem:[#allocation2 + $0x8] sm:$0xee] %v1885_v34  ;;  %v1877_v61 = vrot.slane %v1868_v62, 4  ;;  %v9075_v7 = vld [vmem:[%s13537_s2 + $0x924] ss:$16 sps:$4 sm:$0xff]  }
 0x3e8   :  { %1914 = vst.msk [vmem:[#allocation2 + $0x24] sm:$0xf] %vm1913_vm2, %v1878_v29  ;;  %v2088_v0 = vld [vmem:[#allocation2] sm:$0xee] }
 0x3e9   :  { %v1886_v46 = vsel %vm1324_vm4, %v1877_v61, %v1868_v62  ;;  %v1887_v41 = vsel %vm1808_vm6, %v1877_v61, %v1878_v29  ;;  %v9073_v25 = vld [vmem:[%s13537_s2 + $0x920] ss:$16 sps:$4 sm:$0xff]   ;;  %v9081_v34 = vld [vmem:[%s13537_s2 + $0x904] ss:$16 sps:$4 sm:$0xff]   ;;  %v9084_v29 = vld [vmem:[%s13537_s2 + $0x52c] ss:$16 sps:$4 sm:$0xff]  }
 0x3ea   :  { %1911 = vst.msk [vmem:[#allocation2 + $0x14] sm:$0xff] %vm1910_vm7, %v1886_v46  ;;  %v11345_v49 = vsel %vm1324_vm4, %v1887_v41, %v1870_v8  ;;  %v1874_v52 = vpop.permute.xlu1 %1873  ;;  %v9076_v8 = vld [vmem:[%s13537_s2 + $0x548] ss:$16 sps:$4 sm:$0xff]   ;;  %v9079_v41 = vld [vmem:[%s13537_s2 + $0x900] ss:$16 sps:$4 sm:$0xff]  }
 0x3eb   :  { %1912 = vst [vmem:[#allocation2 + $0x1c] sm:$0xff] %v11345_v49  ;;  %v1880_v40 = vrot.slane %v1874_v52, 4 }
 0x3ec   :  { %v2091_v6 = vld [vmem:[#allocation2 + $0x28] sm:$0x11] }
 0x3ed   :  { %v1890_v15 = vsel %vm1808_vm6, %v1879_v58, %v1880_v40  ;;  %1921 = vst.msk [vmem:[#allocation2 + $0x38] sm:$0x1] %vm1920_vm8, %v1880_v40  ;;  %v7974_v48 = vcombine.low %v2091_v6, %v2091_v6  ;;  %v7975_v45 = vcombine.high %v2091_v6, %v2091_v6  ;;  %v9067_v58 = vld [vmem:[%s13537_s2 + $0x940] ss:$16 sps:$4 sm:$0xff]   ;;  %v9082_v40 = vld [vmem:[%s13537_s2 + $0x528] ss:$16 sps:$4 sm:$0xff]  }
 0x3ee   :  { %v1891_v37 = vsel %vm1324_vm4, %v1890_v15, %v1874_v52  ;;  %v2089_v39 = vld [vmem:[#allocation2 + $0x8] sm:$0xee]  ;;  %v2090_v46 = vld [vmem:[#allocation2 + $0x10] sm:$0xe] }
 0x3ef   :  { %1919 = vst [vmem:[#allocation2 + $0x30] sm:$0x11] %v1891_v37  ;;  %v2289_v31 = vrot.slane %v7974_v48, 1  ;;  %v2292_v11 = vrot.slane %v7975_v45, 1  ;;  %v7971_v32 = vcombine.low %v2089_v39, %v11345_v49  ;;  %v7972_v47 = vcombine.high %v2089_v39, %v11345_v49  ;;  %v11448_v62 = vld [vmem:[#allocation2 + $0x24] sm:$0xf] }
 0x3f0   :  { %v7973_v52 = vcombine.low %v2090_v46, %v11448_v62  ;;  %v9089_v15 = vld [vmem:[%s13537_s2 + $0x7ec] ss:$16 sps:$4 sm:$0xff]   ;;  %v9087_v45 = vld [vmem:[%s13537_s2 + $0x7e8] ss:$16 sps:$4 sm:$0xff]  }
 0x3f1   :  { %v11351_v53 = vld [vmem:[#allocation2 + $0x14] sm:$0xff]  ;;  %v2294_v4 = vrot.slane %v7971_v32, 1  ;;  %v2297_v5 = vrot.slane %v7972_v47, 1  ;;  %v9092_v37 = vld [vmem:[%s13537_s2 + $0x50c] ss:$16 sps:$4 sm:$0xff]  }
 0x3f2   :  { %v7969_v55 = vcombine.low %v2088_v0, %v11351_v53  ;;  %v7970_v2 = vcombine.high %v2088_v0, %v11351_v53  ;;  %v2300_v48 = vrot.slane %v7973_v52, 1  ;;  %v9090_v0 = vld [vmem:[%s13537_s2 + $0x508] ss:$16 sps:$4 sm:$0xff]   ;;  %v9098_v39 = vld [vmem:[%s13537_s2 + $0x6ec] ss:$16 sps:$4 sm:$0xff]  }
 0x3f3   :  { %v9102_v32 = vld [vmem:[%s13537_s2 + $0x6c8] ss:$16 sps:$4 sm:$0xff]   ;;  %v9107_v47 = vld [vmem:[%s13537_s2 + $0x78c] ss:$16 sps:$4 sm:$0xff]  }
 0x3f4   :  { %v2288_v19 = vrot.slane %v7969_v55, 1  ;;  %v2291_v57 = vrot.slane %v7970_v2, 1  ;;  %v9086_v61 = vld [vmem:[#allocation2 + $0x38] ss:$0 sps:$4 sm:$0x11]  }
 0x3f5   :  { %v2301_v6 = vrot.slane %v9086_v61, 1  ;;  %v9095_v55 = vld [vmem:[%s13537_s2 + $0x7cc] ss:$16 sps:$4 sm:$0xff]   ;;  %v9162_v52 = vld [vmem:[%s13537_s2 + $0x988] ss:$16 sps:$4 sm:$0xff]  }
 0x3f6   :  { %v2293_v22 = vsel %vm85_vm1, %v2291_v57, %v2292_v11  ;;  %v11362_v59 = vsel %vm85_vm1, %v2288_v19, %v2289_v31  ;;  %v2092_v54 = vld [vmem:[#allocation2 + $0x30] sm:$0x11]  ;;  %v9093_v19 = vld [vmem:[%s13537_s2 + $0x7c8] ss:$16 sps:$4 sm:$0xff]   ;;  %v9101_v57 = vld [vmem:[%s13537_s2 + $0x7ac] ss:$16 sps:$4 sm:$0xff]  }
 0x3f7   :  { %3140 = vmatprep.mubr.bf16.mxu0 %v2293_v22  ;;  %v7976_v24 = vcombine.low %v2092_v54, %v2092_v54  ;;  %v7977_v14 = vcombine.high %v2092_v54, %v2092_v54  ;;  %v11476_v2 = vsel %vm85_vm1, %v2300_v48, %v2301_v6  ;;  %v9096_v31 = vld [vmem:[%s13537_s2 + $0x6e8] ss:$16 sps:$4 sm:$0xff]   ;;  %v9104_v11 = vld [vmem:[%s13537_s2 + $0x6cc] ss:$16 sps:$4 sm:$0xff]  }
 0x3f8   :  { %3141 = vmatmul.mubr.bf16.vlgmr.msra.gmra.mxu0 %v11362_v59  ;;  %v9108_v54 = vld [vmem:[%s13537_s2 + $0x6a8] ss:$16 sps:$4 sm:$0xff]   ;;  %v9161_v61 = vld [vmem:[%s13537_s2 + $0x86c] ss:$16 sps:$4 sm:$0xff]  }
 0x3f9   :  { %3195 = vmatpush1.bf16.msra.mxu0 %v9035_v17  ;;  %v2295_v23 = vrot.slane %v7976_v24, 1  ;;  %v2298_v13 = vrot.slane %v7977_v14, 1  ;;  %3226 = vmatprep.mubr.bf16.mxu0 %v11371_v1  ;;  %v9099_v17 = vld [vmem:[%s13537_s2 + $0x7a8] ss:$16 sps:$4 sm:$0xff]   ;;  %v9113_v24 = vld [vmem:[%s13537_s2 + $0x76c] ss:$16 sps:$4 sm:$0xff]  }
 0x3fa   :  { %3196 = vmatprep.subr.bf16.mxu0 %v9043_v30  ;;  %v9105_v30 = vld [vmem:[%s13537_s2 + $0x788] ss:$16 sps:$4 sm:$0xff]   ;;  %v9116_v14 = vld [vmem:[%s13537_s2 + $0x68c] ss:$16 sps:$4 sm:$0xff]  }
 0x3fb   :  { %v11378_v35 = vsel %vm85_vm1, %v2297_v5, %v2298_v13  ;;  %v11381_v50 = vsel %vm85_vm1, %v2294_v4, %v2295_v23  ;;  %v9114_v4 = vld [vmem:[%s13537_s2 + $0x688] ss:$16 sps:$4 sm:$0xff]   ;;  %v9119_v23 = vld [vmem:[%s13537_s2 + $0x74c] ss:$16 sps:$4 sm:$0xff]   ;;  %vm7255_vm1 = vcmask 1042945  }
 0x3fc   :  { %3183 = vmatprep.mubr.bf16.mxu1 %v11378_v35  ;;  %v9122_v5 = vld [vmem:[%s13537_s2 + $0x66c] ss:$16 sps:$4 sm:$0xff]   ;;  %v9117_v13 = vld [vmem:[%s13537_s2 + $0x748] ss:$16 sps:$4 sm:$0xff]  }
 0x3fd   :  { %3197 = vmatpush1.bf16.msra.mxu0 %v9041_v56  ;;  %3184 = vmatmul.mubr.bf16.vlgmr.msra.gmra.mxu1 %v11381_v50  ;;  %v9111_v56 = vld [vmem:[%s13537_s2 + $0x768] ss:$16 sps:$4 sm:$0xff]   ;;  %v9164_v46 = vld [vmem:[%s13537_s2 + $0x98c] ss:$16 sps:$4 sm:$0xff]  }
 0x3fe   :  { %3238 = vmatpush1.bf16.msra.mxu1 %v9046_v27  ;;  %3269 = vmatprep.mubr.bf16.mxu1 %v2293_v22  ;;  %v9110_v22 = vld [vmem:[%s13537_s2 + $0x6ac] ss:$16 sps:$4 sm:$0xff]   ;;  %v9120_v27 = vld [vmem:[%s13537_s2 + $0x668] ss:$16 sps:$4 sm:$0xff]  }
 0x3ff   :  { %3198 = vmatprep.subr.bf16.mxu0 %v9051_v36  ;;  %3239 = vmatprep.subr.bf16.mxu1 %v9054_v33  ;;  %v9128_v36 = vld [vmem:[%s13537_s2 + $0x64c] ss:$16 sps:$4 sm:$0xff]   ;;  %v9123_v33 = vld [vmem:[%s13537_s2 + $0x728] ss:$16 sps:$4 sm:$0xff]  }
 0x400   :  { %v9165_v6 = vld [vmem:[%s13537_s2 + $0x848] ss:$16 sps:$4 sm:$0xff]   ;;  %v9173_v48 = vld [vmem:[%s13537_s2 + $0x82c] ss:$16 sps:$4 sm:$0xff]  }
 0x401   :  { %3199 = vmatpush1.bf16.msra.mxu0 %v9049_v60  ;;  %v9126_v60 = vld [vmem:[%s13537_s2 + $0x648] ss:$16 sps:$4 sm:$0xff]  }
 0x402   :  { %3240 = vmatpush1.bf16.msra.mxu1 %v9052_v51  ;;  %3200 = vmatprep.subr.bf16.mxu0 %v9057_v42  ;;  %v9131_v51 = vld [vmem:[%s13537_s2 + $0x70c] ss:$16 sps:$4 sm:$0xff]  }
 0x403   :  { %3241 = vmatprep.subr.bf16.mxu1 %v9060_v20  ;;  %v9134_v42 = vld [vmem:[%s13537_s2 + $0x62c] ss:$16 sps:$4 sm:$0xff]   ;;  %v9129_v20 = vld [vmem:[%s13537_s2 + $0x708] ss:$16 sps:$4 sm:$0xff]  }
 0x405   :  { %3201 = vmatpush1.bf16.msra.mxu0 %v9055_v3  ;;  %v9132_v3 = vld [vmem:[%s13537_s2 + $0x628] ss:$16 sps:$4 sm:$0xff]  }
 0x406   :  { %3242 = vmatpush1.bf16.msra.mxu1 %v9058_v21  ;;  %3202 = vmatprep.subr.bf16.mxu0 %v9063_v44  ;;  %v9137_v21 = vld [vmem:[%s13537_s2 + $0x8ec] ss:$16 sps:$4 sm:$0xff]  }
 0x407   :  { %3243 = vmatprep.subr.bf16.mxu1 %v9066_v9  ;;  %v9140_v44 = vld [vmem:[%s13537_s2 + $0x60c] ss:$16 sps:$4 sm:$0xff]   ;;  %v9135_v9 = vld [vmem:[%s13537_s2 + $0x8e8] ss:$16 sps:$4 sm:$0xff]  }
 0x409   :  { %3203 = vmatpush1.bf16.msra.mxu0 %v9061_v28  ;;  %v9138_v28 = vld [vmem:[%s13537_s2 + $0x608] ss:$16 sps:$4 sm:$0xff]  }
 0x40a   :  { %3244 = vmatpush1.bf16.msra.mxu1 %v9064_v16  ;;  %3204 = vmatprep.subr.bf16.mxu0 %v9069_v38  ;;  %v9143_v16 = vld [vmem:[%s13537_s2 + $0x8cc] ss:$16 sps:$4 sm:$0xff]  }
 0x40b   :  { %3245 = vmatprep.subr.bf16.mxu1 %v9072_v10  ;;  %v9146_v38 = vld [vmem:[%s13537_s2 + $0x9ec] ss:$16 sps:$4 sm:$0xff]   ;;  %v9141_v10 = vld [vmem:[%s13537_s2 + $0x8c8] ss:$16 sps:$4 sm:$0xff]  }
 0x40d   :  { %3205 = vmatpush1.bf16.msra.mxu0 %v9067_v58  ;;  %v9144_v58 = vld [vmem:[%s13537_s2 + $0x9e8] ss:$16 sps:$4 sm:$0xff]  }
 0x40e   :  { %3246 = vmatpush1.bf16.msra.mxu1 %v9070_v63  ;;  %3206 = vmatprep.subr.bf16.mxu0 %v9075_v7  ;;  %v9149_v63 = vld [vmem:[%s13537_s2 + $0x8ac] ss:$16 sps:$4 sm:$0xff]  }
 0x40f   :  { %3247 = vmatprep.subr.bf16.mxu1 %v9078_v43  ;;  %v9152_v7 = vld [vmem:[%s13537_s2 + $0x9cc] ss:$16 sps:$4 sm:$0xff]   ;;  %v9147_v43 = vld [vmem:[%s13537_s2 + $0x8a8] ss:$16 sps:$4 sm:$0xff]  }
 0x411   :  { %3207 = vmatpush1.bf16.msra.mxu0 %v9073_v25  ;;  %v9150_v25 = vld [vmem:[%s13537_s2 + $0x9c8] ss:$16 sps:$4 sm:$0xff]  }
 0x412   :  { %3248 = vmatpush1.bf16.msra.mxu1 %v9076_v8  ;;  %3208 = vmatprep.subr.bf16.mxu0 %v9081_v34  ;;  %v9155_v8 = vld [vmem:[%s13537_s2 + $0x88c] ss:$16 sps:$4 sm:$0xff]   ;;  %v9153_v34 = vld [vmem:[%s13537_s2 + $0x888] ss:$16 sps:$4 sm:$0xff]  }
 0x413   :  { %3249 = vmatprep.subr.bf16.mxu1 %v9084_v29  ;;  %v9156_v29 = vld [vmem:[%s13537_s2 + $0x9a8] ss:$16 sps:$4 sm:$0xff]  }
 0x415   :  { %3209 = vmatpush1.bf16.msra.mxu0 %v9079_v41  ;;  %v9159_v41 = vld [vmem:[%s13537_s2 + $0x868] ss:$16 sps:$4 sm:$0xff]  }
 0x416   :  { %3250 = vmatpush1.bf16.msra.mxu1 %v9082_v40  ;;  %3280 = vmatprep.subr.bf16.mxu0 %v9089_v15  ;;  %v9167_v40 = vld [vmem:[%s13537_s2 + $0x84c] ss:$16 sps:$4 sm:$0xff]  }
 0x417   :  { %3251 = vmatprep.subr.bf16.mxu1 %v9092_v37  ;;  %v9170_v15 = vld [vmem:[%s13537_s2 + $0x96c] ss:$16 sps:$4 sm:$0xff]   ;;  %v9168_v37 = vld [vmem:[%s13537_s2 + $0x968] ss:$16 sps:$4 sm:$0xff]  }
 0x418   :  { %3227 = vmatmul.mubr.bf16.vlgmr.msra.gmra.mxu0 %v11476_v2 }
 0x419   :  { %3281 = vmatpush1.bf16.msra.mxu0 %v9087_v45  ;;  %3312 = vmatprep.mubr.bf16.mxu0 %v11378_v35  ;;  %v9125_v35 = vld [vmem:[%s13537_s2 + $0x72c] ss:$16 sps:$4 sm:$0xff]  }
 0x41a   :  { %3252 = vmatpush1.bf16.msra.mxu1 %v9090_v0  ;;  %3282 = vmatprep.subr.bf16.mxu0 %v9095_v55  ;;  %v9176_v45 = vld [vmem:[%s13537_s2 + $0x94c] ss:$16 sps:$4 sm:$0xff]   ;;  %v9171_v0 = vld [vmem:[%s13537_s2 + $0x828] ss:$16 sps:$4 sm:$0xff]  }
 0x41b   :  { %3253 = vmatprep.subr.bf16.mxu1 %v9098_v39  ;;  %v9174_v55 = vld [vmem:[%s13537_s2 + $0x948] ss:$16 sps:$4 sm:$0xff]   ;;  %v9179_v39 = vld [vmem:[%s13537_s2 + $0x80c] ss:$16 sps:$4 sm:$0xff]  }
 0x41d   :  { %3283 = vmatpush1.bf16.msra.mxu0 %v9093_v19  ;;  %v9182_v19 = vld [vmem:[%s13537_s2 + $0x92c] ss:$16 sps:$4 sm:$0xff]  }
 0x41e   :  { %3254 = vmatpush2.bf16.msra.mxu1 %v9096_v31  ;;  %3284 = vmatprep.subr.bf16.mxu0 %v9101_v57  ;;  %v9177_v31 = vld [vmem:[%s13537_s2 + $0x808] ss:$16 sps:$4 sm:$0xff]  }
 0x41f   :  { %3255 = vmatprep.subr.bf16.mxu1 %v9104_v11  ;;  %v9180_v57 = vld [vmem:[%s13537_s2 + $0x928] ss:$16 sps:$4 sm:$0xff]   ;;  %v9185_v11 = vld [vmem:[%s13537_s2 + $0xe4] ss:$16 sps:$4 sm:$0xff]  }
 0x421   :  { %3285 = vmatpush1.bf16.msra.mxu0 %v9099_v17  ;;  %v9188_v17 = vld [vmem:[%s13537_s2 + $0x90c] ss:$16 sps:$4 sm:$0xff]  }
 0x422   :  { %3256 = vmatpush2.bf16.msra.mxu1 %v9102_v32  ;;  %3286 = vmatprep.subr.bf16.mxu0 %v9107_v47  ;;  %v9183_v32 = vld [vmem:[%s13537_s2 + $0xe0] ss:$16 sps:$4 sm:$0xff]   ;;  %v9186_v47 = vld [vmem:[%s13537_s2 + $0x908] ss:$16 sps:$4 sm:$0xff]  }
 0x423   :  { %3257 = vmatprep.subr.bf16.mxu1 %v9110_v22  ;;  %v11671_v22 = vld [vmem:[#allocation2] sm:$0xff] }
 0x425   :  { %3287 = vmatpush1.bf16.msra.mxu0 %v9105_v30  ;;  %v9193_v30 = vld [vmem:[%s13537_s2 + $0xc4] ss:$16 sps:$4 sm:$0xff]  }
 0x426   :  { %3258 = vmatpush2.bf16.msra.mxu1 %v9108_v54  ;;  %3288 = vmatprep.subr.bf16.mxu0 %v9113_v24  ;;  %v11678_v54 = vcombine.high %v11671_v22, %v11351_v53  ;;  %v9196_v24 = vld [vmem:[%s13537_s2 + $0x2e4] ss:$16 sps:$4 sm:$0xff]  }
 0x427   :  { %3259 = vmatprep.subr.bf16.mxu1 %v9116_v14  ;;  %v9191_v14 = vld [vmem:[%s13537_s2 + $0xc0] ss:$16 sps:$4 sm:$0xff]  }
 0x429   :  { %3289 = vmatpush1.bf16.msra.mxu0 %v9111_v56  ;;  %v11688_v56 = vld [vmem:[#allocation2 + $0x8] sm:$0xff] }
 0x42a   :  { %3260 = vmatpush2.bf16.msra.mxu1 %v9114_v4  ;;  %3290 = vmatprep.subr.bf16.mxu0 %v9119_v23  ;;  %v9194_v4 = vld [vmem:[%s13537_s2 + $0x2e0] ss:$16 sps:$4 sm:$0xff]   ;;  %v9202_v23 = vld [vmem:[%s13537_s2 + $0x2c4] ss:$16 sps:$4 sm:$0xff]  }
 0x42b   :  { %3261 = vmatprep.subr.bf16.mxu1 %v9122_v5  ;;  %v11701_v5 = vcombine.high %v11688_v56, %v11345_v49 }
 0x42d   :  { %3291 = vmatpush1.bf16.msra.mxu0 %v9117_v13  ;;  %v9197_v13 = vld [vmem:[%s13537_s2 + $0xa0] ss:$16 sps:$4 sm:$0xff]  }
 0x42e   :  { %3262 = vmatpush2.bf16.msra.mxu1 %v9120_v27  ;;  %3292 = vmatprep.subr.bf16.mxu0 %v9125_v35  ;;  %v9200_v27 = vld [vmem:[%s13537_s2 + $0x2c0] ss:$16 sps:$4 sm:$0xff]   ;;  %v9205_v35 = vld [vmem:[%s13537_s2 + $0x84] ss:$16 sps:$4 sm:$0xff]  }
 0x42f   :  { %3263 = vmatprep.subr.bf16.mxu1 %v9128_v36  ;;  %v9203_v36 = vld [vmem:[%s13537_s2 + $0x80] ss:$16 sps:$4 sm:$0xff]  }
 0x431   :  { %3293 = vmatpush1.bf16.msra.mxu0 %v9123_v33  ;;  %v9206_v33 = vld [vmem:[%s13537_s2 + $0x2a0] ss:$16 sps:$4 sm:$0xff]  }
 0x432   :  { %3264 = vmatpush2.bf16.msra.mxu1 %v9126_v60  ;;  %3294 = vmatprep.subr.bf16.mxu0 %v9131_v51  ;;  %v9211_v60 = vld [vmem:[%s13537_s2 + $0x64] ss:$16 sps:$4 sm:$0xff]  }
 0x433   :  { %3265 = vmatprep.subr.bf16.mxu1 %v9134_v42  ;;  %v9214_v51 = vld [vmem:[%s13537_s2 + $0x284] ss:$16 sps:$4 sm:$0xff]   ;;  %v9209_v42 = vld [vmem:[%s13537_s2 + $0x60] ss:$16 sps:$4 sm:$0xff]  }
 0x435   :  { %3295 = vmatpush1.bf16.msra.mxu0 %v9129_v20  ;;  %v9212_v20 = vld [vmem:[%s13537_s2 + $0x280] ss:$16 sps:$4 sm:$0xff]  }
 0x436   :  { %3266 = vmatpush2.bf16.msra.mxu1 %v9132_v3  ;;  %3296 = vmatprep.subr.bf16.mxu0 %v9137_v21  ;;  %v9217_v3 = vld [vmem:[%s13537_s2 + $0x44] ss:$16 sps:$4 sm:$0xff]  }
 0x437   :  { %3267 = vmatprep.subr.bf16.mxu1 %v9140_v44  ;;  %v9220_v21 = vld [vmem:[%s13537_s2 + $0x264] ss:$16 sps:$4 sm:$0xff]   ;;  %v9215_v44 = vld [vmem:[%s13537_s2 + $0x40] ss:$16 sps:$4 sm:$0xff]  }
 0x439   :  { %3297 = vmatpush2.bf16.msra.mxu0 %v9135_v9  ;;  %v9218_v9 = vld [vmem:[%s13537_s2 + $0x260] ss:$16 sps:$4 sm:$0xff]  }
 0x43a   :  { %3268 = vmatpush2.bf16.msra.mxu1 %v9138_v28  ;;  %3298 = vmatprep.subr.bf16.mxu0 %v9143_v16  ;;  %v9223_v28 = vld [vmem:[%s13537_s2 + $0x24] ss:$16 sps:$4 sm:$0xff]  }
 0x43b   :  { %3323 = vmatprep.subr.bf16.mxu1 %v9146_v38  ;;  %v9226_v16 = vld [vmem:[%s13537_s2 + $0x244] ss:$16 sps:$4 sm:$0xff]   ;;  %v9221_v38 = vld [vmem:[%s13537_s2 + $0x20] ss:$16 sps:$4 sm:$0xff]  }
 0x43d   :  { %3270 = vmatmul.mubr.bf16.vlgmr.msra.gmra.mxu1 %v11362_v59  ;;  %3299 = vmatpush2.bf16.msra.mxu0 %v9141_v10  ;;  %v9158_v59 = vld [vmem:[%s13537_s2 + $0x9ac] ss:$16 sps:$4 sm:$0xff]   ;;  %v9224_v10 = vld [vmem:[%s13537_s2 + $0x240] ss:$16 sps:$4 sm:$0xff]  }
 0x43e   :  { %3324 = vmatpush1.bf16.msra.mxu1 %v9144_v58  ;;  %3300 = vmatprep.subr.bf16.mxu0 %v9149_v63  ;;  %v9229_v58 = vld [vmem:[%s13537_s2 + $0x4] ss:$16 sps:$4 sm:$0xff]  }
 0x43f   :  { %3325 = vmatprep.subr.bf16.mxu1 %v9152_v7  ;;  %3355 = vmatprep.mubr.bf16.mxu1 %v11371_v1  ;;  %v9232_v63 = vld [vmem:[%s13537_s2 + $0x224] ss:$16 sps:$4 sm:$0xff]   ;;  %v9227_v7 = vld [vmem:[%s13537_s2] ss:$16 sps:$4 sm:$0xff]  }
 0x441   :  { %3301 = vmatpush2.bf16.msra.mxu0 %v9147_v43  ;;  %v9230_v43 = vld [vmem:[%s13537_s2 + $0x220] ss:$16 sps:$4 sm:$0xff]  }
 0x442   :  { %3326 = vmatpush1.bf16.msra.mxu1 %v9150_v25  ;;  %3302 = vmatprep.subr.bf16.mxu0 %v9155_v8  ;;  %v9235_v25 = vld [vmem:[%s13537_s2 + $0x1e4] ss:$16 sps:$4 sm:$0xff]  }
 0x443   :  { %3327 = vmatprep.subr.bf16.mxu1 %v9158_v59  ;;  %v9238_v8 = vld [vmem:[%s13537_s2 + $0x204] ss:$16 sps:$4 sm:$0xff]   ;;  %v9233_v59 = vld [vmem:[%s13537_s2 + $0x1e0] ss:$16 sps:$4 sm:$0xff]  }
 0x445   :  { %3303 = vmatpush2.bf16.msra.mxu0 %v9153_v34  ;;  %v9236_v34 = vld [vmem:[%s13537_s2 + $0x200] ss:$16 sps:$4 sm:$0xff]  }
 0x446   :  { %3328 = vmatpush1.bf16.msra.mxu1 %v9156_v29  ;;  %3304 = vmatprep.subr.bf16.mxu0 %v9161_v61  ;;  %v9241_v29 = vld [vmem:[%s13537_s2 + $0x1c4] ss:$16 sps:$4 sm:$0xff]  }
 0x447   :  { %3329 = vmatprep.subr.bf16.mxu1 %v9164_v46  ;;  %v9244_v61 = vld [vmem:[%s13537_s2 + $0x3e4] ss:$16 sps:$4 sm:$0xff]   ;;  %v9239_v46 = vld [vmem:[%s13537_s2 + $0x1c0] ss:$16 sps:$4 sm:$0xff]  }
 0x449   :  { %3305 = vmatpush2.bf16.msra.mxu0 %v9159_v41  ;;  %v9242_v41 = vld [vmem:[%s13537_s2 + $0x3e0] ss:$16 sps:$4 sm:$0xff]  }
 0x44a   :  { %3330 = vmatpush1.bf16.msra.mxu1 %v9162_v52  ;;  %3306 = vmatprep.subr.bf16.mxu0 %v9167_v40  ;;  %v9247_v52 = vld [vmem:[%s13537_s2 + $0x1a4] ss:$16 sps:$4 sm:$0xff]  }
 0x44b   :  { %3331 = vmatprep.subr.bf16.mxu1 %v9170_v15  ;;  %v9250_v40 = vld [vmem:[%s13537_s2 + $0x3c4] ss:$16 sps:$4 sm:$0xff]   ;;  %v9245_v15 = vld [vmem:[%s13537_s2 + $0x1a0] ss:$16 sps:$4 sm:$0xff]  }
 0x44d   :  { %3307 = vmatpush2.bf16.msra.mxu0 %v9165_v6  ;;  %v9248_v6 = vld [vmem:[%s13537_s2 + $0x3c0] ss:$16 sps:$4 sm:$0xff]  }
 0x44e   :  { %3332 = vmatpush1.bf16.msra.mxu1 %v9168_v37  ;;  %3308 = vmatprep.subr.bf16.mxu0 %v9173_v48  ;;  %v9253_v37 = vld [vmem:[%s13537_s2 + $0x184] ss:$16 sps:$4 sm:$0xff]  }
 0x44f   :  { %3333 = vmatprep.subr.bf16.mxu1 %v9176_v45  ;;  %v9256_v48 = vld [vmem:[%s13537_s2 + $0x3a4] ss:$16 sps:$4 sm:$0xff]   ;;  %v9251_v45 = vld [vmem:[%s13537_s2 + $0x180] ss:$16 sps:$4 sm:$0xff]  }
 0x451   :  { %3309 = vmatpush2.bf16.msra.mxu0 %v9171_v0  ;;  %v9254_v0 = vld [vmem:[%s13537_s2 + $0x3a0] ss:$16 sps:$4 sm:$0xff]  }
 0x452   :  { %3334 = vmatpush1.bf16.msra.mxu1 %v9174_v55  ;;  %3310 = vmatprep.subr.bf16.mxu0 %v9179_v39  ;;  %v9259_v55 = vld [vmem:[%s13537_s2 + $0x164] ss:$16 sps:$4 sm:$0xff]  }
 0x453   :  { %3335 = vmatprep.subr.bf16.mxu1 %v9182_v19  ;;  %v9262_v39 = vld [vmem:[%s13537_s2 + $0x384] ss:$16 sps:$4 sm:$0xff]   ;;  %v9257_v19 = vld [vmem:[%s13537_s2 + $0x160] ss:$16 sps:$4 sm:$0xff]  }
 0x455   :  { %3311 = vmatpush2.bf16.msra.mxu0 %v9177_v31  ;;  %v9260_v31 = vld [vmem:[%s13537_s2 + $0x380] ss:$16 sps:$4 sm:$0xff]  }
 0x456   :  { %3336 = vmatpush1.bf16.msra.mxu1 %v9180_v57  ;;  %4184 = vmatprep.subr.bf16.mxu0 %v9185_v11  ;;  %v9265_v57 = vld [vmem:[%s13537_s2 + $0x144] ss:$16 sps:$4 sm:$0xff]  }
 0x457   :  { %3337 = vmatprep.subr.bf16.mxu1 %v9188_v17  ;;  %v9268_v11 = vld [vmem:[%s13537_s2 + $0x364] ss:$16 sps:$4 sm:$0xff]   ;;  %v9263_v17 = vld [vmem:[%s13537_s2 + $0x140] ss:$16 sps:$4 sm:$0xff]  }
 0x458   :  { %3313 = vmatmul.mubr.bf16.vlgmr.msra.gmra.mxu0 %v11381_v50  ;;  %v9199_v50 = vld [vmem:[%s13537_s2 + $0xa4] ss:$16 sps:$4 sm:$0xff]  }
 0x459   :  { %4185 = vmatpush1.bf16.msra.mxu0 %v9183_v32  ;;  %4216 = vmatprep.mubr.bf16.mxu0 %v11678_v54  ;;  %v9266_v32 = vld [vmem:[%s13537_s2 + $0x360] ss:$16 sps:$4 sm:$0xff]  }
 0x45a   :  { %3338 = vmatpush1.bf16.msra.mxu1 %v9186_v47  ;;  %4186 = vmatprep.subr.bf16.mxu0 %v9193_v30  ;;  %v9271_v47 = vld [vmem:[%s13537_s2 + $0x124] ss:$16 sps:$4 sm:$0xff]  }
 0x45b   :  { %4227 = vmatprep.subr.bf16.mxu1 %v9196_v24  ;;  %v9274_v30 = vld [vmem:[%s13537_s2 + $0x344] ss:$16 sps:$4 sm:$0xff]   ;;  %v9269_v24 = vld [vmem:[%s13537_s2 + $0x120] ss:$16 sps:$4 sm:$0xff]  }
 0x45d   :  { %3356 = vmatmul.mubr.bf16.vlgmr.msra.gmra.mxu1 %v11476_v2  ;;  %4187 = vmatpush1.bf16.msra.mxu0 %v9191_v14  ;;  %v9208_v2 = vld [vmem:[%s13537_s2 + $0x2a4] ss:$16 sps:$4 sm:$0xff]   ;;  %v9272_v14 = vld [vmem:[%s13537_s2 + $0x340] ss:$16 sps:$4 sm:$0xff]  }
 0x45e   :  { %4228 = vmatpush1.bf16.msra.mxu1 %v9194_v4  ;;  %4259 = vmatprep.mubr.bf16.mxu1 %v11701_v5  ;;  %v9277_v4 = vld [vmem:[%s13537_s2 + $0x104] ss:$16 sps:$4 sm:$0xff]  }
 0x45f   :  { %4188 = vmatprep.subr.bf16.mxu0 %v9199_v50  ;;  %4229 = vmatprep.subr.bf16.mxu1 %v9202_v23  ;;  %v9280_v50 = vld [vmem:[%s13537_s2 + $0x324] ss:$16 sps:$4 sm:$0xff]   ;;  %v9275_v23 = vld [vmem:[%s13537_s2 + $0x100] ss:$16 sps:$4 sm:$0xff]  }
 0x461   :  { %4189 = vmatpush1.bf16.msra.mxu0 %v9197_v13  ;;  %v9278_v13 = vld [vmem:[%s13537_s2 + $0x320] ss:$16 sps:$4 sm:$0xff]  }
 0x462   :  { %4230 = vmatpush1.bf16.msra.mxu1 %v9200_v27  ;;  %4190 = vmatprep.subr.bf16.mxu0 %v9205_v35  ;;  %v9283_v27 = vld [vmem:[%s13537_s2 + $0x4e4] ss:$16 sps:$4 sm:$0xff]  }
 0x463   :  { %4231 = vmatprep.subr.bf16.mxu1 %v9208_v2  ;;  %v9286_v35 = vld [vmem:[%s13537_s2 + $0x304] ss:$16 sps:$4 sm:$0xff]   ;;  %v9281_v2 = vld [vmem:[%s13537_s2 + $0x4e0] ss:$16 sps:$4 sm:$0xff]  }
 0x465   :  { %4191 = vmatpush1.bf16.msra.mxu0 %v9203_v36  ;;  %v11878_v36 = vcombine.low %v11671_v22, %v11351_v53  ;;  %v9287_v53 = vld [vmem:[%s13537_s2 + $0x4c0] ss:$16 sps:$4 sm:$0xff]   ;;  %v9290_v22 = vld [vmem:[%s13537_s2 + $0xe8] ss:$16 sps:$4 sm:$0xff]  }
 0x466   :  { %4232 = vmatpush1.bf16.msra.mxu1 %v9206_v33  ;;  %4192 = vmatprep.subr.bf16.mxu0 %v9211_v60  ;;  %v9284_v33 = vld [vmem:[%s13537_s2 + $0x300] ss:$16 sps:$4 sm:$0xff]   ;;  %v9289_v60 = vld [vmem:[%s13537_s2 + $0x4c4] ss:$16 sps:$4 sm:$0xff]  }
 0x467   :  { %4233 = vmatprep.subr.bf16.mxu1 %v9214_v51  ;;  %v9292_v51 = vld [vmem:[%s13537_s2 + $0xec] ss:$16 sps:$4 sm:$0xff]  }
 0x469   :  { %4193 = vmatpush1.bf16.msra.mxu0 %v9209_v42  ;;  %v11899_v42 = vcombine.low %v11688_v56, %v11345_v49  ;;  %v9296_v49 = vld [vmem:[%s13537_s2 + $0xc8] ss:$16 sps:$4 sm:$0xff]   ;;  %v9301_v56 = vld [vmem:[%s13537_s2 + $0x484] ss:$16 sps:$4 sm:$0xff]  }
 0x46a   :  { %4234 = vmatpush1.bf16.msra.mxu1 %v9212_v20  ;;  %4194 = vmatprep.subr.bf16.mxu0 %v9217_v3  ;;  %v9295_v20 = vld [vmem:[%s13537_s2 + $0x4a4] ss:$16 sps:$4 sm:$0xff]   ;;  %v9298_v3 = vld [vmem:[%s13537_s2 + $0xcc] ss:$16 sps:$4 sm:$0xff]  }
 0x46b   :  { %4235 = vmatprep.subr.bf16.mxu1 %v9220_v21  ;;  %v9293_v21 = vld [vmem:[%s13537_s2 + $0x4a0] ss:$16 sps:$4 sm:$0xff]  }
 0x46d   :  { %4195 = vmatpush1.bf16.msra.mxu0 %v9215_v44  ;;  %v9304_v44 = vld [vmem:[%s13537_s2 + $0xac] ss:$16 sps:$4 sm:$0xff]  }
 0x46e   :  { %4236 = vmatpush1.bf16.msra.mxu1 %v9218_v9  ;;  %4196 = vmatprep.subr.bf16.mxu0 %v9223_v28  ;;  %v9299_v9 = vld [vmem:[%s13537_s2 + $0x480] ss:$16 sps:$4 sm:$0xff]   ;;  %v9307_v28 = vld [vmem:[%s13537_s2 + $0x464] ss:$16 sps:$4 sm:$0xff]  }
 0x46f   :  { %4237 = vmatprep.subr.bf16.mxu1 %v9226_v16  ;;  %v9310_v16 = vld [vmem:[%s13537_s2 + $0x8c] ss:$16 sps:$4 sm:$0xff]  }
 0x471   :  { %4197 = vmatpush1.bf16.msra.mxu0 %v9221_v38  ;;  %v9305_v38 = vld [vmem:[%s13537_s2 + $0x460] ss:$16 sps:$4 sm:$0xff]  }
 0x472   :  { %4238 = vmatpush1.bf16.msra.mxu1 %v9224_v10  ;;  %4198 = vmatprep.subr.bf16.mxu0 %v9229_v58  ;;  %v9308_v10 = vld [vmem:[%s13537_s2 + $0x88] ss:$16 sps:$4 sm:$0xff]   ;;  %v9313_v58 = vld [vmem:[%s13537_s2 + $0x444] ss:$16 sps:$4 sm:$0xff]  }
 0x473   :  { %4239 = vmatprep.subr.bf16.mxu1 %v9232_v63  ;;  %v9316_v63 = vld [vmem:[%s13537_s2 + $0x6c] ss:$16 sps:$4 sm:$0xff]  }
 0x475   :  { %4199 = vmatpush1.bf16.msra.mxu0 %v9227_v7  ;;  %v9311_v7 = vld [vmem:[%s13537_s2 + $0x440] ss:$16 sps:$4 sm:$0xff]  }
 0x476   :  { %4240 = vmatpush1.bf16.msra.mxu1 %v9230_v43  ;;  %4200 = vmatprep.subr.bf16.mxu0 %v9235_v25  ;;  %v9314_v43 = vld [vmem:[%s13537_s2 + $0x68] ss:$16 sps:$4 sm:$0xff]   ;;  %v9319_v25 = vld [vmem:[%s13537_s2 + $0x424] ss:$16 sps:$4 sm:$0xff]  }
 0x477   :  { %4241 = vmatprep.subr.bf16.mxu1 %v9238_v8  ;;  %v9322_v8 = vld [vmem:[%s13537_s2 + $0x4c] ss:$16 sps:$4 sm:$0xff]  }
 0x479   :  { %4201 = vmatpush2.bf16.msra.mxu0 %v9233_v59  ;;  %v9317_v59 = vld [vmem:[%s13537_s2 + $0x420] ss:$16 sps:$4 sm:$0xff]  }
 0x47a   :  { %4242 = vmatpush1.bf16.msra.mxu1 %v9236_v34  ;;  %4202 = vmatprep.subr.bf16.mxu0 %v9241_v29  ;;  %v9320_v34 = vld [vmem:[%s13537_s2 + $0x48] ss:$16 sps:$4 sm:$0xff]   ;;  %v9325_v29 = vld [vmem:[%s13537_s2 + $0x404] ss:$16 sps:$4 sm:$0xff]  }
 0x47b   :  { %4243 = vmatprep.subr.bf16.mxu1 %v9244_v61  ;;  %v9328_v61 = vld [vmem:[%s13537_s2 + $0x2c] ss:$16 sps:$4 sm:$0xff]  }
 0x47d   :  { %4203 = vmatpush2.bf16.msra.mxu0 %v9239_v46  ;;  %v9323_v46 = vld [vmem:[%s13537_s2 + $0x400] ss:$16 sps:$4 sm:$0xff]  }
 0x47e   :  { %4244 = vmatpush2.bf16.msra.mxu1 %v9242_v41  ;;  %4204 = vmatprep.subr.bf16.mxu0 %v9247_v52  ;;  %v9326_v41 = vld [vmem:[%s13537_s2 + $0x28] ss:$16 sps:$4 sm:$0xff]   ;;  %v9332_v52 = vld [vmem:[%s13537_s2 + $0x2ec] ss:$16 sps:$4 sm:$0xff]  }
 0x47f   :  { %4245 = vmatprep.subr.bf16.mxu1 %v9250_v40  ;;  %v9335_v40 = vld [vmem:[%s13537_s2 + $0xc] ss:$16 sps:$4 sm:$0xff]  }
 0x481   :  { %4205 = vmatpush2.bf16.msra.mxu0 %v9245_v15  ;;  %v1924_v15 = vld [vmem:[#allocation2 + $0x10] sm:$0xf] }
 0x482   :  { %4246 = vmatpush2.bf16.msra.mxu1 %v9248_v6  ;;  %4206 = vmatprep.subr.bf16.mxu0 %v9253_v37  ;;  %v9330_v6 = vld [vmem:[%s13537_s2 + $0x2e8] ss:$16 sps:$4 sm:$0xff]   ;;  %v11985_v37 = vcombine.low %v1924_v15, %v11448_v62  ;;  %v9422_v15 = vld [vmem:[%s13537_s2 + $0x30c] ss:$16 sps:$4 sm:$0xff]  }
 0x483   :  { %4247 = vmatprep.subr.bf16.mxu1 %v9256_v48  ;;  %v9333_v48 = vld [vmem:[%s13537_s2 + $0x8] ss:$16 sps:$4 sm:$0xff]  }
 0x484   :  { %v9336_v62 = vld [vmem:[%s13537_s2 + $0x2c8] ss:$16 sps:$4 sm:$0xff]  }
 0x485   :  { %4207 = vmatpush2.bf16.msra.mxu0 %v9251_v45  ;;  %v9338_v45 = vld [vmem:[%s13537_s2 + $0x2cc] ss:$16 sps:$4 sm:$0xff]  }
 0x486   :  { %4248 = vmatpush2.bf16.msra.mxu1 %v9254_v0  ;;  %4208 = vmatprep.subr.bf16.mxu0 %v9259_v55  ;;  %v9341_v0 = vld [vmem:[%s13537_s2 + $0x1ec] ss:$16 sps:$4 sm:$0xff]   ;;  %v9339_v55 = vld [vmem:[%s13537_s2 + $0x1e8] ss:$16 sps:$4 sm:$0xff]  }
 0x487   :  { %4249 = vmatprep.subr.bf16.mxu1 %v9262_v39  ;;  %v9344_v39 = vld [vmem:[%s13537_s2 + $0x2ac] ss:$16 sps:$4 sm:$0xff]  }
 0x489   :  { %4209 = vmatpush2.bf16.msra.mxu0 %v9257_v19  ;;  %v9347_v19 = vld [vmem:[%s13537_s2 + $0x1cc] ss:$16 sps:$4 sm:$0xff]  }
 0x48a   :  { %4250 = vmatpush2.bf16.msra.mxu1 %v9260_v31  ;;  %4210 = vmatprep.subr.bf16.mxu0 %v9265_v57  ;;  %v9345_v31 = vld [vmem:[%s13537_s2 + $0x1c8] ss:$16 sps:$4 sm:$0xff]   ;;  %v9350_v57 = vld [vmem:[%s13537_s2 + $0x28c] ss:$16 sps:$4 sm:$0xff]  }
 0x48b   :  { %4251 = vmatprep.subr.bf16.mxu1 %v9268_v11  ;;  %v9353_v11 = vld [vmem:[%s13537_s2 + $0x1ac] ss:$16 sps:$4 sm:$0xff]  }
 0x48d   :  { %4211 = vmatpush2.bf16.msra.mxu0 %v9263_v17  ;;  %v9348_v17 = vld [vmem:[%s13537_s2 + $0x288] ss:$16 sps:$4 sm:$0xff]  }
 0x48e   :  { %4252 = vmatpush2.bf16.msra.mxu1 %v9266_v32  ;;  %4212 = vmatprep.subr.bf16.mxu0 %v9271_v47  ;;  %v9351_v32 = vld [vmem:[%s13537_s2 + $0x1a8] ss:$16 sps:$4 sm:$0xff]   ;;  %v9356_v47 = vld [vmem:[%s13537_s2 + $0x26c] ss:$16 sps:$4 sm:$0xff]  }
 0x48f   :  { %4253 = vmatprep.subr.bf16.mxu1 %v9274_v30  ;;  %v9359_v30 = vld [vmem:[%s13537_s2 + $0x18c] ss:$16 sps:$4 sm:$0xff]  }
 0x491   :  { %4213 = vmatpush2.bf16.msra.mxu0 %v9269_v24  ;;  %v9354_v24 = vld [vmem:[%s13537_s2 + $0x268] ss:$16 sps:$4 sm:$0xff]  }
 0x492   :  { %4254 = vmatpush2.bf16.msra.mxu1 %v9272_v14  ;;  %4214 = vmatprep.subr.bf16.mxu0 %v9277_v4  ;;  %v9357_v14 = vld [vmem:[%s13537_s2 + $0x188] ss:$16 sps:$4 sm:$0xff]   ;;  %v9362_v4 = vld [vmem:[%s13537_s2 + $0x24c] ss:$16 sps:$4 sm:$0xff]  }
 0x493   :  { %4255 = vmatprep.subr.bf16.mxu1 %v9280_v50  ;;  %v9365_v50 = vld [vmem:[%s13537_s2 + $0x16c] ss:$16 sps:$4 sm:$0xff]  }
 0x495   :  { %4215 = vmatpush2.bf16.msra.mxu0 %v9275_v23  ;;  %v9360_v23 = vld [vmem:[%s13537_s2 + $0x248] ss:$16 sps:$4 sm:$0xff]  }
 0x496   :  { %4256 = vmatpush2.bf16.msra.mxu1 %v9278_v13  ;;  %4270 = vmatprep.subr.bf16.mxu0 %v9283_v27  ;;  %v9363_v13 = vld [vmem:[%s13537_s2 + $0x168] ss:$16 sps:$4 sm:$0xff]   ;;  %v9368_v27 = vld [vmem:[%s13537_s2 + $0x22c] ss:$16 sps:$4 sm:$0xff]  }
 0x497   :  { %4257 = vmatprep.subr.bf16.mxu1 %v9286_v35  ;;  %v9371_v35 = vld [vmem:[%s13537_s2 + $0x14c] ss:$16 sps:$4 sm:$0xff]  }
 0x498   :  { %4217 = vmatmul.mubr.bf16.vlgmr.msra.gmra.mxu0 %v11878_v36 }
 0x499   :  { %4271 = vmatpush1.bf16.msra.mxu0 %v9281_v2  ;;  %4302 = vmatprep.mubr.bf16.mxu0 %v11371_v1  ;;  %v9366_v2 = vld [vmem:[%s13537_s2 + $0x228] ss:$16 sps:$4 sm:$0xff]  }
 0x49a   :  { %4258 = vmatpush2.bf16.msra.mxu1 %v9284_v33  ;;  %4272 = vmatprep.subr.bf16.mxu0 %v9289_v60  ;;  %v9369_v33 = vld [vmem:[%s13537_s2 + $0x148] ss:$16 sps:$4 sm:$0xff]   ;;  %v9374_v60 = vld [vmem:[%s13537_s2 + $0x20c] ss:$16 sps:$4 sm:$0xff]  }
 0x49b   :  { %4313 = vmatprep.subr.bf16.mxu1 %v9292_v51  ;;  %v9377_v51 = vld [vmem:[%s13537_s2 + $0x12c] ss:$16 sps:$4 sm:$0xff]  }
 0x49d   :  { %4260 = vmatmul.mubr.bf16.vlgmr.msra.gmra.mxu1 %v11899_v42  ;;  %4273 = vmatpush1.bf16.msra.mxu0 %v9287_v53  ;;  %v9372_v53 = vld [vmem:[%s13537_s2 + $0x208] ss:$16 sps:$4 sm:$0xff]  }
 0x49e   :  { %4314 = vmatpush1.bf16.msra.mxu1 %v9290_v22  ;;  %4345 = vmatprep.mubr.bf16.mxu1 %v11678_v54  ;;  %v9302_v54 = vld [vmem:[%s13537_s2 + $0xa8] ss:$16 sps:$4 sm:$0xff]  }
 0x49f   :  { %4274 = vmatprep.subr.bf16.mxu0 %v9295_v20  ;;  %4315 = vmatprep.subr.bf16.mxu1 %v9298_v3  ;;  %v9375_v22 = vld [vmem:[%s13537_s2 + $0x128] ss:$16 sps:$4 sm:$0xff]   ;;  %v9380_v20 = vld [vmem:[%s13537_s2 + $0x3ec] ss:$16 sps:$4 sm:$0xff]  }
 0x4a0   :  { %v9383_v3 = vld [vmem:[%s13537_s2 + $0x10c] ss:$16 sps:$4 sm:$0xff]  }
 0x4a1   :  { %4275 = vmatpush1.bf16.msra.mxu0 %v9293_v21  ;;  %v9378_v21 = vld [vmem:[%s13537_s2 + $0x3e8] ss:$16 sps:$4 sm:$0xff]  }
 0x4a2   :  { %4316 = vmatpush1.bf16.msra.mxu1 %v9296_v49  ;;  %4276 = vmatprep.subr.bf16.mxu0 %v9301_v56  ;;  %v9381_v49 = vld [vmem:[%s13537_s2 + $0x108] ss:$16 sps:$4 sm:$0xff]   ;;  %v9386_v56 = vld [vmem:[%s13537_s2 + $0x3cc] ss:$16 sps:$4 sm:$0xff]  }
 0x4a3   :  { %4317 = vmatprep.subr.bf16.mxu1 %v9304_v44  ;;  %v9389_v44 = vld [vmem:[%s13537_s2 + $0x4ec] ss:$16 sps:$4 sm:$0xff]  }
 0x4a5   :  { %4277 = vmatpush1.bf16.msra.mxu0 %v9299_v9  ;;  %v9384_v9 = vld [vmem:[%s13537_s2 + $0x3c8] ss:$16 sps:$4 sm:$0xff]  }
 0x4a6   :  { %4318 = vmatpush1.bf16.msra.mxu1 %v9302_v54  ;;  %4278 = vmatprep.subr.bf16.mxu0 %v9307_v28  ;;  %v9387_v54 = vld [vmem:[%s13537_s2 + $0x4e8] ss:$16 sps:$4 sm:$0xff]   ;;  %v9392_v28 = vld [vmem:[%s13537_s2 + $0x3ac] ss:$16 sps:$4 sm:$0xff]  }
 0x4a7   :  { %4319 = vmatprep.subr.bf16.mxu1 %v9310_v16  ;;  %v9395_v16 = vld [vmem:[%s13537_s2 + $0x4cc] ss:$16 sps:$4 sm:$0xff]  }
 0x4a9   :  { %4279 = vmatpush1.bf16.msra.mxu0 %v9305_v38  ;;  %v9390_v38 = vld [vmem:[%s13537_s2 + $0x3a8] ss:$16 sps:$4 sm:$0xff]  }
 0x4aa   :  { %4320 = vmatpush1.bf16.msra.mxu1 %v9308_v10  ;;  %4280 = vmatprep.subr.bf16.mxu0 %v9313_v58  ;;  %v9393_v10 = vld [vmem:[%s13537_s2 + $0x4c8] ss:$16 sps:$4 sm:$0xff]   ;;  %v9398_v58 = vld [vmem:[%s13537_s2 + $0x38c] ss:$16 sps:$4 sm:$0xff]  }
 0x4ab   :  { %4321 = vmatprep.subr.bf16.mxu1 %v9316_v63  ;;  %v9396_v63 = vld [vmem:[%s13537_s2 + $0x388] ss:$16 sps:$4 sm:$0xff]  }
 0x4ad   :  { %4281 = vmatpush1.bf16.msra.mxu0 %v9311_v7  ;;  %v9399_v7 = vld [vmem:[%s13537_s2 + $0x4a8] ss:$16 sps:$4 sm:$0xff]  }
 0x4ae   :  { %4322 = vmatpush1.bf16.msra.mxu1 %v9314_v43  ;;  %4282 = vmatprep.subr.bf16.mxu0 %v9319_v25  ;;  %v9404_v43 = vld [vmem:[%s13537_s2 + $0x36c] ss:$16 sps:$4 sm:$0xff]   ;;  %v9402_v25 = vld [vmem:[%s13537_s2 + $0x368] ss:$16 sps:$4 sm:$0xff]  }
 0x4af   :  { %4323 = vmatprep.subr.bf16.mxu1 %v9322_v8  ;;  %v9405_v8 = vld [vmem:[%s13537_s2 + $0x488] ss:$16 sps:$4 sm:$0xff]  }
 0x4b1   :  { %4283 = vmatpush1.bf16.msra.mxu0 %v9317_v59  ;;  %v9410_v59 = vld [vmem:[%s13537_s2 + $0x34c] ss:$16 sps:$4 sm:$0xff]  }
 0x4b2   :  { %4324 = vmatpush1.bf16.msra.mxu1 %v9320_v34  ;;  %4284 = vmatprep.subr.bf16.mxu0 %v9325_v29  ;;  %v9413_v34 = vld [vmem:[%s13537_s2 + $0x46c] ss:$16 sps:$4 sm:$0xff]   ;;  %v9408_v29 = vld [vmem:[%s13537_s2 + $0x348] ss:$16 sps:$4 sm:$0xff]  }
 0x4b3   :  { %4325 = vmatprep.subr.bf16.mxu1 %v9328_v61  ;;  %v9411_v61 = vld [vmem:[%s13537_s2 + $0x468] ss:$16 sps:$4 sm:$0xff]  }
 0x4b5   :  { %4285 = vmatpush1.bf16.msra.mxu0 %v9323_v46  ;;  %v9416_v46 = vld [vmem:[%s13537_s2 + $0x32c] ss:$16 sps:$4 sm:$0xff]  }
 0x4b6   :  { %4326 = vmatpush1.bf16.msra.mxu1 %v9326_v41  ;;  %4356 = vmatprep.subr.bf16.mxu0 %v9332_v52  ;;  %v9419_v41 = vld [vmem:[%s13537_s2 + $0x44c] ss:$16 sps:$4 sm:$0xff]   ;;  %v9414_v52 = vld [vmem:[%s13537_s2 + $0x328] ss:$16 sps:$4 sm:$0xff]  }
 0x4b7   :  { %4327 = vmatprep.subr.bf16.mxu1 %v9335_v40  ;;  %v9417_v40 = vld [vmem:[%s13537_s2 + $0x448] ss:$16 sps:$4 sm:$0xff]  }
 0x4b8   :  { %4303 = vmatmul.mubr.bf16.vlgmr.msra.gmra.mxu0 %v11985_v37 }
 0x4b9   :  { %4357 = vmatpush1.bf16.msra.mxu0 %v9330_v6  ;;  %4388 = vmatprep.mubr.bf16.mxu0 %v11701_v5  ;;  %v9342_v5 = vld [vmem:[%s13537_s2 + $0x2a8] ss:$16 sps:$4 sm:$0xff]   ;;  %v9425_v6 = vld [vmem:[%s13537_s2 + $0x42c] ss:$16 sps:$4 sm:$0xff]  }
 0x4ba   :  { %4328 = vmatpush1.bf16.msra.mxu1 %v9333_v48  ;;  %4358 = vmatprep.subr.bf16.mxu0 %v9338_v45  ;;  %v12168_v48 = vld [vmem:[#allocation2] sm:$0xcc]  ;;  %v12170_v45 = vld [vmem:[#allocation2 + $0x28] sm:$0x33] }
 0x4bb   :  { %4329 = vmatprep.subr.bf16.mxu1 %v9341_v0  ;;  %v12172_v0 = vld [vmem:[#allocation2 + $0x14] sm:$0xff] }
 0x4bd   :  { %4359 = vmatpush1.bf16.msra.mxu0 %v9336_v62  ;;  %v8305_v62 = vcombine.high %v12168_v48, %v12172_v0 }
 0x4be   :  { %4330 = vmatpush2.bf16.msra.mxu1 %v9339_v55  ;;  %4360 = vmatprep.subr.bf16.mxu0 %v9344_v39  ;;  %v9420_v55 = vld [vmem:[%s13537_s2 + $0x308] ss:$16 sps:$4 sm:$0xff]  }
 0x4bf   :  { %4331 = vmatprep.subr.bf16.mxu1 %v9347_v19  ;;  %v9423_v39 = vld [vmem:[%s13537_s2 + $0x428] ss:$16 sps:$4 sm:$0xff]   ;;  %v9428_v19 = vld [vmem:[%s13537_s2 + $0xae4] ss:$16 sps:$4 sm:$0xff]  }
 0x4c1   :  { %4361 = vmatpush1.bf16.msra.mxu0 %v9342_v5  ;;  %v8310_v5 = vcombine.high %v12170_v45, %v12170_v45 }
 0x4c2   :  { %4332 = vmatpush2.bf16.msra.mxu1 %v9345_v31  ;;  %4362 = vmatprep.subr.bf16.mxu0 %v9350_v57  ;;  %v12187_v31 = vld [vmem:[#allocation2 + $0x30] sm:$0x33]  ;;  %v9431_v57 = vld [vmem:[%s13537_s2 + $0x40c] ss:$16 sps:$4 sm:$0xff]  }
 0x4c3   :  { %4333 = vmatprep.subr.bf16.mxu1 %v9353_v11  ;;  %v4637_v11 = vrot.slane %v8305_v62, 2  ;;  %v9492_v62 = vld [vmem:[%s13537_s2 + $0xdc0] ss:$16 sps:$4 sm:$0xff]  }
 0x4c5   :  { %4363 = vmatpush1.bf16.msra.mxu0 %v9348_v17  ;;  %v12192_v17 = vld [vmem:[#allocation2 + $0x8] sm:$0xcc] }
 0x4c6   :  { %4334 = vmatpush2.bf16.msra.mxu1 %v9351_v32  ;;  %4364 = vmatprep.subr.bf16.mxu0 %v9356_v47  ;;  %v9426_v32 = vld [vmem:[%s13537_s2 + $0xae0] ss:$16 sps:$4 sm:$0xff]   ;;  %v8312_v47 = vcombine.high %v12187_v31, %v12187_v31 }
 0x4c7   :  { %4335 = vmatprep.subr.bf16.mxu1 %v9359_v30  ;;  %v9429_v30 = vld [vmem:[%s13537_s2 + $0x408] ss:$16 sps:$4 sm:$0xff]  }
 0x4c9   :  { %4365 = vmatpush1.bf16.msra.mxu0 %v9354_v24  ;;  %v4638_v24 = vrot.slane %v8310_v5, 2  ;;  %v9498_v5 = vld [vmem:[%s13537_s2 + $0xda0] ss:$16 sps:$4 sm:$0xff]  }
 0x4ca   :  { %4336 = vmatpush2.bf16.msra.mxu1 %v9357_v14  ;;  %4366 = vmatprep.subr.bf16.mxu0 %v9362_v4  ;;  %v9436_v14 = vld [vmem:[%s13537_s2 + $0xac4] ss:$16 sps:$4 sm:$0xff]  }
 0x4cb   :  { %4337 = vmatprep.subr.bf16.mxu1 %v9365_v50  ;;  %v9439_v4 = vld [vmem:[%s13537_s2 + $0xce4] ss:$16 sps:$4 sm:$0xff]   ;;  %v12208_v50 = vld [vmem:[#allocation2 + $0x1c] sm:$0xff] }
 0x4cd   :  { %4367 = vmatpush1.bf16.msra.mxu0 %v9360_v23  ;;  %v8307_v23 = vcombine.high %v12192_v17, %v12208_v50 }
 0x4ce   :  { %4338 = vmatpush2.bf16.msra.mxu1 %v9363_v13  ;;  %4368 = vmatprep.subr.bf16.mxu0 %v9368_v27  ;;  %v12214_v13 = vsel %vm744_vm3, %v4637_v11, %v4638_v24  ;;  %v9434_v27 = vld [vmem:[%s13537_s2 + $0xac0] ss:$16 sps:$4 sm:$0xff]   ;;  %v9506_v11 = vld [vmem:[%s13537_s2 + $0xd84] ss:$16 sps:$4 sm:$0xff]  }
 0x4cf   :  { %4339 = vmatprep.subr.bf16.mxu1 %v9371_v35  ;;  %v4644_v35 = vrot.slane %v8312_v47, 2  ;;  %v9504_v47 = vld [vmem:[%s13537_s2 + $0xd80] ss:$16 sps:$4 sm:$0xff]   ;;  %v9512_v24 = vld [vmem:[%s13537_s2 + $0xd64] ss:$16 sps:$4 sm:$0xff]  }
 0x4d1   :  { %4369 = vmatpush1.bf16.msra.mxu0 %v9366_v2  ;;  %v9437_v2 = vld [vmem:[%s13537_s2 + $0xce0] ss:$16 sps:$4 sm:$0xff]  }
 0x4d2   :  { %4340 = vmatpush2.bf16.msra.mxu1 %v9369_v33  ;;  %4370 = vmatprep.subr.bf16.mxu0 %v9374_v60  ;;  %v4643_v33 = vrot.slane %v8307_v23, 2  ;;  %v9446_v60 = vld [vmem:[%s13537_s2 + $0xcc4] ss:$16 sps:$4 sm:$0xff]  }
 0x4d3   :  { %4341 = vmatprep.subr.bf16.mxu1 %v9377_v51  ;;  %v9515_v23 = vld [vmem:[%s13537_s2 + $0xb24] ss:$16 sps:$4 sm:$0xff]  }
 0x4d4   :  { %v12231_v51 = vsel %vm744_vm3, %v4643_v33, %v4644_v35  ;;  %v9513_v35 = vld [vmem:[%s13537_s2 + $0xb20] ss:$16 sps:$4 sm:$0xff]   ;;  %v9521_v33 = vld [vmem:[%s13537_s2 + $0xb04] ss:$16 sps:$4 sm:$0xff]  }
 0x4d5   :  { %4371 = vmatpush1.bf16.msra.mxu0 %v9372_v53  ;;  %v9441_v53 = vld [vmem:[%s13537_s2 + $0xaa0] ss:$16 sps:$4 sm:$0xff]  }
 0x4d6   :  { %4342 = vmatpush2.bf16.msra.mxu1 %v9375_v22  ;;  %4372 = vmatprep.subr.bf16.mxu0 %v9380_v20  ;;  %v9444_v22 = vld [vmem:[%s13537_s2 + $0xcc0] ss:$16 sps:$4 sm:$0xff]   ;;  %v9449_v20 = vld [vmem:[%s13537_s2 + $0xa84] ss:$16 sps:$4 sm:$0xff]  }
 0x4d7   :  { %4343 = vmatprep.subr.bf16.mxu1 %v9383_v3  ;;  %v9447_v3 = vld [vmem:[%s13537_s2 + $0xa80] ss:$16 sps:$4 sm:$0xff]  }
 0x4d9   :  { %4373 = vmatpush2.bf16.msra.mxu0 %v9378_v21  ;;  %v9450_v21 = vld [vmem:[%s13537_s2 + $0xca0] ss:$16 sps:$4 sm:$0xff]  }
 0x4da   :  { %4344 = vmatpush2.bf16.msra.mxu1 %v9381_v49  ;;  %4374 = vmatprep.subr.bf16.mxu0 %v9386_v56  ;;  %v9455_v49 = vld [vmem:[%s13537_s2 + $0xa64] ss:$16 sps:$4 sm:$0xff]  }
 0x4db   :  { %4399 = vmatprep.subr.bf16.mxu1 %v9389_v44  ;;  %v9458_v56 = vld [vmem:[%s13537_s2 + $0xc84] ss:$16 sps:$4 sm:$0xff]   ;;  %v9453_v44 = vld [vmem:[%s13537_s2 + $0xa60] ss:$16 sps:$4 sm:$0xff]  }
 0x4dd   :  { %4346 = vmatmul.mubr.bf16.vlgmr.msra.gmra.mxu1 %v11878_v36  ;;  %4375 = vmatpush2.bf16.msra.mxu0 %v9384_v9  ;;  %v9401_v36 = vld [vmem:[%s13537_s2 + $0x4ac] ss:$16 sps:$4 sm:$0xff]   ;;  %v9456_v9 = vld [vmem:[%s13537_s2 + $0xc80] ss:$16 sps:$4 sm:$0xff]  }
 0x4de   :  { %4400 = vmatpush1.bf16.msra.mxu1 %v9387_v54  ;;  %4376 = vmatprep.subr.bf16.mxu0 %v9392_v28  ;;  %v9461_v54 = vld [vmem:[%s13537_s2 + $0xa44] ss:$16 sps:$4 sm:$0xff]  }
 0x4df   :  { %4401 = vmatprep.subr.bf16.mxu1 %v9395_v16  ;;  %4431 = vmatprep.mubr.bf16.mxu1 %v11371_v1  ;;  %v9407_v1 = vld [vmem:[%s13537_s2 + $0x48c] ss:$16 sps:$4 sm:$0xff]   ;;  %v9464_v28 = vld [vmem:[%s13537_s2 + $0xc64] ss:$16 sps:$4 sm:$0xff]   ;;  %v9459_v16 = vld [vmem:[%s13537_s2 + $0xa40] ss:$16 sps:$4 sm:$0xff]  }
 0x4e1   :  { %4377 = vmatpush2.bf16.msra.mxu0 %v9390_v38  ;;  %v9462_v38 = vld [vmem:[%s13537_s2 + $0xc60] ss:$16 sps:$4 sm:$0xff]  }
 0x4e2   :  { %4402 = vmatpush1.bf16.msra.mxu1 %v9393_v10  ;;  %4378 = vmatprep.subr.bf16.mxu0 %v9398_v58  ;;  %v9467_v10 = vld [vmem:[%s13537_s2 + $0xa24] ss:$16 sps:$4 sm:$0xff]  }
 0x4e3   :  { %4403 = vmatprep.subr.bf16.mxu1 %v9401_v36  ;;  %v9470_v58 = vld [vmem:[%s13537_s2 + $0xc44] ss:$16 sps:$4 sm:$0xff]   ;;  %v9465_v36 = vld [vmem:[%s13537_s2 + $0xa20] ss:$16 sps:$4 sm:$0xff]  }
 0x4e5   :  { %4379 = vmatpush2.bf16.msra.mxu0 %v9396_v63  ;;  %v9468_v63 = vld [vmem:[%s13537_s2 + $0xc40] ss:$16 sps:$4 sm:$0xff]  }
 0x4e6   :  { %4404 = vmatpush1.bf16.msra.mxu1 %v9399_v7  ;;  %4380 = vmatprep.subr.bf16.mxu0 %v9404_v43  ;;  %v9473_v7 = vld [vmem:[%s13537_s2 + $0xa04] ss:$16 sps:$4 sm:$0xff]  }
 0x4e7   :  { %4405 = vmatprep.subr.bf16.mxu1 %v9407_v1  ;;  %v9476_v43 = vld [vmem:[%s13537_s2 + $0xc24] ss:$16 sps:$4 sm:$0xff]   ;;  %v9471_v1 = vld [vmem:[%s13537_s2 + $0xa00] ss:$16 sps:$4 sm:$0xff]  }
 0x4e9   :  { %4381 = vmatpush2.bf16.msra.mxu0 %v9402_v25  ;;  %v9474_v25 = vld [vmem:[%s13537_s2 + $0xc20] ss:$16 sps:$4 sm:$0xff]  }
 0x4ea   :  { %4406 = vmatpush1.bf16.msra.mxu1 %v9405_v8  ;;  %4382 = vmatprep.subr.bf16.mxu0 %v9410_v59  ;;  %v9479_v8 = vld [vmem:[%s13537_s2 + $0xbe4] ss:$16 sps:$4 sm:$0xff]  }
 0x4eb   :  { %4407 = vmatprep.subr.bf16.mxu1 %v9413_v34  ;;  %v9482_v59 = vld [vmem:[%s13537_s2 + $0xc04] ss:$16 sps:$4 sm:$0xff]   ;;  %v9477_v34 = vld [vmem:[%s13537_s2 + $0xbe0] ss:$16 sps:$4 sm:$0xff]  }
 0x4ed   :  { %4383 = vmatpush2.bf16.msra.mxu0 %v9408_v29  ;;  %v9480_v29 = vld [vmem:[%s13537_s2 + $0xc00] ss:$16 sps:$4 sm:$0xff]  }
 0x4ee   :  { %4408 = vmatpush1.bf16.msra.mxu1 %v9411_v61  ;;  %4384 = vmatprep.subr.bf16.mxu0 %v9416_v46  ;;  %v9485_v61 = vld [vmem:[%s13537_s2 + $0xbc4] ss:$16 sps:$4 sm:$0xff]  }
 0x4ef   :  { %4409 = vmatprep.subr.bf16.mxu1 %v9419_v41  ;;  %v9488_v46 = vld [vmem:[%s13537_s2 + $0xde4] ss:$16 sps:$4 sm:$0xff]   ;;  %v9483_v41 = vld [vmem:[%s13537_s2 + $0xbc0] ss:$16 sps:$4 sm:$0xff]  }
 0x4f1   :  { %4385 = vmatpush2.bf16.msra.mxu0 %v9414_v52  ;;  %v9486_v52 = vld [vmem:[%s13537_s2 + $0xde0] ss:$16 sps:$4 sm:$0xff]  }
 0x4f2   :  { %4410 = vmatpush1.bf16.msra.mxu1 %v9417_v40  ;;  %4386 = vmatprep.subr.bf16.mxu0 %v9422_v15  ;;  %v9491_v40 = vld [vmem:[%s13537_s2 + $0xba4] ss:$16 sps:$4 sm:$0xff]  }
 0x4f3   :  { %4411 = vmatprep.subr.bf16.mxu1 %v9425_v6  ;;  %v9494_v15 = vld [vmem:[%s13537_s2 + $0xdc4] ss:$16 sps:$4 sm:$0xff]   ;;  %v9489_v6 = vld [vmem:[%s13537_s2 + $0xba0] ss:$16 sps:$4 sm:$0xff]  }
 0x4f5   :  { %4387 = vmatpush2.bf16.msra.mxu0 %v9420_v55  ;;  %v9497_v55 = vld [vmem:[%s13537_s2 + $0xb84] ss:$16 sps:$4 sm:$0xff]  }
 0x4f6   :  { %4412 = vmatpush1.bf16.msra.mxu1 %v9423_v39  ;;  %5454 = vmatprep.subr.bf16.mxu0 %v9428_v19  ;;  %v9500_v39 = vld [vmem:[%s13537_s2 + $0xda4] ss:$16 sps:$4 sm:$0xff]   ;;  %v9495_v19 = vld [vmem:[%s13537_s2 + $0xb80] ss:$16 sps:$4 sm:$0xff]  }
 0x4f7   :  { %4413 = vmatprep.subr.bf16.mxu1 %v9431_v57  ;;  %v9503_v57 = vld [vmem:[%s13537_s2 + $0xb64] ss:$16 sps:$4 sm:$0xff]  }
 0x4f8   :  { %4389 = vmatmul.mubr.bf16.vlgmr.msra.gmra.mxu0 %v11899_v42  ;;  %v9443_v42 = vld [vmem:[%s13537_s2 + $0xaa4] ss:$16 sps:$4 sm:$0xff]  }
 0x4f9   :  { %5455 = vmatpush1.bf16.msra.mxu0 %v9426_v32  ;;  %5486 = vmatprep.mubr.bf16.mxu0 %v12214_v13  ;;  %v9501_v32 = vld [vmem:[%s13537_s2 + $0xb60] ss:$16 sps:$4 sm:$0xff]  }
 0x4fa   :  { %4414 = vmatpush1.bf16.msra.mxu1 %v9429_v30  ;;  %5456 = vmatprep.subr.bf16.mxu0 %v9436_v14  ;;  %v9509_v30 = vld [vmem:[%s13537_s2 + $0xb44] ss:$16 sps:$4 sm:$0xff]   ;;  %v9507_v14 = vld [vmem:[%s13537_s2 + $0xb40] ss:$16 sps:$4 sm:$0xff]  }
 0x4fb   :  { %5497 = vmatprep.subr.bf16.mxu1 %v9439_v4  ;;  %v9510_v4 = vld [vmem:[%s13537_s2 + $0xd60] ss:$16 sps:$4 sm:$0xff]  }
 0x4fd   :  { %4432 = vmatmul.mubr.bf16.vlgmr.msra.gmra.mxu1 %v11985_v37  ;;  %5457 = vmatpush1.bf16.msra.mxu0 %v9434_v27  ;;  %v9452_v37 = vld [vmem:[%s13537_s2 + $0xca4] ss:$16 sps:$4 sm:$0xff]  }
 0x4fe   :  { %5498 = vmatpush1.bf16.msra.mxu1 %v9437_v2  ;;  %5529 = vmatprep.mubr.bf16.mxu1 %v12231_v51  ;;  %v9518_v27 = vld [vmem:[%s13537_s2 + $0xd44] ss:$16 sps:$4 sm:$0xff]   ;;  %v9516_v2 = vld [vmem:[%s13537_s2 + $0xd40] ss:$16 sps:$4 sm:$0xff]  }
 0x4ff   :  { %5458 = vmatprep.subr.bf16.mxu0 %v9443_v42  ;;  %5499 = vmatprep.subr.bf16.mxu1 %v9446_v60  ;;  %v9524_v42 = vld [vmem:[%s13537_s2 + $0xd24] ss:$16 sps:$4 sm:$0xff]   ;;  %v8304_v60 = vcombine.low %v12168_v48, %v12172_v0 }
 0x500   :  { %v9532_v0 = vld [vmem:[%s13537_s2 + $0xd04] ss:$16 sps:$4 sm:$0xff]  }
 0x501   :  { %5459 = vmatpush1.bf16.msra.mxu0 %v9441_v53  ;;  %v9519_v53 = vld [vmem:[%s13537_s2 + $0xb00] ss:$16 sps:$4 sm:$0xff]   ;;  %v4634_v48 = vrot.slane %v8304_v60, 2  ;;  %v9592_v60 = vld [vmem:[%s13537_s2 + $0xcac] ss:$16 sps:$4 sm:$0xff]  }
 0x502   :  { %5500 = vmatpush1.bf16.msra.mxu1 %v9444_v22  ;;  %5460 = vmatprep.subr.bf16.mxu0 %v9449_v20  ;;  %v8309_v22 = vcombine.low %v12170_v45, %v12170_v45  ;;  %v9522_v20 = vld [vmem:[%s13537_s2 + $0xd20] ss:$16 sps:$4 sm:$0xff]  }
 0x503   :  { %5501 = vmatprep.subr.bf16.mxu1 %v9452_v37  ;;  %v9529_v37 = vld [vmem:[%s13537_s2 + $0xee4] ss:$16 sps:$4 sm:$0xff]  }
 0x504   :  { %v4635_v45 = vrot.slane %v8309_v22, 2  ;;  %v9593_v22 = vld [vmem:[%s13537_s2 + $0xbc8] ss:$16 sps:$4 sm:$0xff]  }
 0x505   :  { %5461 = vmatpush1.bf16.msra.mxu0 %v9447_v3  ;;  %v8311_v3 = vcombine.low %v12187_v31, %v12187_v31 }
 0x506   :  { %5502 = vmatpush1.bf16.msra.mxu1 %v9450_v21  ;;  %5462 = vmatprep.subr.bf16.mxu0 %v9455_v49  ;;  %v9527_v21 = vld [vmem:[%s13537_s2 + $0xee0] ss:$16 sps:$4 sm:$0xff]   ;;  %v12420_v31 = vsel %vm744_vm3, %v4634_v48, %v4635_v45  ;;  %v9596_v48 = vld [vmem:[%s13537_s2 + $0xc88] ss:$16 sps:$4 sm:$0xff]   ;;  %v9607_v45 = vld [vmem:[%s13537_s2 + $0xb8c] ss:$16 sps:$4 sm:$0xff]  }
 0x507   :  { %5503 = vmatprep.subr.bf16.mxu1 %v9458_v56  ;;  %v9530_v49 = vld [vmem:[%s13537_s2 + $0xd00] ss:$16 sps:$4 sm:$0xff]   ;;  %v9535_v56 = vld [vmem:[%s13537_s2 + $0xec4] ss:$16 sps:$4 sm:$0xff]  }
 0x509   :  { %5463 = vmatpush1.bf16.msra.mxu0 %v9453_v44  ;;  %v8306_v44 = vcombine.low %v12192_v17, %v12208_v50  ;;  %v9537_v50 = vld [vmem:[%s13537_s2 + $0xae8] ss:$16 sps:$4 sm:$0xff]  }
 0x50a   :  { %5504 = vmatpush1.bf16.msra.mxu1 %v9456_v9  ;;  %5464 = vmatprep.subr.bf16.mxu0 %v9461_v54  ;;  %v9539_v9 = vld [vmem:[%s13537_s2 + $0xaec] ss:$16 sps:$4 sm:$0xff]   ;;  %v4641_v54 = vrot.slane %v8311_v3, 2 }
 0x50b   :  { %5505 = vmatprep.subr.bf16.mxu1 %v9464_v28  ;;  %v9533_v28 = vld [vmem:[%s13537_s2 + $0xec0] ss:$16 sps:$4 sm:$0xff]   ;;  %v4640_v17 = vrot.slane %v8306_v44, 2  ;;  %v9604_v3 = vld [vmem:[%s13537_s2 + $0xc6c] ss:$16 sps:$4 sm:$0xff]  }
 0x50c   :  { %v9613_v44 = vld [vmem:[%s13537_s2 + $0xb6c] ss:$16 sps:$4 sm:$0xff]  }
 0x50d   :  { %5465 = vmatpush1.bf16.msra.mxu0 %v9459_v16  ;;  %v12429_v16 = vld [vmem:[#allocation3] sm:$0xff] }
 0x50e   :  { %5506 = vmatpush1.bf16.msra.mxu1 %v9462_v38  ;;  %5466 = vmatprep.subr.bf16.mxu0 %v9467_v10  ;;  %v9542_v38 = vld [vmem:[%s13537_s2 + $0xea4] ss:$16 sps:$4 sm:$0xff]   ;;  %v9545_v10 = vld [vmem:[%s13537_s2 + $0xacc] ss:$16 sps:$4 sm:$0xff]  }
 0x50f   :  { %5507 = vmatprep.subr.bf16.mxu1 %v9470_v58  ;;  %v12442_v58 = vsel %vm744_vm3, %v4640_v17, %v4641_v54  ;;  %v9611_v54 = vld [vmem:[%s13537_s2 + $0xb68] ss:$16 sps:$4 sm:$0xff]   ;;  %v9619_v17 = vld [vmem:[%s13537_s2 + $0xb4c] ss:$16 sps:$4 sm:$0xff]  }
 0x511   :  { %5467 = vmatpush1.bf16.msra.mxu0 %v9465_v36  ;;  %v9540_v36 = vld [vmem:[%s13537_s2 + $0xea0] ss:$16 sps:$4 sm:$0xff]  }
 0x512   :  { %5508 = vmatpush1.bf16.msra.mxu1 %v9468_v63  ;;  %5468 = vmatprep.subr.bf16.mxu0 %v9473_v7  ;;  %v9543_v63 = vld [vmem:[%s13537_s2 + $0xac8] ss:$16 sps:$4 sm:$0xff]   ;;  %v9548_v7 = vld [vmem:[%s13537_s2 + $0xe84] ss:$16 sps:$4 sm:$0xff]  }
 0x513   :  { %5509 = vmatprep.subr.bf16.mxu1 %v9476_v43  ;;  %v9551_v43 = vld [vmem:[%s13537_s2 + $0xaac] ss:$16 sps:$4 sm:$0xff]  }
 0x515   :  { %5469 = vmatpush1.bf16.msra.mxu0 %v9471_v1  ;;  %v9546_v1 = vld [vmem:[%s13537_s2 + $0xe80] ss:$16 sps:$4 sm:$0xff]  }
 0x516   :  { %5510 = vmatpush1.bf16.msra.mxu1 %v9474_v25  ;;  %5470 = vmatprep.subr.bf16.mxu0 %v9479_v8  ;;  %v9554_v25 = vld [vmem:[%s13537_s2 + $0xe64] ss:$16 sps:$4 sm:$0xff]   ;;  %v9557_v8 = vld [vmem:[%s13537_s2 + $0xa8c] ss:$16 sps:$4 sm:$0xff]  }
 0x517   :  { %5511 = vmatprep.subr.bf16.mxu1 %v9482_v59  ;;  %v9552_v59 = vld [vmem:[%s13537_s2 + $0xe60] ss:$16 sps:$4 sm:$0xff]  }
 0x519   :  { %5471 = vmatpush2.bf16.msra.mxu0 %v9477_v34  ;;  %v9555_v34 = vld [vmem:[%s13537_s2 + $0xa88] ss:$16 sps:$4 sm:$0xff]  }
 0x51a   :  { %5512 = vmatpush1.bf16.msra.mxu1 %v9480_v29  ;;  %5472 = vmatprep.subr.bf16.mxu0 %v9485_v61  ;;  %v9560_v29 = vld [vmem:[%s13537_s2 + $0xe44] ss:$16 sps:$4 sm:$0xff]   ;;  %v9563_v61 = vld [vmem:[%s13537_s2 + $0xa6c] ss:$16 sps:$4 sm:$0xff]  }
 0x51b   :  { %5513 = vmatprep.subr.bf16.mxu1 %v9488_v46  ;;  %v9558_v46 = vld [vmem:[%s13537_s2 + $0xe40] ss:$16 sps:$4 sm:$0xff]  }
 0x51d   :  { %5473 = vmatpush2.bf16.msra.mxu0 %v9483_v41  ;;  %v9561_v41 = vld [vmem:[%s13537_s2 + $0xa68] ss:$16 sps:$4 sm:$0xff]  }
 0x51e   :  { %5514 = vmatpush2.bf16.msra.mxu1 %v9486_v52  ;;  %5474 = vmatprep.subr.bf16.mxu0 %v9491_v40  ;;  %v9566_v52 = vld [vmem:[%s13537_s2 + $0xe24] ss:$16 sps:$4 sm:$0xff]   ;;  %v9569_v40 = vld [vmem:[%s13537_s2 + $0xa4c] ss:$16 sps:$4 sm:$0xff]  }
 0x51f   :  { %5515 = vmatprep.subr.bf16.mxu1 %v9494_v15  ;;  %v9564_v15 = vld [vmem:[%s13537_s2 + $0xe20] ss:$16 sps:$4 sm:$0xff]  }
 0x521   :  { %5475 = vmatpush2.bf16.msra.mxu0 %v9489_v6  ;;  %v9567_v6 = vld [vmem:[%s13537_s2 + $0xa48] ss:$16 sps:$4 sm:$0xff]  }
 0x522   :  { %5516 = vmatpush2.bf16.msra.mxu1 %v9492_v62  ;;  %5476 = vmatprep.subr.bf16.mxu0 %v9497_v55  ;;  %v9572_v62 = vld [vmem:[%s13537_s2 + $0xe04] ss:$16 sps:$4 sm:$0xff]   ;;  %v9575_v55 = vld [vmem:[%s13537_s2 + $0xa2c] ss:$16 sps:$4 sm:$0xff]  }
 0x523   :  { %5517 = vmatprep.subr.bf16.mxu1 %v9500_v39  ;;  %v9577_v39 = vld [vmem:[#allocation2 + $0x38] ss:$0 sps:$4 sm:$0x33]  }
 0x525   :  { %5477 = vmatpush2.bf16.msra.mxu0 %v9495_v19  ;;  %v4444_v19 = vld [vmem:[#allocation2 + $0x10] sm:$0xc] }
 0x526   :  { %5518 = vmatpush2.bf16.msra.mxu1 %v9498_v5  ;;  %5478 = vmatprep.subr.bf16.mxu0 %v9503_v57  ;;  %v9570_v5 = vld [vmem:[%s13537_s2 + $0xe00] ss:$16 sps:$4 sm:$0xff]   ;;  %v9970_v57 = vld [vmem:[#allocation2 + $0x24] sm:$0xf] }
 0x527   :  { %5519 = vmatprep.subr.bf16.mxu1 %v9506_v11  ;;  %v8308_v11 = vcombine.low %v4444_v19, %v9970_v57  ;;  %v9653_v19 = vld [vmem:[%s13537_s2 + $0xe88] ss:$16 sps:$4 sm:$0xff]   ;;  %v9661_v57 = vld [vmem:[%s13537_s2 + $0xe6c] ss:$16 sps:$4 sm:$0xff]  }
 0x529   :  { %5479 = vmatpush2.bf16.msra.mxu0 %v9501_v32  ;;  %v9573_v32 = vld [vmem:[%s13537_s2 + $0xa28] ss:$16 sps:$4 sm:$0xff]  }
 0x52a   :  { %5520 = vmatpush2.bf16.msra.mxu1 %v9504_v47  ;;  %5480 = vmatprep.subr.bf16.mxu0 %v9509_v30  ;;  %v9580_v47 = vld [vmem:[%s13537_s2 + $0xcec] ss:$16 sps:$4 sm:$0xff]   ;;  %v4647_v30 = vrot.slane %v9577_v39, 2  ;;  %v9650_v39 = vld [vmem:[%s13537_s2 + $0xd68] ss:$16 sps:$4 sm:$0xff]  }
 0x52b   :  { %5521 = vmatprep.subr.bf16.mxu1 %v9512_v24  ;;  %v9583_v24 = vld [vmem:[%s13537_s2 + $0xa0c] ss:$16 sps:$4 sm:$0xff]  }
 0x52d   :  { %5481 = vmatpush2.bf16.msra.mxu0 %v9507_v14  ;;  %v4646_v14 = vrot.slane %v8308_v11, 2  ;;  %v9656_v11 = vld [vmem:[%s13537_s2 + $0xd48] ss:$16 sps:$4 sm:$0xff]  }
 0x52e   :  { %5522 = vmatpush2.bf16.msra.mxu1 %v9510_v4  ;;  %5482 = vmatprep.subr.bf16.mxu0 %v9515_v23  ;;  %v9578_v4 = vld [vmem:[%s13537_s2 + $0xce8] ss:$16 sps:$4 sm:$0xff]  }
 0x52f   :  { %5523 = vmatprep.subr.bf16.mxu1 %v9518_v27  ;;  %v9581_v23 = vld [vmem:[%s13537_s2 + $0xa08] ss:$16 sps:$4 sm:$0xff]   ;;  %v9586_v27 = vld [vmem:[%s13537_s2 + $0xccc] ss:$16 sps:$4 sm:$0xff]  }
 0x531   :  { %5483 = vmatpush2.bf16.msra.mxu0 %v9513_v35  ;;  %v12528_v35 = vsel %vm744_vm3, %v4646_v14, %v4647_v30  ;;  %v9667_v30 = vld [vmem:[%s13537_s2 + $0xe4c] ss:$16 sps:$4 sm:$0xff]   ;;  %v9665_v14 = vld [vmem:[%s13537_s2 + $0xe48] ss:$16 sps:$4 sm:$0xff]  }
 0x532   :  { %5524 = vmatpush2.bf16.msra.mxu1 %v9516_v2  ;;  %5484 = vmatprep.subr.bf16.mxu0 %v9521_v33  ;;  %v9589_v2 = vld [vmem:[%s13537_s2 + $0xbec] ss:$16 sps:$4 sm:$0xff]   ;;  %v9584_v33 = vld [vmem:[%s13537_s2 + $0xcc8] ss:$16 sps:$4 sm:$0xff]  }
 0x533   :  { %5525 = vmatprep.subr.bf16.mxu1 %v9524_v42  ;;  %v9587_v42 = vld [vmem:[%s13537_s2 + $0xbe8] ss:$16 sps:$4 sm:$0xff]  }
 0x535   :  { %5485 = vmatpush2.bf16.msra.mxu0 %v9519_v53  ;;  %v9595_v53 = vld [vmem:[%s13537_s2 + $0xbcc] ss:$16 sps:$4 sm:$0xff]  }
 0x536   :  { %5526 = vmatpush2.bf16.msra.mxu1 %v9522_v20  ;;  %5540 = vmatprep.subr.bf16.mxu0 %v9529_v37  ;;  %v9598_v20 = vld [vmem:[%s13537_s2 + $0xc8c] ss:$16 sps:$4 sm:$0xff]  }
 0x537   :  { %5527 = vmatprep.subr.bf16.mxu1 %v9532_v0  ;;  %v9601_v37 = vld [vmem:[%s13537_s2 + $0xbac] ss:$16 sps:$4 sm:$0xff]   ;;  %v9599_v0 = vld [vmem:[%s13537_s2 + $0xba8] ss:$16 sps:$4 sm:$0xff]  }
 0x538   :  { %5487 = vmatmul.mubr.bf16.vlgmr.msra.gmra.mxu0 %v12420_v31 }
 0x539   :  { %5541 = vmatpush1.bf16.msra.mxu0 %v9527_v21  ;;  %5572 = vmatprep.mubr.bf16.mxu0 %v12429_v16  ;;  %v9602_v21 = vld [vmem:[%s13537_s2 + $0xc68] ss:$16 sps:$4 sm:$0xff]  }
 0x53a   :  { %5528 = vmatpush2.bf16.msra.mxu1 %v9530_v49  ;;  %5542 = vmatprep.subr.bf16.mxu0 %v9535_v56  ;;  %v9605_v49 = vld [vmem:[%s13537_s2 + $0xb88] ss:$16 sps:$4 sm:$0xff]   ;;  %v9610_v56 = vld [vmem:[%s13537_s2 + $0xc4c] ss:$16 sps:$4 sm:$0xff]  }
 0x53b   :  { %5583 = vmatprep.subr.bf16.mxu1 %v9539_v9  ;;  %v9608_v9 = vld [vmem:[%s13537_s2 + $0xc48] ss:$16 sps:$4 sm:$0xff]  }
 0x53d   :  { %5530 = vmatmul.mubr.bf16.vlgmr.msra.gmra.mxu1 %v12442_v58  ;;  %5543 = vmatpush1.bf16.msra.mxu0 %v9533_v28  ;;  %v9616_v28 = vld [vmem:[%s13537_s2 + $0xc2c] ss:$16 sps:$4 sm:$0xff]  }
 0x53e   :  { %5584 = vmatpush1.bf16.msra.mxu1 %v9537_v50  ;;  %5615 = vmatprep.mubr.bf16.mxu1 %v12214_v13  ;;  %v9549_v13 = vld [vmem:[%s13537_s2 + $0xaa8] ss:$16 sps:$4 sm:$0xff]  }
 0x53f   :  { %5544 = vmatprep.subr.bf16.mxu0 %v9542_v38  ;;  %5585 = vmatprep.subr.bf16.mxu1 %v9545_v10  ;;  %v9614_v50 = vld [vmem:[%s13537_s2 + $0xc28] ss:$16 sps:$4 sm:$0xff]   ;;  %v9622_v10 = vld [vmem:[%s13537_s2 + $0xc0c] ss:$16 sps:$4 sm:$0xff]  }
 0x540   :  { %v9617_v38 = vld [vmem:[%s13537_s2 + $0xb48] ss:$16 sps:$4 sm:$0xff]  }
 0x541   :  { %5545 = vmatpush1.bf16.msra.mxu0 %v9540_v36  ;;  %v9625_v36 = vld [vmem:[%s13537_s2 + $0xb2c] ss:$16 sps:$4 sm:$0xff]  }
 0x542   :  { %5586 = vmatpush1.bf16.msra.mxu1 %v9543_v63  ;;  %5546 = vmatprep.subr.bf16.mxu0 %v9548_v7  ;;  %v9620_v63 = vld [vmem:[%s13537_s2 + $0xc08] ss:$16 sps:$4 sm:$0xff]  }
 0x543   :  { %5587 = vmatprep.subr.bf16.mxu1 %v9551_v43  ;;  %v9623_v7 = vld [vmem:[%s13537_s2 + $0xb28] ss:$16 sps:$4 sm:$0xff]   ;;  %v9628_v43 = vld [vmem:[%s13537_s2 + $0xdec] ss:$16 sps:$4 sm:$0xff]  }
 0x545   :  { %5547 = vmatpush1.bf16.msra.mxu0 %v9546_v1  ;;  %v9631_v1 = vld [vmem:[%s13537_s2 + $0xb0c] ss:$16 sps:$4 sm:$0xff]  }
 0x546   :  { %5588 = vmatpush1.bf16.msra.mxu1 %v9549_v13  ;;  %5548 = vmatprep.subr.bf16.mxu0 %v9554_v25  ;;  %v9626_v13 = vld [vmem:[%s13537_s2 + $0xde8] ss:$16 sps:$4 sm:$0xff]  }
 0x547   :  { %5589 = vmatprep.subr.bf16.mxu1 %v9557_v8  ;;  %v9629_v25 = vld [vmem:[%s13537_s2 + $0xb08] ss:$16 sps:$4 sm:$0xff]   ;;  %v9634_v8 = vld [vmem:[%s13537_s2 + $0xdcc] ss:$16 sps:$4 sm:$0xff]  }
 0x549   :  { %5549 = vmatpush1.bf16.msra.mxu0 %v9552_v59  ;;  %v9637_v59 = vld [vmem:[%s13537_s2 + $0xeec] ss:$16 sps:$4 sm:$0xff]  }
 0x54a   :  { %5590 = vmatpush1.bf16.msra.mxu1 %v9555_v34  ;;  %5550 = vmatprep.subr.bf16.mxu0 %v9560_v29  ;;  %v9632_v34 = vld [vmem:[%s13537_s2 + $0xdc8] ss:$16 sps:$4 sm:$0xff]  }
 0x54b   :  { %5591 = vmatprep.subr.bf16.mxu1 %v9563_v61  ;;  %v9635_v29 = vld [vmem:[%s13537_s2 + $0xee8] ss:$16 sps:$4 sm:$0xff]   ;;  %v9640_v61 = vld [vmem:[%s13537_s2 + $0xdac] ss:$16 sps:$4 sm:$0xff]  }
 0x54d   :  { %5551 = vmatpush1.bf16.msra.mxu0 %v9558_v46  ;;  %v9643_v46 = vld [vmem:[%s13537_s2 + $0xecc] ss:$16 sps:$4 sm:$0xff]  }
 0x54e   :  { %5592 = vmatpush1.bf16.msra.mxu1 %v9561_v41  ;;  %5552 = vmatprep.subr.bf16.mxu0 %v9566_v52  ;;  %v9638_v41 = vld [vmem:[%s13537_s2 + $0xda8] ss:$16 sps:$4 sm:$0xff]  }
 0x54f   :  { %5593 = vmatprep.subr.bf16.mxu1 %v9569_v40  ;;  %v9641_v52 = vld [vmem:[%s13537_s2 + $0xec8] ss:$16 sps:$4 sm:$0xff]   ;;  %v9646_v40 = vld [vmem:[%s13537_s2 + $0xd8c] ss:$16 sps:$4 sm:$0xff]  }
 0x551   :  { %5553 = vmatpush1.bf16.msra.mxu0 %v9564_v15  ;;  %v9644_v15 = vld [vmem:[%s13537_s2 + $0xd88] ss:$16 sps:$4 sm:$0xff]  }
 0x552   :  { %5594 = vmatpush1.bf16.msra.mxu1 %v9567_v6  ;;  %5554 = vmatprep.subr.bf16.mxu0 %v9572_v62  ;;  %v9647_v6 = vld [vmem:[%s13537_s2 + $0xea8] ss:$16 sps:$4 sm:$0xff]   ;;  %v9652_v62 = vld [vmem:[%s13537_s2 + $0xd6c] ss:$16 sps:$4 sm:$0xff]  }
 0x553   :  { %5595 = vmatprep.subr.bf16.mxu1 %v9575_v55  ;;  %v9655_v55 = vld [vmem:[%s13537_s2 + $0xe8c] ss:$16 sps:$4 sm:$0xff]  }
 0x555   :  { %5555 = vmatpush1.bf16.msra.mxu0 %v9570_v5  ;;  %v9658_v5 = vld [vmem:[%s13537_s2 + $0xd4c] ss:$16 sps:$4 sm:$0xff]  }
 0x556   :  { %5596 = vmatpush1.bf16.msra.mxu1 %v9573_v32  ;;  %5626 = vmatprep.subr.bf16.mxu0 %v9580_v47  ;;  %v9659_v32 = vld [vmem:[%s13537_s2 + $0xe68] ss:$16 sps:$4 sm:$0xff]   ;;  %v9664_v47 = vld [vmem:[%s13537_s2 + $0xd2c] ss:$16 sps:$4 sm:$0xff]  }
 0x557   :  { %5597 = vmatprep.subr.bf16.mxu1 %v9583_v24  ;;  %v9662_v24 = vld [vmem:[%s13537_s2 + $0xd28] ss:$16 sps:$4 sm:$0xff]  }
 0x558   :  { %5573 = vmatmul.mubr.bf16.vlgmr.msra.gmra.mxu0 %v12528_v35 }
 0x559   :  { %5627 = vmatpush1.bf16.msra.mxu0 %v9578_v4  ;;  %5658 = vmatprep.mubr.bf16.mxu0 %v12231_v51  ;;  %v9590_v51 = vld [vmem:[%s13537_s2 + $0xca8] ss:$16 sps:$4 sm:$0xff]   ;;  %v9670_v4 = vld [vmem:[%s13537_s2 + $0xd0c] ss:$16 sps:$4 sm:$0xff]  }
 0x55a   :  { %5598 = vmatpush1.bf16.msra.mxu1 %v9581_v23  ;;  %5628 = vmatprep.subr.bf16.mxu0 %v9586_v27  ;;  %v9673_v23 = vld [vmem:[%s13537_s2 + $0xe2c] ss:$16 sps:$4 sm:$0xff]   ;;  %v9668_v27 = vld [vmem:[%s13537_s2 + $0xd08] ss:$16 sps:$4 sm:$0xff]  }
 0x55b   :  { %5599 = vmatprep.subr.bf16.mxu1 %v9589_v2  ;;  %v9671_v2 = vld [vmem:[%s13537_s2 + $0xe28] ss:$16 sps:$4 sm:$0xff]  }
 0x55d   :  { %5629 = vmatpush1.bf16.msra.mxu0 %v9584_v33  ;;  %v9676_v33 = vld [vmem:[%s13537_s2 + $0xe0c] ss:$16 sps:$4 sm:$0xff]  }
 0x55e   :  { %5600 = vmatpush2.bf16.msra.mxu1 %v9587_v42  ;;  %5630 = vmatprep.subr.bf16.mxu0 %v9592_v60  ;;  %v9674_v42 = vld [vmem:[%s13537_s2 + $0xe08] ss:$16 sps:$4 sm:$0xff]   ;;  %v3142_v60 = vpop.f32.mrf.mxu0 }
 0x55f   :  { %5601 = vmatprep.subr.bf16.mxu1 %v9595_v53 }
 0x560   :  { %v3144_v53 = vpop.f32.mrf.mxu0 }
 0x561   :  { %5631 = vmatpush1.bf16.msra.mxu0 %v9590_v51 }
 0x562   :  { %5602 = vmatpush2.bf16.msra.mxu1 %v9593_v22  ;;  %5632 = vmatprep.subr.bf16.mxu0 %v9598_v20  ;;  %v3146_v51 = vpop.f32.mrf.mxu0  ;;  %v3185_v22 = vpop.f32.mrf.mxu1 }
 0x563   :  { %5603 = vmatprep.subr.bf16.mxu1 %v9601_v37 }
 0x564   :  { %v3148_v20 = vpop.f32.mrf.mxu0 }
 0x565   :  { %5633 = vmatpush1.bf16.msra.mxu0 %v9596_v48  ;;  %v3187_v48 = vpop.f32.mrf.mxu1 }
 0x566   :  { %5604 = vmatpush2.bf16.msra.mxu1 %v9599_v0  ;;  %5634 = vmatprep.subr.bf16.mxu0 %v9604_v3  ;;  %v3228_v37 = vpop.f32.mrf.mxu0  ;;  %v3188_v12 = vadd.f32 %v3187_v48, %v3144_v53 }
 0x567   :  { %5605 = vmatprep.subr.bf16.mxu1 %v9607_v45  ;;  %v3189_v3 = vpop.f32.mrf.mxu1 }
 0x568   :  { %v3230_v0 = vpop.f32.mrf.mxu0 }
 0x569   :  { %5635 = vmatpush1.bf16.msra.mxu0 %v9602_v21  ;;  %v3191_v21 = vpop.f32.mrf.mxu1 }
 0x56a   :  { %5606 = vmatpush2.bf16.msra.mxu1 %v9605_v49  ;;  %5636 = vmatprep.subr.bf16.mxu0 %v9610_v56  ;;  %v3232_v45 = vpop.f32.mrf.mxu0 }
 0x56b   :  { %5607 = vmatprep.subr.bf16.mxu1 %v9613_v44  ;;  %v12720_v56 = vpop.f32.mrf.mxu1 }
 0x56c   :  { %v3234_v49 = vpop.f32.mrf.mxu0 }
 0x56d   :  { %5637 = vmatpush1.bf16.msra.mxu0 %v9608_v9  ;;  %v12724_v44 = vpop.f32.mrf.mxu1 }
 0x56e   :  { %5608 = vmatpush2.bf16.msra.mxu1 %v9611_v54  ;;  %5638 = vmatprep.subr.bf16.mxu0 %v9616_v28 }
 0x56f   :  { %5609 = vmatprep.subr.bf16.mxu1 %v9619_v17 }
 0x571   :  { %5639 = vmatpush1.bf16.msra.mxu0 %v9614_v50 }
 0x572   :  { %5610 = vmatpush2.bf16.msra.mxu1 %v9617_v38  ;;  %5640 = vmatprep.subr.bf16.mxu0 %v9622_v10 }
 0x573   :  { %5611 = vmatprep.subr.bf16.mxu1 %v9625_v36 }
 0x575   :  { %5641 = vmatpush1.bf16.msra.mxu0 %v9620_v63 }
 0x576   :  { %5612 = vmatpush2.bf16.msra.mxu1 %v9623_v7  ;;  %5642 = vmatprep.subr.bf16.mxu0 %v9628_v43 }
 0x577   :  { %5613 = vmatprep.subr.bf16.mxu1 %v9631_v1 }
 0x579   :  { %5643 = vmatpush2.bf16.msra.mxu0 %v9626_v13 }
 0x57a   :  { %5614 = vmatpush2.bf16.msra.mxu1 %v9629_v25  ;;  %5644 = vmatprep.subr.bf16.mxu0 %v9634_v8 }
 0x57b   :  { %5669 = vmatprep.subr.bf16.mxu1 %v9637_v59 }
 0x57d   :  { %5616 = vmatmul.mubr.bf16.vlgmr.msra.gmra.mxu1 %v12420_v31  ;;  %5645 = vmatpush2.bf16.msra.mxu0 %v9632_v34  ;;  %v9649_v31 = vld [vmem:[%s13537_s2 + $0xeac] ss:$16 sps:$4 sm:$0xff]  }
 0x57e   :  { %5670 = vmatpush1.bf16.msra.mxu1 %v9635_v29  ;;  %5646 = vmatprep.subr.bf16.mxu0 %v9640_v61 }
 0x57f   :  { %5671 = vmatprep.subr.bf16.mxu1 %v9643_v46  ;;  %5701 = vmatprep.mubr.bf16.mxu1 %v12429_v16 }
 0x581   :  { %5647 = vmatpush2.bf16.msra.mxu0 %v9638_v41 }
 0x582   :  { %5672 = vmatpush1.bf16.msra.mxu1 %v9641_v52  ;;  %5648 = vmatprep.subr.bf16.mxu0 %v9646_v40 }
 0x583   :  { %5673 = vmatprep.subr.bf16.mxu1 %v9649_v31 }
 0x585   :  { %5649 = vmatpush2.bf16.msra.mxu0 %v9644_v15 }
 0x586   :  { %5674 = vmatpush1.bf16.msra.mxu1 %v9647_v6  ;;  %5650 = vmatprep.subr.bf16.mxu0 %v9652_v62 }
 0x587   :  { %5675 = vmatprep.subr.bf16.mxu1 %v9655_v55 }
 0x589   :  { %5651 = vmatpush2.bf16.msra.mxu0 %v9650_v39 }
 0x58a   :  { %5676 = vmatpush1.bf16.msra.mxu1 %v9653_v19  ;;  %5652 = vmatprep.subr.bf16.mxu0 %v9658_v5 }
 0x58b   :  { %5677 = vmatprep.subr.bf16.mxu1 %v9661_v57 }
 0x58d   :  { %5653 = vmatpush2.bf16.msra.mxu0 %v9656_v11 }
 0x58e   :  { %5678 = vmatpush1.bf16.msra.mxu1 %v9659_v32  ;;  %5654 = vmatprep.subr.bf16.mxu0 %v9664_v47 }
 0x58f   :  { %5679 = vmatprep.subr.bf16.mxu1 %v9667_v30 }
 0x591   :  { %5655 = vmatpush2.bf16.msra.mxu0 %v9662_v24 }
 0x592   :  { %5680 = vmatpush1.bf16.msra.mxu1 %v9665_v14  ;;  %5656 = vmatprep.subr.bf16.mxu0 %v9670_v4 }
 0x593   :  { %5681 = vmatprep.subr.bf16.mxu1 %v9673_v23 }
 0x595   :  { %5657 = vmatpush2.bf16.msra.mxu0 %v9668_v27  ;;  %v3190_v27 = vadd.f32 %v3189_v3, %v3146_v51 }
 0x596   :  { %5682 = vmatpush1.bf16.msra.mxu1 %v9671_v2  ;;  %v3192_v2 = vadd.f32 %v3191_v21, %v3148_v20 }
 0x597   :  { %5683 = vmatprep.subr.bf16.mxu1 %v9676_v33  ;;  %v3233_v26 = vadd.f32 %v3232_v45, %v3190_v27 }
 0x598   :  { %5659 = vmatmul.mubr.bf16.vlgmr.msra.gmra.mxu0 %v12442_v58  ;;  %v12722_v58 = vpop.f32.mrf.mxu0  ;;  %v3235_v18 = vadd.f32 %v3234_v49, %v3192_v2 }
 0x59a   :  { %5684 = vmatpush1.bf16.msra.mxu1 %v9674_v42  ;;  %v3186_v42 = vadd.f32 %v3185_v22, %v3142_v60 }
 0x59d   :  { %5702 = vmatmul.mubr.bf16.vlgmr.msra.gmra.mxu1 %v12528_v35  ;;  %v12726_v35 = vpop.f32.mrf.mxu0 }
 0x59e   :  { %6411 = vmatprep.mubr.bf16.mxu1 %v12429_v16  ;;  %v12728_v16 = vpop.f32.mrf.mxu1 }
 0x59f   :  { %v12730_v9 = vpop.f32.mrf.mxu0 }
 0x5a0   :  { %v12732_v54 = vpop.f32.mrf.mxu1 }
 0x5a1   :  { %v12736_v17 = vpop.f32.mrf.mxu0 }
 0x5a2   :  { %v12734_v28 = vpop.f32.mrf.mxu1 }
 0x5a3   :  { %v4218_v50 = vpop.f32.mrf.mxu0 }
 0x5a4   :  { %v12738_v38 = vpop.f32.mrf.mxu1 }
 0x5a5   :  { %v4220_v10 = vpop.f32.mrf.mxu0 }
 0x5a6   :  { %v12740_v36 = vpop.f32.mrf.mxu1 }
 0x5a7   :  { %v4222_v63 = vpop.f32.mrf.mxu0 }
 0x5a8   :  { %v12742_v7 = vpop.f32.mrf.mxu1 }
 0x5a9   :  { %13633 = vst [vmem:[#allocation10_spill] sm:$0xff] %v12742_v7  ;;  %v4224_v1 = vpop.f32.mrf.mxu0 }
 0x5aa   :  { %v4261_v43 = vpop.f32.mrf.mxu1 }
 0x5ab   :  { %v4304_v13 = vpop.f32.mrf.mxu0 }
 0x5ac   :  { %v4263_v25 = vpop.f32.mrf.mxu1 }
 0x5ad   :  { %v4306_v8 = vpop.f32.mrf.mxu0 }
 0x5ae   :  { %v4265_v59 = vpop.f32.mrf.mxu1 }
 0x5af   :  { %v4308_v34 = vpop.f32.mrf.mxu0 }
 0x5b0   :  { %v4267_v29 = vpop.f32.mrf.mxu1 }
 0x5b1   :  { %v4310_v61 = vpop.f32.mrf.mxu0 }
 0x5b2   :  { %v12744_v46 = vpop.f32.mrf.mxu1 }
 0x5b3   :  { %13634 = vst [vmem:[#allocation11_spill] sm:$0xff] %v12744_v46 }
 0x5b4   :  { %v12748_v52 = vpop.f32.mrf.mxu1 }
 0x5b5   :  { %13636 = vst [vmem:[#allocation13_spill] sm:$0xff] %v12748_v52 }
 0x5b6   :  { %v12752_v31 = vpop.f32.mrf.mxu1 }
 0x5b7   :  { %13638 = vst [vmem:[#allocation15_spill] sm:$0xff] %v12752_v31 }
 0x5b8   :  { %v12746_v41 = vpop.f32.mrf.mxu0  ;;  %v12756_v6 = vpop.f32.mrf.mxu1 }
 0x5b9   :  { %13635 = vst [vmem:[#allocation12_spill] sm:$0xff] %v12746_v41  ;;  %13640 = vst [vmem:[#allocation18_spill] sm:$0xff] %v12756_v6 }
 0x5ba   :  { %v12750_v40 = vpop.f32.mrf.mxu0 }
 0x5bb   :  { %13637 = vst [vmem:[#allocation14_spill] sm:$0xff] %v12750_v40 }
 0x5bc   :  { %v12754_v15 = vpop.f32.mrf.mxu0 }
 0x5bd   :  { %13639 = vst [vmem:[#allocation16_spill] sm:$0xff] %v12754_v15  ;;  %v12758_v62 = vpop.f32.mrf.mxu1  ;;  %v4225_v15 = vadd.f32 %v4224_v1, %v3235_v18 }
 0x5be   :  { %13641 = vst [vmem:[#allocation19_spill] sm:$0xff] %v12758_v62  ;;  %v12760_v55 = vpop.f32.mrf.mxu0  ;;  %v3231_v62 = vadd.f32 %v3230_v0, %v3188_v12 }
 0x5bf   :  { %13642 = vst [vmem:[#allocation20_spill] sm:$0xff] %v12760_v55  ;;  %v12762_v19 = vpop.f32.mrf.mxu1  ;;  %v3229_v55 = vadd.f32 %v3228_v37, %v3186_v42  ;;  %v4268_v46 = vadd.f32 %v4267_v29, %v4225_v15 }
 0x5c0   :  { %13643 = vst [vmem:[#allocation21_spill] sm:$0xff] %v12762_v19  ;;  %v4221_v52 = vadd.f32 %v4220_v10, %v3231_v62 }
 0x5c1   :  { %v12764_v57 = vpop.f32.mrf.mxu1  ;;  %v4219_v31 = vadd.f32 %v4218_v50, %v3229_v55  ;;  %v4311_v45 = vadd.f32 %v4310_v61, %v4268_v46  ;;  %v13646_v61 = vld [vmem:[#allocation11_spill] sm:$0xff]  ;;  %v13647_v46 = vld [vmem:[#allocation10_spill] sm:$0xff] }
 0x5c2   :  { %13644 = vst [vmem:[#allocation22_spill] sm:$0xff] %v12764_v57  ;;  %v4223_v57 = vadd.f32 %v4222_v63, %v3233_v26  ;;  %v4264_v22 = vadd.f32 %v4263_v25, %v4221_v52  ;;  %v13649_v55 = vld [vmem:[#allocation15_spill] sm:$0xff] }
 0x5c3   :  { %v12766_v32 = vpop.f32.mrf.mxu1  ;;  %v4262_v53 = vadd.f32 %v4261_v43, %v4219_v31  ;;  %v3315_v43 = vadd.f32 %v12722_v58, %v12720_v56 }
 0x5c4   :  { %13645 = vst [vmem:[#allocation23_spill] sm:$0xff] %v12766_v32  ;;  %v4266_v7 = vadd.f32 %v4265_v59, %v4223_v57  ;;  %v4307_v0 = vadd.f32 %v4306_v8, %v4264_v22  ;;  %v3319_v8 = vadd.f32 %v12730_v9, %v12728_v16 }
 0x5c5   :  { %v4305_v18 = vadd.f32 %v4304_v13, %v4262_v53  ;;  %v3358_v59 = vadd.f32 %v12734_v28, %v3315_v43  ;;  %v13654_v2 = vld [vmem:[#allocation19_spill] sm:$0xff] }
 0x5c6   :  { %v4309_v48 = vadd.f32 %v4308_v34, %v4266_v7  ;;  %v3317_v7 = vadd.f32 %v12726_v35, %v12724_v44  ;;  %v3321_v34 = vadd.f32 %v12736_v17, %v12732_v54  ;;  %v3362_v28 = vadd.f32 %v12740_v36, %v3319_v8  ;;  %v13652_v36 = vld [vmem:[#allocation14_spill] sm:$0xff] }
 0x5c7   :  { %v4348_v54 = vadd.f32 %v13646_v61, %v3358_v59 }
 0x5c8   :  { %v3360_v56 = vadd.f32 %v12738_v38, %v3317_v7  ;;  %v3364_v52 = vadd.f32 %v13647_v46, %v3321_v34 }
 0x5f8   :  { %v5488_v39 = vpop.f32.mrf.mxu0 }
 0x5fa   :  { %v5490_v5 = vpop.f32.mrf.mxu0 }
 0x5fc   :  { %v5492_v11 = vpop.f32.mrf.mxu0 }
 0x5fd   :  { %v5531_v47 = vpop.f32.mrf.mxu1 }
 0x5fe   :  { %v5494_v30 = vpop.f32.mrf.mxu0  ;;  %v5532_v51 = vadd.f32 %v5531_v47, %v5488_v39  ;;  %v4352_v39 = vadd.f32 %v13649_v55, %v3362_v28 }
 0x5ff   :  { %v5533_v14 = vpop.f32.mrf.mxu1 }
 0x600   :  { %v5534_v20 = vadd.f32 %v5533_v14, %v5490_v5 }
 0x601   :  { %v5535_v23 = vpop.f32.mrf.mxu1 }
 0x602   :  { %v5536_v32 = vadd.f32 %v5535_v23, %v5492_v11  ;;  %v13653_v23 = vld [vmem:[#allocation16_spill] sm:$0xff] }
 0x603   :  { %v5537_v19 = vpop.f32.mrf.mxu1  ;;  %v4395_v27 = vadd.f32 %v13653_v23, %v4352_v39 }
 0x604   :  { %v5538_v6 = vadd.f32 %v5537_v19, %v5494_v30  ;;  %v13650_v19 = vld [vmem:[#allocation12_spill] sm:$0xff] }
 0x605   :  { %v4391_v5 = vadd.f32 %v13650_v19, %v4348_v54 }
 0x618   :  { %v5574_v24 = vpop.f32.mrf.mxu0 }
 0x619   :  { %v5575_v37 = vadd.f32 %v5574_v24, %v5532_v51 }
 0x61a   :  { %v5576_v4 = vpop.f32.mrf.mxu0 }
 0x61b   :  { %v5577_v12 = vadd.f32 %v5576_v4, %v5534_v20  ;;  %v12772_v50 = vadd.f32 %v5575_v37, %v4305_v18  ;;  %v13655_v20 = vld [vmem:[#allocation20_spill] sm:$0xff]  ;;  %v13657_v37 = vld [vmem:[#allocation22_spill] sm:$0xff] }
 0x61c   :  { %v5578_v33 = vpop.f32.mrf.mxu0 }
 0x61d   :  { %v5579_v3 = vadd.f32 %v5578_v33, %v5536_v32  ;;  %v12774_v10 = vadd.f32 %v5577_v12, %v4307_v0  ;;  %v5748_v44 = vmul.f32 %v12772_v50, %v12772_v50  ;;  %v13651_v32 = vld [vmem:[#allocation18_spill] sm:$0xff]  ;;  %v4434_v33 = vadd.f32 %v13654_v2, %v4391_v5 }
 0x61e   :  { %v5580_v40 = vpop.f32.mrf.mxu0  ;;  %v4354_v47 = vadd.f32 %v13651_v32, %v3364_v52  ;;  %v4438_v12 = vadd.f32 %v13657_v37, %v4395_v27 }
 0x61f   :  { %v5581_v60 = vadd.f32 %v5580_v40, %v5538_v6  ;;  %v12768_v21 = vadd.f32 %v5579_v3, %v4309_v48  ;;  %v5749_v35 = vmul.f32 %v12774_v10, %v12774_v10  ;;  %v13648_v40 = vld [vmem:[#allocation13_spill] sm:$0xff] }
 0x620   :  { %v4350_v31 = vadd.f32 %v13648_v40, %v3360_v56  ;;  %v4397_v3 = vadd.f32 %v13655_v20, %v4354_v47 }
 0x621   :  { %v12770_v49 = vadd.f32 %v5581_v60, %v4311_v45  ;;  %v5752_v13 = vmul.f32 %v12768_v21, %v12768_v21  ;;  %v5720_v29 = vadd.f32 %v12768_v21, %v12772_v50  ;;  %v13656_v60 = vld [vmem:[#allocation21_spill] sm:$0xff] }
 0x622   :  { %v4393_v30 = vadd.f32 %v13652_v36, %v4350_v31 }
 0x623   :  { %v5753_v25 = vmul.f32 %v12770_v49, %v12770_v49  ;;  %v5727_v16 = vadd.f32 %v12770_v49, %v12774_v10  ;;  %v5756_v15 = vadd.f32 %v5752_v13, %v5748_v44  ;;  %v5721_v24 = vrot.slane %v5720_v29, 4 }
 0x624   :  { %v4436_v53 = vadd.f32 %v13656_v60, %v4393_v30 }
 0x625   :  { %v5763_v6 = vadd.f32 %v5753_v25, %v5749_v35  ;;  %v5757_v22 = vrot.slane %v5756_v15, 4  ;;  %v5722_v43 = vadd.f32 %v5721_v24, %v5720_v29 }
 0x627   :  { %v5764_v48 = vrot.slane %v5763_v6, 4  ;;  %v5758_v34 = vadd.f32 %v5757_v22, %v5756_v15 }
 0x629   :  { %v5765_v56 = vadd.f32 %v5764_v48, %v5763_v6  ;;  %v5759_v46 = vrot.slane %v5758_v34, 2 }
 0x62b   :  { %v5766_v52 = vrot.slane %v5765_v56, 2 }
 0x62d   :  { %v5767_v32 = vadd.f32 %v5766_v52, %v5765_v56  ;;  %v5809_v52 = vld [vmem:[%s13541_s6 + $0x1] sm:$0x1] }
 0x63d   :  { %v5617_v41 = vpop.f32.mrf.mxu1 }
 0x63f   :  { %v5619_v26 = vpop.f32.mrf.mxu1 }
 0x641   :  { %v5621_v63 = vpop.f32.mrf.mxu1 }
 0x643   :  { %v5623_v9 = vpop.f32.mrf.mxu1 }
 0x658   :  { %v5660_v1 = vpop.f32.mrf.mxu0 }
 0x659   :  { %v5661_v17 = vadd.f32 %v5660_v1, %v5617_v41  ;;  %v5728_v41 = vrot.slane %v5727_v16, 4 }
 0x65a   :  { %v5662_v58 = vpop.f32.mrf.mxu0 }
 0x65b   :  { %v5663_v57 = vadd.f32 %v5662_v58, %v5619_v26  ;;  %v5729_v7 = vadd.f32 %v5728_v41, %v5727_v16  ;;  %v5723_v16 = vrot.slane %v5722_v43, 2 }
 0x65c   :  { %v5664_v38 = vpop.f32.mrf.mxu0 }
 0x65d   :  { %v5703_v62 = vpop.f32.mrf.mxu1  ;;  %v5665_v42 = vadd.f32 %v5664_v38, %v5621_v63  ;;  %v13658_v63 = vld [vmem:[#allocation23_spill] sm:$0xff] }
 0x65e   :  { %v5704_v11 = vadd.f32 %v5703_v62, %v5661_v17  ;;  %v5666_v14 = vpop.f32.mrf.mxu0  ;;  %v4440_v25 = vadd.f32 %v13658_v63, %v4397_v3  ;;  %v5724_v62 = vadd.f32 %v5723_v16, %v5722_v43 }
 0x65f   :  { %v5705_v4 = vpop.f32.mrf.mxu1  ;;  %v5667_v18 = vadd.f32 %v5666_v14, %v5623_v9  ;;  %v5730_v9 = vrot.slane %v5729_v7, 2 }
 0x660   :  { %v5706_v51 = vadd.f32 %v5705_v4, %v5663_v57  ;;  %v12811_v26 = vadd.f32 %v5704_v11, %v4434_v33  ;;  %v5760_v11 = vadd.f32 %v5759_v46, %v5758_v34  ;;  %v5725_v41 = vrot.slane %v5724_v62, 1 }
 0x661   :  { %v5707_v45 = vpop.f32.mrf.mxu1  ;;  %v5731_v55 = vadd.f32 %v5730_v9, %v5729_v7 }
 0x662   :  { %v5708_v0 = vadd.f32 %v5707_v45, %v5665_v42  ;;  %v12813_v1 = vadd.f32 %v5706_v51, %v4436_v53  ;;  %v5750_v58 = vmul.f32 %v12811_v26, %v12811_v26  ;;  %v5761_v33 = vrot.slane %v5760_v11, 1 }
 0x663   :  { %v5709_v13 = vpop.f32.mrf.mxu1  ;;  %v5732_v14 = vrot.slane %v5731_v55, 1  ;;  %v5768_v42 = vrot.slane %v5767_v32, 1  ;;  %v5726_v53 = vadd.f32 %v5725_v41, %v5724_v62  ;;  %v13659_v62 = vld [vmem:[#allocation17_spill] sm:$0xff] }
 0x664   :  { %v12816_v8 = vadd.f32 %v5708_v0, %v4438_v12  ;;  %v5710_v59 = vadd.f32 %v5709_v13, %v5667_v18  ;;  %v5751_v28 = vmul.f32 %v12813_v1, %v12813_v1  ;;  %v5762_v12 = vadd.f32 %v5761_v33, %v5760_v11 }
 0x665   :  { %v5733_v22 = vadd.f32 %v5732_v14, %v5731_v55  ;;  %v5769_v43 = vadd.f32 %v5768_v42, %v5767_v32 }
 0x666   :  { %v5734_v44 = vadd.f32 %v12816_v8, %v12811_v26  ;;  %v5754_v35 = vmul.f32 %v12816_v8, %v12816_v8  ;;  %v12824_v29 = vadd.f32 %v5710_v59, %v4440_v25 }
 0x668   :  { %v5735_v61 = vrot.slane %v5734_v44, 4  ;;  %v5770_v54 = vadd.f32 %v5754_v35, %v5750_v58  ;;  %v5741_v17 = vadd.f32 %v12824_v29, %v12813_v1  ;;  %v5755_v38 = vmul.f32 %v12824_v29, %v12824_v29 }
 0x66a   :  { %v5736_v40 = vadd.f32 %v5735_v61, %v5734_v44  ;;  %v5771_v31 = vrot.slane %v5770_v54, 4  ;;  %v5742_v15 = vrot.slane %v5741_v17, 4  ;;  %v5777_v6 = vadd.f32 %v5755_v38, %v5751_v28 }
 0x66c   :  { %v5737_v39 = vrot.slane %v5736_v40, 2  ;;  %v5772_v19 = vadd.f32 %v5771_v31, %v5770_v54  ;;  %v5743_v5 = vadd.f32 %v5742_v15, %v5741_v17  ;;  %v5778_v57 = vrot.slane %v5777_v6, 4  ;;  %v5805_v17 = vld [vmem:[%s13540_s5 + $0x1] sm:$0x1] }
 0x66e   :  { %v5744_v47 = vrot.slane %v5743_v5, 2  ;;  %v5779_v36 = vadd.f32 %v5778_v57, %v5777_v6  ;;  %v5738_v30 = vadd.f32 %v5737_v39, %v5736_v40  ;;  %v5773_v24 = vrot.slane %v5772_v19, 2 }
 0x670   :  { %v5739_v4 = vrot.slane %v5738_v30, 1  ;;  %v5745_v23 = vadd.f32 %v5744_v47, %v5743_v5  ;;  %v5774_v27 = vadd.f32 %v5773_v24, %v5772_v19  ;;  %v5780_v2 = vrot.slane %v5779_v36, 2 }
 0x672   :  { %v5740_v51 = vadd.f32 %v5739_v4, %v5738_v30  ;;  %v5746_v20 = vrot.slane %v5745_v23, 1  ;;  %v5775_v3 = vrot.slane %v5774_v27, 1  ;;  %v5781_v60 = vadd.f32 %v5780_v2, %v5779_v36 }
 0x674   :  { %v5747_v48 = vadd.f32 %v5746_v20, %v5745_v23  ;;  %v5776_v45 = vadd.f32 %v5775_v3, %v5774_v27  ;;  %v5782_v37 = vrot.slane %v5781_v60, 1  ;;  %v5784_v18 = vadd.f32 %v5740_v51, %v5726_v53 }
 0x676   :  { %v5785_v0 = vadd.f32 %v5747_v48, %v5733_v22  ;;  %v5783_v7 = vadd.f32 %v5782_v37, %v5781_v60  ;;  %v5792_v63 = vadd.f32 %v5776_v45, %v5762_v12 }
 0x678   :  { %v5786_v13 = vadd.f32 %v5785_v0, %v5784_v18  ;;  %v5793_v25 = vadd.f32 %v5783_v7, %v5769_v43 }
 0x67a   :  { %5788 = vrot.lane.b32.xlu0 %v5786_v13, %s9995_s0  ;;  %v5794_v59 = vadd.f32 %v5793_v25, %v5792_v63 }
 0x67c   :  { %5796 = vrot.lane.b32.xlu1 %v5794_v59, %s9995_s0 }
 0x6ec   :  { %v5789_v34 = vpop.permute.xlu0 %5788 }
 0x6ed   :  { %v5791_v56 = vadd.f32 %v5789_v34, %v5786_v13  ;;  %v9679_v34 = vld [vmem:[%s13538_s3 + $0x1f4] ss:$8 sps:$4 sm:$0xff]  }
 0x6ee   :  { %v5797_v58 = vpop.permute.xlu1 %5796  ;;  %6338 = vmatprep.subr.bf16.mxu0 %v9679_v34 }
 0x6ef   :  { %v5800_v44 = vmul.f32 0.0078125, %v5791_v56  ;;  %v5799_v35 = vadd.f32 %v5797_v58, %v5794_v59  ;;  %v9677_v59 = vld [vmem:[%s13538_s3 + $0x1f0] ss:$8 sps:$4 sm:$0xff]   ;;  %v9682_v56 = vld [vmem:[%s13538_s3 + $0x1e4] ss:$8 sps:$4 sm:$0xff]  }
 0x6f0   :  { %6339 = vmatpush1.bf16.msra.mxu0 %v9677_v59  ;;  %v9680_v58 = vld [vmem:[%s13538_s3 + $0x1e0] ss:$8 sps:$4 sm:$0xff]  }
 0x6f1   :  { %v5802_v16 = vmul.f32 %v5800_v44, %v5800_v44  ;;  %v5801_v9 = vmul.f32 0.0078125, %v5799_v35  ;;  %6340 = vmatprep.subr.bf16.mxu0 %v9682_v56  ;;  %v9701_v35 = vld [vmem:[%s13538_s3 + $0x2f0] ss:$8 sps:$4 sm:$0xff]  }
 0x6f2   :  { %v9728_v56 = vld [vmem:[%s13538_s3 + $0x230] ss:$8 sps:$4 sm:$0xff]  }
 0x6f3   :  { %v5803_v28 = vsub.f32 %v5801_v9, %v5802_v16  ;;  %v9703_v16 = vld [vmem:[%s13538_s3 + $0x2f4] ss:$8 sps:$4 sm:$0xff]   ;;  %v9683_v9 = vld [vmem:[%s13538_s3 + $0x1d0] ss:$8 sps:$4 sm:$0xff]  }
 0x6f4   :  { %6341 = vmatpush1.bf16.msra.mxu0 %v9680_v58  ;;  %6379 = vmatprep.subr.bf16.mxu1 %v9703_v16  ;;  %v9731_v16 = vld [vmem:[%s13538_s3 + $0x2a0] ss:$8 sps:$4 sm:$0xff]  }
 0x6f5   :  { %v5804_v61 = vmax.f32 %v5803_v28, 0.0  ;;  %v9709_v28 = vld [vmem:[%s13538_s3 + $0x2e4] ss:$8 sps:$4 sm:$0xff]   ;;  %6380 = vmatpush1.bf16.msra.mxu1 %v9701_v35 }
 0x6f6   :  { %6381 = vmatprep.subr.bf16.mxu1 %v9709_v28  ;;  %v9733_v35 = vld [vmem:[%s13538_s3 + $0x2a4] ss:$8 sps:$4 sm:$0xff]  }
 0x6f7   :  { %v5806_v54 = vadd.f32 1e-05, %v5804_v61  ;;  %v9688_v61 = vld [vmem:[%s13538_s3 + $0x1c4] ss:$8 sps:$4 sm:$0xff]  }
 0x6f8   :  { %v9736_v28 = vld [vmem:[%s13538_s3 + $0x224] ss:$8 sps:$4 sm:$0xff]  }
 0x6f9   :  { %9960 = vrsqrt.f32 %v5806_v54  ;;  %v9707_v54 = vld [vmem:[%s13538_s3 + $0x2e0] ss:$8 sps:$4 sm:$0xff]  }
 0x6fa   :  { %6382 = vmatpush1.bf16.msra.mxu1 %v9707_v54 }
 0x706   :  { %v9961_v38 = vpop.eup %9960 }
 0x707   :  { %v5808_v46 = vmul.f32 %v9961_v38, %v5805_v17  ;;  %v9715_v17 = vld [vmem:[%s13538_s3 + $0x2d4] ss:$8 sps:$4 sm:$0xff]   ;;  %v9686_v38 = vld [vmem:[%s13538_s3 + $0x1c0] ss:$8 sps:$4 sm:$0xff]  }
 0x708   :  { %6383 = vmatprep.subr.bf16.mxu1 %v9715_v17 }
 0x709   :  { %5813 = vrot.lane.b32.xlu0 %v5808_v46, %s9995_s0  ;;  %v5810_v40 = vmul.f32 %v5808_v46, %v5800_v44  ;;  %v9685_v44 = vld [vmem:[%s13538_s3 + $0x1d4] ss:$8 sps:$4 sm:$0xff]  }
 0x70a   :  { %6342 = vmatprep.subr.bf16.mxu0 %v9685_v44 }
 0x70b   :  { %v5811_v31 = vsub.f32 %v5809_v52, %v5810_v40  ;;  %6343 = vmatpush1.bf16.msra.mxu0 %v9683_v9  ;;  %v9713_v52 = vld [vmem:[%s13538_s3 + $0x2d0] ss:$8 sps:$4 sm:$0xff]   ;;  %v9721_v40 = vld [vmem:[%s13538_s3 + $0x2c4] ss:$8 sps:$4 sm:$0xff]   ;;  %v9734_v9 = vld [vmem:[%s13538_s3 + $0x220] ss:$8 sps:$4 sm:$0xff]  }
 0x70c   :  { %6344 = vmatprep.subr.bf16.mxu0 %v9688_v61  ;;  %6384 = vmatpush1.bf16.msra.mxu1 %v9713_v52 }
 0x70d   :  { %5818 = vrot.lane.b32.xlu1 %v5811_v31, %s9995_s0  ;;  %6385 = vmatprep.subr.bf16.mxu1 %v9721_v40 }
 0x70f   :  { %6345 = vmatpush1.bf16.msra.mxu0 %v9686_v38 }
 0x77b   :  { %v5814_v15 = vpop.permute.xlu0 %5813 }
 0x77c   :  { %v5816_v6 = vsel %vm1324_vm4, %v5808_v46, %v5814_v15  ;;  %v9691_v46 = vld [vmem:[%s13538_s3 + $0x1b4] ss:$8 sps:$4 sm:$0xff]   ;;  %v9694_v15 = vld [vmem:[%s13538_s3 + $0x1a4] ss:$8 sps:$4 sm:$0xff]  }
 0x77d   :  { %v5825_v55 = vrot.slane %v5816_v6, %v13659_v62  ;;  %6346 = vmatprep.subr.bf16.mxu0 %v9691_v46  ;;  %v9719_v6 = vld [vmem:[%s13538_s3 + $0x2c0] ss:$8 sps:$4 sm:$0xff]   ;;  %v9739_v46 = vld [vmem:[%s13538_s3 + $0x294] ss:$8 sps:$4 sm:$0xff]  }
 0x77e   :  { %6386 = vmatpush1.bf16.msra.mxu1 %v9719_v6 }
 0x77f   :  { %v5819_v39 = vpop.permute.xlu1 %5818  ;;  %v5831_v5 = vmul.f32 %v5825_v55, %v12770_v49  ;;  %v5833_v11 = vmul.f32 %v5825_v55, %v12824_v29  ;;  %v5827_v32 = vmul.f32 %v5825_v55, %v12774_v10  ;;  %v5829_v47 = vmul.f32 %v5825_v55, %v12813_v1 }
 0x780   :  { %v5821_v19 = vsel %vm1324_vm4, %v5811_v31, %v5819_v39  ;;  %v5830_v36 = vmul.f32 %v5825_v55, %v12768_v21  ;;  %v5832_v30 = vmul.f32 %v5825_v55, %v12816_v8  ;;  %v5826_v24 = vmul.f32 %v5825_v55, %v12772_v50  ;;  %v9689_v31 = vld [vmem:[%s13538_s3 + $0x1b0] ss:$8 sps:$4 sm:$0xff]   ;;  %v9692_v39 = vld [vmem:[%s13538_s3 + $0x1a0] ss:$8 sps:$4 sm:$0xff]  }
 0x781   :  { %v5837_v57 = vrot.slane %v5821_v19, %v13659_v62  ;;  %v5828_v41 = vmul.f32 %v5825_v55, %v12811_v26  ;;  %v9727_v55 = vld [vmem:[%s13538_s3 + $0x2b4] ss:$8 sps:$4 sm:$0xff]   ;;  %6347 = vmatpush1.bf16.msra.mxu0 %v9689_v31  ;;  %v9737_v31 = vld [vmem:[%s13538_s3 + $0x290] ss:$8 sps:$4 sm:$0xff]  }
 0x782   :  { %6348 = vmatprep.subr.bf16.mxu0 %v9694_v15  ;;  %v9697_v19 = vld [vmem:[%s13538_s3 + $0x194] ss:$8 sps:$4 sm:$0xff]   ;;  %6387 = vmatprep.subr.bf16.mxu1 %v9727_v55 }
 0x783   :  { %v5843_v14 = vadd.f32 %v5837_v57, %v5831_v5  ;;  %v5845_v4 = vadd.f32 %v5837_v57, %v5833_v11  ;;  %v5839_v23 = vadd.f32 %v5837_v57, %v5827_v32  ;;  %v5841_v49 = vadd.f32 %v5837_v57, %v5829_v47  ;;  %v9725_v5 = vld [vmem:[%s13538_s3 + $0x2b0] ss:$8 sps:$4 sm:$0xff]   ;;  %v9700_v11 = vld [vmem:[%s13538_s3 + $0x184] ss:$8 sps:$4 sm:$0xff]   ;;  %v9698_v32 = vld [vmem:[%s13538_s3 + $0x180] ss:$8 sps:$4 sm:$0xff]  }
 0x784   :  { %v12854_v27 = vadd.f32 %v5837_v57, %v5830_v36  ;;  %v12856_v2 = vadd.f32 %v5837_v57, %v5832_v30  ;;  %v12858_v29 = vadd.f32 %v5837_v57, %v5826_v24  ;;  %v12860_v10 = vadd.f32 %v5837_v57, %v5828_v41  ;;  %v9695_v57 = vld [vmem:[%s13538_s3 + $0x190] ss:$8 sps:$4 sm:$0xff]   ;;  %6388 = vmatpush1.bf16.msra.mxu1 %v9725_v5  ;;  %v9706_v47 = vld [vmem:[%s13538_s3 + $0x274] ss:$8 sps:$4 sm:$0xff]   ;;  %v9712_v30 = vld [vmem:[%s13538_s3 + $0x264] ss:$8 sps:$4 sm:$0xff]  }
 0x785   :  { %v5851_v1 = vmax.f32 %v5843_v14, 0.0  ;;  %v5853_v21 = vmax.f32 %v5845_v4, 0.0  ;;  %v5847_v33 = vmax.f32 %v5839_v23, 0.0  ;;  %v5849_v8 = vmax.f32 %v5841_v49, 0.0  ;;  %6349 = vmatpush1.bf16.msra.mxu0 %v9692_v39  ;;  %v9704_v36 = vld [vmem:[%s13538_s3 + $0x270] ss:$8 sps:$4 sm:$0xff]   ;;  %6389 = vmatprep.subr.bf16.mxu1 %v9733_v35 }
 0x786   :  { %v5850_v50 = vmax.f32 %v12854_v27, 0.0  ;;  %v5852_v26 = vmax.f32 %v12856_v2, 0.0  ;;  %v5846_v20 = vmax.f32 %v12858_v29, 0.0  ;;  %v5848_v3 = vmax.f32 %v12860_v10, 0.0  ;;  %6350 = vmatprep.subr.bf16.mxu0 %v9697_v19  ;;  %v9710_v24 = vld [vmem:[%s13538_s3 + $0x260] ss:$8 sps:$4 sm:$0xff]  }
 0x787   :  { %v8883_v42 = vpack.i.bf16 %v5853_v21, %v5851_v1  ;;  %v8878_v51 = vpack.i.bf16 %v5849_v8, %v5847_v33  ;;  %v9718_v41 = vld [vmem:[%s13538_s3 + $0x254] ss:$8 sps:$4 sm:$0xff]   ;;  %v9716_v14 = vld [vmem:[%s13538_s3 + $0x250] ss:$8 sps:$4 sm:$0xff]   ;;  %v9724_v4 = vld [vmem:[%s13538_s3 + $0x244] ss:$8 sps:$4 sm:$0xff]  }
 0x788   :  { %v8893_v60 = vpack.i.bf16 %v5852_v26, %v5850_v50  ;;  %v8888_v53 = vpack.i.bf16 %v5848_v3, %v5846_v20  ;;  %v9722_v23 = vld [vmem:[%s13538_s3 + $0x240] ss:$8 sps:$4 sm:$0xff]   ;;  %6390 = vmatpush1.bf16.msra.mxu1 %v9731_v16  ;;  %v9742_v15 = vld [vmem:[%s13538_s3 + $0x214] ss:$8 sps:$4 sm:$0xff]   ;;  %v9745_v39 = vld [vmem:[%s13538_s3 + $0x284] ss:$8 sps:$4 sm:$0xff]  }
 0x789   :  { %8884 = vrot.lane.b32.xlu1 %v8883_v42, %s9995_s0  ;;  %8879 = vrot.lane.b32.xlu0 %v8878_v51, %s9995_s0  ;;  %v9740_v5 = vld [vmem:[%s13538_s3 + $0x210] ss:$8 sps:$4 sm:$0xff]   ;;  %v9793_v35 = vld [vmem:[%s13538_s3 + $0x14] ss:$8 sps:$4 sm:$0xff]  }
 0x78a   :  { %6351 = vmatpush1.bf16.msra.mxu0 %v9695_v57  ;;  %6391 = vmatprep.subr.bf16.mxu1 %v9739_v46  ;;  %v9748_v57 = vld [vmem:[%s13538_s3 + $0x204] ss:$8 sps:$4 sm:$0xff]   ;;  %v9788_v16 = vld [vmem:[%s13538_s3 + $0x120] ss:$8 sps:$4 sm:$0xff]   ;;  %v9805_v46 = vld [vmem:[%s13538_s3 + $0xf4] ss:$8 sps:$4 sm:$0xff]  }
 0x78b   :  { %6352 = vmatprep.subr.bf16.mxu0 %v9700_v11 }
 0x78c   :  { %6392 = vmatpush1.bf16.msra.mxu1 %v9737_v31  ;;  %v9809_v31 = vld [vmem:[%s13538_s3 + $0x374] ss:$8 sps:$4 sm:$0xff]  }
 0x78d   :  { %8894 = vrot.lane.b32.xlu1 %v8893_v60, %s9995_s0  ;;  %8889 = vrot.lane.b32.xlu0 %v8888_v53, %s9995_s0 }
 0x78e   :  { %6353 = vmatpush1.bf16.msra.mxu0 %v9698_v32  ;;  %v9743_v32 = vld [vmem:[%s13538_s3 + $0x280] ss:$8 sps:$4 sm:$0xff]   ;;  %6393 = vmatprep.subr.bf16.mxu1 %v9745_v39  ;;  %v9806_v39 = vld [vmem:[#allocation3 + $0x8] ss:$0 sps:$4 sm:$0xff]  }
 0x78f   :  { %6354 = vmatprep.subr.bf16.mxu0 %v9706_v47  ;;  %v9751_v47 = vld [vmem:[%s13538_s3 + $0x74] ss:$8 sps:$4 sm:$0xff]  }
 0x790   :  { %6394 = vmatpush1.bf16.msra.mxu1 %v9743_v32  ;;  %v9816_v32 = vld [vmem:[%s13538_s3 + $0x360] ss:$8 sps:$4 sm:$0xff]  }
 0x791   :  { %6671 = vmatprep.subr.bf16.mxu1 %v9751_v47  ;;  %v9819_v47 = vld [vmem:[%s13538_s3 + $0xd0] ss:$8 sps:$4 sm:$0xff]  }
 0x792   :  { %6355 = vmatpush2.bf16.msra.mxu0 %v9704_v36 }
 0x793   :  { %6356 = vmatprep.subr.bf16.mxu0 %v9712_v30  ;;  %v9746_v30 = vld [vmem:[%s13538_s3 + $0x200] ss:$8 sps:$4 sm:$0xff]  }
 0x796   :  { %6357 = vmatpush2.bf16.msra.mxu0 %v9710_v24  ;;  %v9760_v24 = vld [vmem:[%s13538_s3 + $0x174] ss:$8 sps:$4 sm:$0xff]  }
 0x797   :  { %6358 = vmatprep.subr.bf16.mxu0 %v9718_v41 }
 0x79a   :  { %6359 = vmatpush2.bf16.msra.mxu0 %v9716_v14 }
 0x79b   :  { %6360 = vmatprep.subr.bf16.mxu0 %v9724_v4 }
 0x79e   :  { %6361 = vmatpush2.bf16.msra.mxu0 %v9722_v23 }
 0x7fb   :  { %v8885_v22 = vpop.permute.xlu1 %8884  ;;  %v8880_v48 = vpop.permute.xlu0 %8879 }
 0x7fc   :  { %v8887_v45 = vunpack.i.h.bf16 %v8885_v22  ;;  %v8886_v37 = vunpack.i.l.bf16 %v8885_v22  ;;  %v8882_v12 = vunpack.i.h.bf16 %v8880_v48  ;;  %v8881_v18 = vunpack.i.l.bf16 %v8880_v48 }
 0x7fe   :  { %v5893_v0 = vmax.f32 %v5853_v21, %v8887_v45  ;;  %v5873_v43 = vmax.f32 %v5851_v1, %v8886_v37  ;;  %v5892_v7 = vmax.f32 %v5849_v8, %v8882_v12  ;;  %v5872_v13 = vmax.f32 %v5847_v33, %v8881_v18 }
 0x7ff   :  { %v8895_v49 = vpop.permute.xlu1 %8894  ;;  %v8890_v1 = vpop.permute.xlu0 %8889 }
 0x800   :  { %v8903_v63 = vpack.i.bf16 %v5893_v0, %v5873_v43  ;;  %v8898_v25 = vpack.i.bf16 %v5892_v7, %v5872_v13  ;;  %v8897_v21 = vunpack.i.h.bf16 %v8895_v49  ;;  %v8896_v33 = vunpack.i.l.bf16 %v8895_v49 }
 0x801   :  { %v8892_v8 = vunpack.i.h.bf16 %v8890_v1  ;;  %v8891_v42 = vunpack.i.l.bf16 %v8890_v1  ;;  %v9836_v1 = vld [vmem:[%s13538_s3 + $0x334] ss:$8 sps:$4 sm:$0xff]  }
 0x802   :  { %8904 = vrot.lane.b32.xlu1 %v8903_v63, %s9995_s0  ;;  %8899 = vrot.lane.b32.xlu0 %v8898_v25, %s9995_s0  ;;  %v5883_v51 = vmax.f32 %v5852_v26, %v8897_v21  ;;  %v5863_v60 = vmax.f32 %v5850_v50, %v8896_v33  ;;  %v9730_v25 = vld [vmem:[%s13538_s3 + $0x234] ss:$8 sps:$4 sm:$0xff]   ;;  %v9834_v33 = vld [vmem:[%s13538_s3 + $0x330] ss:$8 sps:$4 sm:$0xff]  }
 0x803   :  { %v5882_v53 = vmax.f32 %v5848_v3, %v8892_v8  ;;  %v5862_v22 = vmax.f32 %v5846_v20, %v8891_v42  ;;  %6362 = vmatprep.subr.bf16.mxu0 %v9730_v25  ;;  %v9749_v8 = vld [vmem:[%s13538_s3 + $0x70] ss:$8 sps:$4 sm:$0xff]  }
 0x804   :  { %6363 = vmatpush2.bf16.msra.mxu0 %v9728_v56  ;;  %v9779_v25 = vld [vmem:[%s13538_s3 + $0x30] ss:$8 sps:$4 sm:$0xff]  }
 0x805   :  { %6364 = vmatprep.subr.bf16.mxu0 %v9736_v28  ;;  %v9782_v56 = vld [vmem:[%s13538_s3 + $0x130] ss:$8 sps:$4 sm:$0xff]   ;;  %v9796_v28 = vld [vmem:[%s13538_s3 + $0x114] ss:$8 sps:$4 sm:$0xff]  }
 0x808   :  { %6365 = vmatpush2.bf16.msra.mxu0 %v9734_v9  ;;  %v9791_v9 = vld [vmem:[%s13538_s3 + $0x10] ss:$8 sps:$4 sm:$0xff]  }
 0x809   :  { %6366 = vmatprep.subr.bf16.mxu0 %v9742_v15 }
 0x80c   :  { %6367 = vmatpush2.bf16.msra.mxu0 %v9740_v5  ;;  %v9818_v5 = vld [vmem:[%s13538_s3 + $0x364] ss:$8 sps:$4 sm:$0xff]  }
 0x80d   :  { %6368 = vmatprep.subr.bf16.mxu0 %v9748_v57 }
 0x810   :  { %6369 = vmatpush2.bf16.msra.mxu0 %v9746_v30  ;;  %v9827_v30 = vld [vmem:[%s13538_s3 + $0xc4] ss:$8 sps:$4 sm:$0xff]  }
 0x811   :  { %6712 = vmatprep.subr.bf16.mxu0 %v9760_v24  ;;  %v9822_v24 = vld [vmem:[%s13538_s3 + $0x350] ss:$8 sps:$4 sm:$0xff]  }
 0x874   :  { %v8905_v48 = vpop.permute.xlu1 %8904  ;;  %v8900_v45 = vpop.permute.xlu0 %8899 }
 0x875   :  { %v8907_v37 = vunpack.i.h.bf16 %v8905_v48  ;;  %v8906_v12 = vunpack.i.l.bf16 %v8905_v48  ;;  %v8902_v18 = vunpack.i.h.bf16 %v8900_v45  ;;  %v8901_v0 = vunpack.i.l.bf16 %v8900_v45 }
 0x877   :  { %v5911_v43 = vsel %vm1324_vm4, %v5863_v60, %v8906_v12  ;;  %v5913_v2 = vsel %vm1324_vm4, %v5883_v51, %v8907_v37  ;;  %v5910_v26 = vsel %vm1324_vm4, %v5862_v22, %v8901_v0  ;;  %v5912_v27 = vsel %vm1324_vm4, %v5882_v53, %v8902_v18  ;;  %v9763_v60 = vld [vmem:[%s13538_s3 + $0x64] ss:$8 sps:$4 sm:$0xff]   ;;  %v9758_v18 = vld [vmem:[%s13538_s3 + $0x170] ss:$8 sps:$4 sm:$0xff]   ;;  %v9761_v0 = vld [vmem:[%s13538_s3 + $0x60] ss:$8 sps:$4 sm:$0xff]  }
 0x878   :  { %v5924_v50 = vrot.slane %v5911_v43, 2  ;;  %v5925_v10 = vrot.slane %v5913_v2, 2  ;;  %v5916_v3 = vrot.slane %v5910_v26, 2  ;;  %v5917_v7 = vrot.slane %v5912_v27, 2 }
 0x87a   :  { %v5928_v29 = vmax.f32 %v5911_v43, %v5924_v50  ;;  %v5929_v20 = vmax.f32 %v5913_v2, %v5925_v10  ;;  %v5920_v13 = vmax.f32 %v5910_v26, %v5916_v3  ;;  %v5921_v63 = vmax.f32 %v5912_v27, %v5917_v7  ;;  %v9766_v43 = vld [vmem:[%s13538_s3 + $0x164] ss:$8 sps:$4 sm:$0xff]   ;;  %v9769_v2 = vld [vmem:[%s13538_s3 + $0x54] ss:$8 sps:$4 sm:$0xff]   ;;  %v9764_v26 = vld [vmem:[%s13538_s3 + $0x160] ss:$8 sps:$4 sm:$0xff]  }
 0x87b   :  { %v13083_v27 = vld [vmem:[#allocation4] sm:$0xff]  ;;  %v9775_v3 = vld [vmem:[%s13538_s3 + $0x44] ss:$8 sps:$4 sm:$0xff]  }
 0x87c   :  { %v5938_v59 = vrot.slane %v5928_v29, 4  ;;  %v5939_v34 = vrot.slane %v5929_v20, 4  ;;  %v5932_v58 = vrot.slane %v5920_v13, 2  ;;  %v5933_v44 = vrot.slane %v5921_v63, 2  ;;  %v9767_v50 = vld [vmem:[%s13538_s3 + $0x50] ss:$8 sps:$4 sm:$0xff]  }
 0x87d   :  { %v5942_v61 = vrot.slane %v5928_v29, 6  ;;  %v5943_v54 = vrot.slane %v5929_v20, 6  ;;  %v9772_v10 = vld [vmem:[%s13538_s3 + $0x154] ss:$8 sps:$4 sm:$0xff]   ;;  %v9770_v7 = vld [vmem:[%s13538_s3 + $0x150] ss:$8 sps:$4 sm:$0xff]  }
 0x87e   :  { %v5946_v17 = vsel %vm1803_vm5, %v5920_v13, %v5932_v58  ;;  %v5947_v38 = vsel %vm1803_vm5, %v5921_v63, %v5933_v44  ;;  %v9773_v29 = vld [vmem:[%s13538_s3 + $0x40] ss:$8 sps:$4 sm:$0xff]   ;;  %v9778_v20 = vld [vmem:[%s13538_s3 + $0x144] ss:$8 sps:$4 sm:$0xff]   ;;  %v9781_v13 = vld [vmem:[%s13538_s3 + $0x34] ss:$8 sps:$4 sm:$0xff]  }
 0x87f   :  { %v5948_v52 = vsel %vm1808_vm6, %v5946_v17, %v5938_v59  ;;  %v5949_v40 = vsel %vm1808_vm6, %v5947_v38, %v5939_v34  ;;  %v9776_v63 = vld [vmem:[%s13538_s3 + $0x140] ss:$8 sps:$4 sm:$0xff]   ;;  %v9784_v59 = vld [vmem:[%s13538_s3 + $0x134] ss:$8 sps:$4 sm:$0xff]   ;;  %v9787_v34 = vld [vmem:[%s13538_s3 + $0x24] ss:$8 sps:$4 sm:$0xff]  }
 0x880   :  { %v5950_v6 = vsel %vm744_vm3, %v5948_v52, %v5942_v61  ;;  %v5951_v55 = vsel %vm744_vm3, %v5949_v40, %v5943_v54  ;;  %v9785_v58 = vld [vmem:[%s13538_s3 + $0x20] ss:$8 sps:$4 sm:$0xff]   ;;  %v9790_v44 = vld [vmem:[%s13538_s3 + $0x124] ss:$8 sps:$4 sm:$0xff]   ;;  %v9794_v54 = vld [vmem:[%s13538_s3 + $0x110] ss:$8 sps:$4 sm:$0xff]  }
 0x881   :  { %v8687_v19 = vpack.c.bf16 %v5951_v55, %v5950_v6  ;;  %v9799_v61 = vld [vmem:[%s13538_s3 + $0x4] ss:$8 sps:$4 sm:$0xff]   ;;  %v9797_v17 = vld [vmem:[%s13538_s3] ss:$8 sps:$4 sm:$0xff]   ;;  %v9803_v40 = vld [vmem:[%s13538_s3 + $0xf0] ss:$8 sps:$4 sm:$0xff]  }
 0x882   :  { %v9802_v38 = vld [vmem:[%s13538_s3 + $0x104] ss:$8 sps:$4 sm:$0xff]   ;;  %v9800_v52 = vld [vmem:[%s13538_s3 + $0x100] ss:$8 sps:$4 sm:$0xff]   ;;  %v9807_v55 = vld [vmem:[%s13538_s3 + $0x370] ss:$8 sps:$4 sm:$0xff]  }
 0x883   :  { %v5959_v11 = vrot.slane %v8687_v19, 7  ;;  %v9815_v6 = vld [vmem:[%s13538_s3 + $0xe4] ss:$8 sps:$4 sm:$0xff]   ;;  %v9813_v19 = vld [vmem:[%s13538_s3 + $0xe0] ss:$8 sps:$4 sm:$0xff]   ;;  %vm7256_vm3 = vcmask 522245  }
 0x885   :  { %5961 = vrot.lane.b32.xlu0 %v5959_v11, %s9995_s0  ;;  %v5960_v36 = vrot.slane %v5959_v11, 4  ;;  %v9821_v11 = vld [vmem:[%s13538_s3 + $0xd4] ss:$8 sps:$4 sm:$0xff]  }
 0x887   :  { %5963 = vrot.lane.b32.xlu1 %v5960_v36, %s9995_s0  ;;  %v9824_v36 = vld [vmem:[%s13538_s3 + $0x354] ss:$8 sps:$4 sm:$0xff]  }
 0x8f7   :  { %v5962_v41 = vpop.permute.xlu0 %5961 }
 0x8f8   :  { %v5965_v14 = vrot.slane %v5962_v41, 4 }
 0x8f9   :  { %v5964_v4 = vpop.permute.xlu1 %5963 }
 0x8fa   :  { %v5967_v23 = vsel %vm1324_vm4, %v5965_v14, %v5962_v41  ;;  %5974 = vst.msk [vmem:[#allocation3 + $0x8] sm:$0xe] %vm1906_vm14, %v5965_v14  ;;  %v5966_v49 = vrot.slane %v5964_v4, 4  ;;  %v9825_v41 = vld [vmem:[%s13538_s3 + $0xc0] ss:$8 sps:$4 sm:$0xff]  }
 0x8fb   :  { %5973 = vst.msk [vmem:[#allocation3] sm:$0xee] %vm11324_vm11, %v5967_v23  ;;  %v9830_v14 = vld [vmem:[%s13538_s3 + $0x344] ss:$8 sps:$4 sm:$0xff]   ;;  %v9828_v23 = vld [vmem:[%s13538_s3 + $0x340] ss:$8 sps:$4 sm:$0xff]  }
 0x8fc   :  { %v5968_v21 = vsel %vm1324_vm4, %v5966_v49, %v5964_v4  ;;  %5976 = vst.msk [vmem:[#allocation3 + $0x14] sm:$0x1] %vm1920_vm8, %v5966_v49  ;;  %v9833_v4 = vld [vmem:[%s13538_s3 + $0xb4] ss:$8 sps:$4 sm:$0xff]   ;;  %v9831_v49 = vld [vmem:[%s13538_s3 + $0xb0] ss:$8 sps:$4 sm:$0xff]  }
 0x8fd   :  { %5975 = vst.msk [vmem:[#allocation3 + $0xc] sm:$0x11] %vm11332_vm13, %v5968_v21  ;;  %v9839_v21 = vld [vmem:[%s13538_s3 + $0xa4] ss:$8 sps:$4 sm:$0xff]  }
 0x902   :  { %v13061_v51 = vld [vmem:[#allocation3] sm:$0xff] }
 0x903   :  { %v9752_v42 = vld [vmem:[#allocation3 + $0x8] ss:$12 sps:$4 sm:$0x1e]   ;;  %v8527_v37 = vcombine.high %v13061_v51, %v13061_v51 }
 0x904   :  { %v9753_v53 = vld [vmem:[#allocation3] ss:$12 sps:$4 sm:$0x1e]   ;;  %v6094_v22 = vrot.slane %v9752_v42, 1  ;;  %v9842_v42 = vld [vmem:[%s13538_s3 + $0x324] ss:$8 sps:$4 sm:$0xff]  }
 0x905   :  { %v9755_v48 = vld [vmem:[#allocation3 + $0x4] ss:$12 sps:$4 sm:$0x1e]   ;;  %v6092_v45 = vrot.slane %v9753_v53, 1 }
 0x906   :  { %6412 = vmatmul.mubr.bf16.vlgmr.msra.gmra.mxu1 %v6094_v22  ;;  %v6093_v12 = vrot.slane %v9755_v48, 1  ;;  %v9812_v15 = vld [vmem:[#allocation3 + $0x4] ss:$12 sps:$4 sm:$0x3c]   ;;  %v9843_v22 = vld [vmem:[%s13538_s3 + $0x90] ss:$8 sps:$4 sm:$0xff]  }
 0x907   :  { %6672 = vmatpush1.bf16.msra.mxu1 %v9749_v8  ;;  %6703 = vmatprep.mubr.bf16.mxu1 %v8527_v37  ;;  %v6819_v57 = vrot.slane %v9812_v15, 2  ;;  %v9837_v8 = vld [vmem:[%s13538_s3 + $0xa0] ss:$8 sps:$4 sm:$0xff]   ;;  %v9848_v48 = vld [vmem:[%s13538_s3 + $0x314] ss:$8 sps:$4 sm:$0xff]  }
 0x908   :  { %6370 = vmatprep.mubr.bf16.mxu0 %v6093_v12  ;;  %6673 = vmatprep.subr.bf16.mxu1 %v9763_v60  ;;  %v9845_v60 = vld [vmem:[%s13538_s3 + $0x94] ss:$8 sps:$4 sm:$0xff]   ;;  %v9840_v53 = vld [vmem:[%s13538_s3 + $0x320] ss:$8 sps:$4 sm:$0xff]   ;;  %v9846_v37 = vld [vmem:[%s13538_s3 + $0x310] ss:$8 sps:$4 sm:$0xff]  }
 0x909   :  { %6371 = vmatmul.mubr.bf16.vlgmr.msra.gmra.mxu0 %v6092_v45  ;;  %v9851_v45 = vld [vmem:[%s13538_s3 + $0x84] ss:$8 sps:$4 sm:$0xff]   ;;  %v9849_v12 = vld [vmem:[%s13538_s3 + $0x80] ss:$8 sps:$4 sm:$0xff]  }
 0x90a   :  { %6713 = vmatpush1.bf16.msra.mxu0 %v9758_v18  ;;  %6744 = vmatprep.mubr.bf16.mxu0 %v13083_v27  ;;  %v9854_v18 = vld [vmem:[%s13538_s3 + $0x304] ss:$8 sps:$4 sm:$0xff]  }
 0x90b   :  { %6674 = vmatpush1.bf16.msra.mxu1 %v9761_v0  ;;  %6714 = vmatprep.subr.bf16.mxu0 %v9766_v43  ;;  %v9857_v0 = vld [vmem:[%s13538_s3 + $0x474] ss:$8 sps:$4 sm:$0xff]   ;;  %v9852_v43 = vld [vmem:[%s13538_s3 + $0x300] ss:$8 sps:$4 sm:$0xff]   ;;  %v9902_v15 = vld [vmem:[%s13538_s3 + $0x384] ss:$8 sps:$4 sm:$0xff]  }
 0x90c   :  { %6675 = vmatprep.subr.bf16.mxu1 %v9769_v2  ;;  %v9855_v2 = vld [vmem:[%s13538_s3 + $0x470] ss:$8 sps:$4 sm:$0xff]  }
 0x90e   :  { %6715 = vmatpush1.bf16.msra.mxu0 %v9764_v26  ;;  %v9860_v26 = vld [vmem:[%s13538_s3 + $0x3f4] ss:$8 sps:$4 sm:$0xff]  }
 0x90f   :  { %6676 = vmatpush1.bf16.msra.mxu1 %v9767_v50  ;;  %6716 = vmatprep.subr.bf16.mxu0 %v9772_v10  ;;  %v8526_v50 = vcombine.low %v13061_v51, %v13061_v51  ;;  %v9863_v10 = vld [vmem:[%s13538_s3 + $0x464] ss:$8 sps:$4 sm:$0xff]  }
 0x910   :  { %6677 = vmatprep.subr.bf16.mxu1 %v9775_v3  ;;  %v9858_v3 = vld [vmem:[%s13538_s3 + $0x3f0] ss:$8 sps:$4 sm:$0xff]   ;;  %v9866_v51 = vld [vmem:[%s13538_s3 + $0x3e4] ss:$8 sps:$4 sm:$0xff]  }
 0x912   :  { %6717 = vmatpush1.bf16.msra.mxu0 %v9770_v7  ;;  %v9861_v7 = vld [vmem:[%s13538_s3 + $0x460] ss:$8 sps:$4 sm:$0xff]  }
 0x913   :  { %6678 = vmatpush1.bf16.msra.mxu1 %v9773_v29  ;;  %6718 = vmatprep.subr.bf16.mxu0 %v9778_v20  ;;  %v9869_v29 = vld [vmem:[%s13538_s3 + $0x454] ss:$8 sps:$4 sm:$0xff]   ;;  %v9864_v20 = vld [vmem:[%s13538_s3 + $0x3e0] ss:$8 sps:$4 sm:$0xff]  }
 0x914   :  { %6679 = vmatprep.subr.bf16.mxu1 %v9781_v13  ;;  %v9867_v13 = vld [vmem:[%s13538_s3 + $0x450] ss:$8 sps:$4 sm:$0xff]  }
 0x916   :  { %6719 = vmatpush1.bf16.msra.mxu0 %v9776_v63  ;;  %v9872_v63 = vld [vmem:[%s13538_s3 + $0x3d4] ss:$8 sps:$4 sm:$0xff]  }
 0x917   :  { %6680 = vmatpush1.bf16.msra.mxu1 %v9779_v25  ;;  %6720 = vmatprep.subr.bf16.mxu0 %v9784_v59  ;;  %v9870_v25 = vld [vmem:[%s13538_s3 + $0x3d0] ss:$8 sps:$4 sm:$0xff]   ;;  %v9873_v59 = vld [vmem:[%s13538_s3 + $0x440] ss:$8 sps:$4 sm:$0xff]  }
 0x918   :  { %6681 = vmatprep.subr.bf16.mxu1 %v9787_v34  ;;  %v9878_v34 = vld [vmem:[%s13538_s3 + $0x3c4] ss:$8 sps:$4 sm:$0xff]  }
 0x91a   :  { %6721 = vmatpush1.bf16.msra.mxu0 %v9782_v56  ;;  %v9881_v56 = vld [vmem:[%s13538_s3 + $0x434] ss:$8 sps:$4 sm:$0xff]  }
 0x91b   :  { %6682 = vmatpush1.bf16.msra.mxu1 %v9785_v58  ;;  %6722 = vmatprep.subr.bf16.mxu0 %v9790_v44  ;;  %v9876_v58 = vld [vmem:[%s13538_s3 + $0x3c0] ss:$8 sps:$4 sm:$0xff]   ;;  %v9879_v44 = vld [vmem:[%s13538_s3 + $0x430] ss:$8 sps:$4 sm:$0xff]  }
 0x91c   :  { %6683 = vmatprep.subr.bf16.mxu1 %v9793_v35  ;;  %v9884_v35 = vld [vmem:[%s13538_s3 + $0x3b4] ss:$8 sps:$4 sm:$0xff]  }
 0x91e   :  { %6723 = vmatpush1.bf16.msra.mxu0 %v9788_v16  ;;  %v9887_v16 = vld [vmem:[%s13538_s3 + $0x424] ss:$8 sps:$4 sm:$0xff]  }
 0x91f   :  { %6684 = vmatpush1.bf16.msra.mxu1 %v9791_v9  ;;  %6724 = vmatprep.subr.bf16.mxu0 %v9796_v28  ;;  %v9882_v9 = vld [vmem:[%s13538_s3 + $0x3b0] ss:$8 sps:$4 sm:$0xff]   ;;  %v9885_v28 = vld [vmem:[%s13538_s3 + $0x420] ss:$8 sps:$4 sm:$0xff]  }
 0x920   :  { %6685 = vmatprep.subr.bf16.mxu1 %v9799_v61  ;;  %v9890_v61 = vld [vmem:[%s13538_s3 + $0x3a4] ss:$8 sps:$4 sm:$0xff]  }
 0x922   :  { %6725 = vmatpush1.bf16.msra.mxu0 %v9794_v54  ;;  %v9893_v54 = vld [vmem:[%s13538_s3 + $0x414] ss:$8 sps:$4 sm:$0xff]  }
 0x923   :  { %6686 = vmatpush1.bf16.msra.mxu1 %v9797_v17  ;;  %6726 = vmatprep.subr.bf16.mxu0 %v9802_v38  ;;  %v9888_v17 = vld [vmem:[%s13538_s3 + $0x3a0] ss:$8 sps:$4 sm:$0xff]   ;;  %v9891_v38 = vld [vmem:[%s13538_s3 + $0x410] ss:$8 sps:$4 sm:$0xff]  }
 0x924   :  { %6687 = vmatprep.subr.bf16.mxu1 %v9805_v46  ;;  %v9896_v46 = vld [vmem:[%s13538_s3 + $0x394] ss:$8 sps:$4 sm:$0xff]  }
 0x926   :  { %6727 = vmatpush1.bf16.msra.mxu0 %v9800_v52  ;;  %v9899_v52 = vld [vmem:[%s13538_s3 + $0x404] ss:$8 sps:$4 sm:$0xff]  }
 0x927   :  { %6688 = vmatpush2.bf16.msra.mxu1 %v9803_v40  ;;  %7064 = vmatprep.subr.bf16.mxu0 %v9809_v31  ;;  %v9894_v40 = vld [vmem:[%s13538_s3 + $0x390] ss:$8 sps:$4 sm:$0xff]   ;;  %v9897_v31 = vld [vmem:[%s13538_s3 + $0x400] ss:$8 sps:$4 sm:$0xff]  }
 0x928   :  { %6689 = vmatprep.subr.bf16.mxu1 %v9815_v6  ;;  %v9903_v6 = vld [vmem:[#allocation3 + $0x8] ss:$12 sps:$4 sm:$0x3c]  }
 0x929   :  { %6745 = vmatmul.mubr.bf16.vlgmr.msra.gmra.mxu0 %v9806_v39  ;;  %v9810_v39 = vld [vmem:[#allocation3] ss:$12 sps:$4 sm:$0x3c]  }
 0x92a   :  { %7065 = vmatpush1.bf16.msra.mxu0 %v9807_v55  ;;  %7096 = vmatprep.mubr.bf16.mxu0 %v6819_v57  ;;  %v9900_v55 = vld [vmem:[%s13538_s3 + $0x380] ss:$8 sps:$4 sm:$0xff]  }
 0x92b   :  { %6690 = vmatpush2.bf16.msra.mxu1 %v9813_v19  ;;  %7066 = vmatprep.subr.bf16.mxu0 %v9818_v5  ;;  %v6820_v19 = vrot.slane %v9903_v6, 2  ;;  %v6818_v5 = vrot.slane %v9810_v39, 2 }
 0x92c   :  { %6691 = vmatprep.subr.bf16.mxu1 %v9821_v11 }
 0x92e   :  { %7067 = vmatpush1.bf16.msra.mxu0 %v9816_v32 }
 0x92f   :  { %6692 = vmatpush2.bf16.msra.mxu1 %v9819_v47  ;;  %7068 = vmatprep.subr.bf16.mxu0 %v9824_v36 }
 0x930   :  { %6693 = vmatprep.subr.bf16.mxu1 %v9827_v30 }
 0x932   :  { %7069 = vmatpush1.bf16.msra.mxu0 %v9822_v24 }
 0x933   :  { %6694 = vmatpush2.bf16.msra.mxu1 %v9825_v41  ;;  %7070 = vmatprep.subr.bf16.mxu0 %v9830_v14 }
 0x934   :  { %6695 = vmatprep.subr.bf16.mxu1 %v9833_v4 }
 0x936   :  { %7071 = vmatpush1.bf16.msra.mxu0 %v9828_v23 }
 0x937   :  { %6696 = vmatpush2.bf16.msra.mxu1 %v9831_v49  ;;  %7072 = vmatprep.subr.bf16.mxu0 %v9836_v1 }
 0x938   :  { %6697 = vmatprep.subr.bf16.mxu1 %v9839_v21 }
 0x93a   :  { %7073 = vmatpush1.bf16.msra.mxu0 %v9834_v33 }
 0x93b   :  { %6698 = vmatpush2.bf16.msra.mxu1 %v9837_v8  ;;  %7074 = vmatprep.subr.bf16.mxu0 %v9842_v42 }
 0x93c   :  { %6699 = vmatprep.subr.bf16.mxu1 %v9845_v60 }
 0x93e   :  { %7075 = vmatpush1.bf16.msra.mxu0 %v9840_v53 }
 0x93f   :  { %6700 = vmatpush2.bf16.msra.mxu1 %v9843_v22  ;;  %7076 = vmatprep.subr.bf16.mxu0 %v9848_v48 }
 0x940   :  { %6701 = vmatprep.subr.bf16.mxu1 %v9851_v45 }
 0x942   :  { %7077 = vmatpush1.bf16.msra.mxu0 %v9846_v37 }
 0x943   :  { %6702 = vmatpush2.bf16.msra.mxu1 %v9849_v12  ;;  %7078 = vmatprep.subr.bf16.mxu0 %v9854_v18 }
 0x944   :  { %7105 = vmatprep.subr.bf16.mxu1 %v9857_v0 }
 0x946   :  { %7079 = vmatpush1.bf16.msra.mxu0 %v9852_v43  ;;  %6704 = vmatmul.mubr.bf16.vlgmr.msra.gmra.mxu1 %v8526_v50 }
 0x947   :  { %7106 = vmatpush1.bf16.msra.mxu1 %v9855_v2  ;;  %7080 = vmatprep.subr.bf16.mxu0 %v9860_v26 }
 0x948   :  { %7107 = vmatprep.subr.bf16.mxu1 %v9863_v10  ;;  %7137 = vmatprep.mubr.bf16.mxu1 %v13083_v27  ;;  %v9875_v27 = vld [vmem:[%s13538_s3 + $0x444] ss:$8 sps:$4 sm:$0xff]  }
 0x94a   :  { %7081 = vmatpush2.bf16.msra.mxu0 %v9858_v3 }
 0x94b   :  { %7108 = vmatpush1.bf16.msra.mxu1 %v9861_v7  ;;  %7082 = vmatprep.subr.bf16.mxu0 %v9866_v51 }
 0x94c   :  { %7109 = vmatprep.subr.bf16.mxu1 %v9869_v29 }
 0x94e   :  { %7083 = vmatpush2.bf16.msra.mxu0 %v9864_v20 }
 0x94f   :  { %7110 = vmatpush1.bf16.msra.mxu1 %v9867_v13  ;;  %7084 = vmatprep.subr.bf16.mxu0 %v9872_v63 }
 0x950   :  { %7111 = vmatprep.subr.bf16.mxu1 %v9875_v27 }
 0x952   :  { %7085 = vmatpush2.bf16.msra.mxu0 %v9870_v25 }
 0x953   :  { %7112 = vmatpush1.bf16.msra.mxu1 %v9873_v59  ;;  %7086 = vmatprep.subr.bf16.mxu0 %v9878_v34 }
 0x954   :  { %7113 = vmatprep.subr.bf16.mxu1 %v9881_v56 }
 0x956   :  { %7087 = vmatpush2.bf16.msra.mxu0 %v9876_v58 }
 0x957   :  { %7114 = vmatpush1.bf16.msra.mxu1 %v9879_v44  ;;  %7088 = vmatprep.subr.bf16.mxu0 %v9884_v35 }
 0x958   :  { %7115 = vmatprep.subr.bf16.mxu1 %v9887_v16 }
 0x95a   :  { %7089 = vmatpush2.bf16.msra.mxu0 %v9882_v9 }
 0x95b   :  { %7116 = vmatpush1.bf16.msra.mxu1 %v9885_v28  ;;  %7090 = vmatprep.subr.bf16.mxu0 %v9890_v61 }
 0x95c   :  { %7117 = vmatprep.subr.bf16.mxu1 %v9893_v54 }
 0x95e   :  { %7091 = vmatpush2.bf16.msra.mxu0 %v9888_v17 }
 0x95f   :  { %7118 = vmatpush1.bf16.msra.mxu1 %v9891_v38  ;;  %7092 = vmatprep.subr.bf16.mxu0 %v9896_v46 }
 0x960   :  { %7119 = vmatprep.subr.bf16.mxu1 %v9899_v52 }
 0x962   :  { %7093 = vmatpush2.bf16.msra.mxu0 %v9894_v40 }
 0x963   :  { %7120 = vmatpush1.bf16.msra.mxu1 %v9897_v31  ;;  %7094 = vmatprep.subr.bf16.mxu0 %v9902_v15 }
 0x966   :  { %7095 = vmatpush2.bf16.msra.mxu0 %v9900_v55  ;;  %7138 = vmatmul.mubr.bf16.vlgmr.msra.gmra.mxu1 %v6820_v19 }
 0x969   :  { %7097 = vmatmul.mubr.bf16.vlgmr.msra.gmra.mxu0 %v6818_v5 }
 0x9c6   :  { %v6413_v57 = vpop.f32.mrf.mxu1 }
 0x9c8   :  { %v6415_v11 = vpop.f32.mrf.mxu1 }
 0x9c9   :  { %v6372_v32 = vpop.f32.mrf.mxu0 }
 0x9ca   :  { %v6414_v47 = vadd.f32 %v6413_v57, %v6372_v32  ;;  %v6417_v36 = vpop.f32.mrf.mxu1 }
 0x9cb   :  { %v6374_v30 = vpop.f32.mrf.mxu0 }
 0x9cc   :  { %v6416_v24 = vadd.f32 %v6415_v11, %v6374_v30  ;;  %v6418_v41 = vpop.f32.mrf.mxu1 }
 0x9cd   :  { %v6376_v14 = vpop.f32.mrf.mxu0 }
 0x9cf   :  { %v6377_v4 = vpop.f32.mrf.mxu0 }
 0x9d0   :  { %v7191_v4 = vld [vmem:[%s13540_s5 + $0x2] sm:$0x1] }
 0x9e9   :  { %v6746_v23 = vpop.f32.mrf.mxu0 }
 0x9eb   :  { %v6748_v49 = vpop.f32.mrf.mxu0 }
 0x9ed   :  { %v6750_v1 = vpop.f32.mrf.mxu0 }
 0x9ee   :  { %v7195_v1 = vld [vmem:[%s13541_s6 + $0x2] sm:$0x1] }
 0x9ef   :  { %v6751_v21 = vpop.f32.mrf.mxu0 }
 0xa06   :  { %v6705_v33 = vpop.f32.mrf.mxu1 }
 0xa07   :  { %v6706_v8 = vadd.f32 %v6705_v33, %v6414_v47 }
 0xa08   :  { %v6707_v42 = vpop.f32.mrf.mxu1 }
 0xa09   :  { %v6747_v60 = vadd.f32 %v6746_v23, %v6706_v8  ;;  %v6708_v53 = vadd.f32 %v6707_v42, %v6416_v24 }
 0xa0a   :  { %v6709_v22 = vpop.f32.mrf.mxu1 }
 0xa0b   :  { %v6749_v48 = vadd.f32 %v6748_v49, %v6708_v53 }
 0xa0c   :  { %v6710_v45 = vpop.f32.mrf.mxu1 }
 0xa26   :  { %v7139_v37 = vpop.f32.mrf.mxu1 }
 0xa28   :  { %v7141_v12 = vpop.f32.mrf.mxu1 }
 0xa29   :  { %v7098_v18 = vpop.f32.mrf.mxu0 }
 0xa2a   :  { %v7140_v0 = vadd.f32 %v7139_v37, %v7098_v18  ;;  %v7143_v43 = vpop.f32.mrf.mxu1 }
 0xa2b   :  { %v7100_v2 = vpop.f32.mrf.mxu0 }
 0xa2c   :  { %v7146_v26 = vadd.f32 %v7140_v0, %v6747_v60  ;;  %v7142_v50 = vadd.f32 %v7141_v12, %v7100_v2  ;;  %v7144_v10 = vpop.f32.mrf.mxu1 }
 0xa2d   :  { %v7102_v3 = vpop.f32.mrf.mxu0  ;;  %v9904_v10 = vld [vmem:[%s13539_s4 + $0x78] sm:$0xff]  }
 0xa2e   :  { %v7148_v7 = vrot.slane %v7146_v26, 4  ;;  %v7160_v51 = vmul.f32 %v7146_v26, %v7146_v26  ;;  %v7147_v29 = vadd.f32 %v7142_v50, %v6749_v48  ;;  %v9906_v3 = vld [vmem:[%s13539_s4 + $0x38] sm:$0xff]   ;;  %8711 = vmatprep.subr.bf16.mxu0 %v9904_v10  ;;  %v9949_v10 = vld [vmem:[%s13539_s4 + $0x120] sm:$0xff]  }
 0xa2f   :  { %v7103_v20 = vpop.f32.mrf.mxu0  ;;  %8712 = vmatpush3.bf16.msra.mxu0 %v9906_v3  ;;  %v9951_v3 = vld [vmem:[%s13539_s4 + $0x118] sm:$0xff]  }
 0xa30   :  { %v7154_v13 = vrot.slane %v7147_v29, 4  ;;  %v7161_v63 = vmul.f32 %v7147_v29, %v7147_v29  ;;  %v7149_v27 = vadd.f32 %v7148_v7, %v7146_v26  ;;  %v7162_v25 = vrot.slane %v7160_v51, 4  ;;  %v9907_v7 = vld [vmem:[%s13539_s4 + $0xb8] sm:$0xff]   ;;  %v9910_v20 = vld [vmem:[%s13539_s4 + $0x30] sm:$0xff]  }
 0xa32   :  { %v7150_v59 = vrot.slane %v7149_v27, 2  ;;  %v7155_v34 = vadd.f32 %v7154_v13, %v7147_v29  ;;  %v7163_v56 = vadd.f32 %v7162_v25, %v7160_v51  ;;  %v7168_v58 = vrot.slane %v7161_v63, 4  ;;  %v9908_v51 = vld [vmem:[%s13539_s4 + $0x70] sm:$0xff]   ;;  %v9914_v25 = vld [vmem:[%s13539_s4 + $0x28] sm:$0xff]  }
 0xa33   :  { %v9911_v13 = vld [vmem:[%s13539_s4 + $0xb0] sm:$0xff]   ;;  %8713 = vmatprep.subr.bf16.mxu0 %v9908_v51 }
 0xa34   :  { %v7151_v44 = vadd.f32 %v7150_v59, %v7149_v27  ;;  %v7156_v35 = vrot.slane %v7155_v34, 2  ;;  %v7164_v16 = vrot.slane %v7163_v56, 2  ;;  %v7169_v9 = vadd.f32 %v7168_v58, %v7161_v63  ;;  %v9912_v63 = vld [vmem:[%s13539_s4 + $0x68] sm:$0xff]   ;;  %8714 = vmatpush3.bf16.msra.mxu0 %v9910_v20  ;;  %v9918_v58 = vld [vmem:[%s13539_s4 + $0x20] sm:$0xff]   ;;  %v9953_v51 = vld [vmem:[%s13539_s4 + $0x110] sm:$0xff]  }
 0xa35   :  { %v9913_v27 = vld [vmem:[%s13539_s4 + $0xe8] sm:$0xff]   ;;  %8715 = vmatprep.subr.bf16.mxu0 %v9912_v63  ;;  %v9957_v63 = vld [vmem:[%s13539_s4 + $0x100] sm:$0xff]  }
 0xa36   :  { %v7152_v28 = vrot.slane %v7151_v44, 1  ;;  %v7157_v61 = vadd.f32 %v7156_v35, %v7155_v34  ;;  %v7165_v54 = vadd.f32 %v7164_v16, %v7163_v56  ;;  %v7170_v17 = vrot.slane %v7169_v9, 2  ;;  %v9915_v59 = vld [vmem:[%s13539_s4 + $0xa8] sm:$0xff]   ;;  %v9916_v34 = vld [vmem:[%s13539_s4 + $0x60] sm:$0xff]   ;;  %v9920_v35 = vld [vmem:[%s13539_s4 + $0x58] sm:$0xff]  }
 0xa37   :  { %v9917_v56 = vld [vmem:[%s13539_s4 + $0xe0] sm:$0xff]   ;;  %v9921_v16 = vld [vmem:[%s13539_s4 + $0xd8] sm:$0xff]   ;;  %v9955_v20 = vld [vmem:[%s13539_s4 + $0x108] sm:$0xff]  }
 0xa38   :  { %v7158_v38 = vrot.slane %v7157_v61, 1  ;;  %v7166_v46 = vrot.slane %v7165_v54, 1  ;;  %v7171_v52 = vadd.f32 %v7170_v17, %v7169_v9  ;;  %v7153_v40 = vadd.f32 %v7152_v28, %v7151_v44  ;;  %8716 = vmatpush3.bf16.msra.mxu0 %v9914_v25  ;;  %v9919_v44 = vld [vmem:[%s13539_s4 + $0xa0] sm:$0xff]   ;;  %v9922_v9 = vld [vmem:[%s13539_s4 + $0x18] sm:$0xff]  }
 0xa39   :  { %8717 = vmatprep.subr.bf16.mxu0 %v9916_v34 }
 0xa3a   :  { %v7159_v31 = vadd.f32 %v7158_v38, %v7157_v61  ;;  %v7172_v15 = vrot.slane %v7171_v52, 1  ;;  %v7167_v55 = vadd.f32 %v7166_v46, %v7165_v54  ;;  %v9923_v38 = vld [vmem:[%s13539_s4 + $0x98] sm:$0xff]  }
 0xa3c   :  { %v7174_v6 = vadd.f32 %v7159_v31, %v7153_v40  ;;  %v7173_v39 = vadd.f32 %v7172_v15, %v7171_v52  ;;  %8718 = vmatpush3.bf16.msra.mxu0 %v9918_v58  ;;  %v9924_v52 = vld [vmem:[%s13539_s4 + $0x50] sm:$0xff]  }
 0xa3d   :  { %8719 = vmatprep.subr.bf16.mxu0 %v9920_v35  ;;  %v9925_v40 = vld [vmem:[%s13539_s4 + $0xd0] sm:$0xff]  }
 0xa3e   :  { %7176 = vrot.lane.b32.xlu0 %v7174_v6, %s9995_s0  ;;  %v7180_v19 = vadd.f32 %v7173_v39, %v7167_v55  ;;  %v9926_v31 = vld [vmem:[%s13539_s4 + $0x10] sm:$0xff]   ;;  %v9928_v55 = vld [vmem:[%s13539_s4 + $0x48] sm:$0xff]  }
 0xa3f   :  { %v9929_v39 = vld [vmem:[%s13539_s4 + $0xc8] sm:$0xff]  }
 0xa40   :  { %7182 = vrot.lane.b32.xlu1 %v7180_v19, %s9995_s0  ;;  %8720 = vmatpush3.bf16.msra.mxu0 %v9922_v9 }
 0xa41   :  { %8721 = vmatprep.subr.bf16.mxu0 %v9924_v52 }
 0xa44   :  { %8722 = vmatpush3.bf16.msra.mxu0 %v9926_v31 }
 0xa45   :  { %8723 = vmatprep.subr.bf16.mxu0 %v9928_v55 }
 0xab0   :  { %v7177_v5 = vpop.permute.xlu0 %7176 }
 0xab1   :  { %v7179_v57 = vadd.f32 %v7177_v5, %v7174_v6  ;;  %v9927_v6 = vld [vmem:[%s13539_s4 + $0x90] sm:$0xff]   ;;  %v9930_v5 = vld [vmem:[%s13539_s4 + $0x8] sm:$0xff]  }
 0xab2   :  { %v7183_v11 = vpop.permute.xlu1 %7182  ;;  %8724 = vmatpush3.bf16.msra.mxu0 %v9930_v5 }
 0xab3   :  { %v7186_v32 = vmul.f32 0.03125, %v7179_v57  ;;  %v7185_v47 = vadd.f32 %v7183_v11, %v7180_v19  ;;  %v9931_v57 = vld [vmem:[%s13539_s4 + $0x88] sm:$0xff]   ;;  %v9932_v11 = vld [vmem:[%s13539_s4 + $0x40] sm:$0xff]  }
 0xab4   :  { %8725 = vmatprep.subr.bf16.mxu0 %v9932_v11 }
 0xab5   :  { %v7188_v36 = vmul.f32 %v7186_v32, %v7186_v32  ;;  %v7187_v30 = vmul.f32 0.03125, %v7185_v47  ;;  %v9933_v47 = vld [vmem:[%s13539_s4 + $0xc0] sm:$0xff]  }
 0xab7   :  { %v7189_v24 = vsub.f32 %v7187_v30, %v7188_v36  ;;  %v9934_v30 = vld [vmem:[%s13539_s4] sm:$0xff]  }
 0xab8   :  { %8726 = vmatpush3.bf16.msra.mxu0 %v9934_v30 }
 0xab9   :  { %v7190_v41 = vmax.f32 %v7189_v24, 0.0 }
 0xabb   :  { %v7192_v14 = vadd.f32 1e-05, %v7190_v41  ;;  %v9935_v41 = vld [vmem:[%s13539_s4 + $0x80] sm:$0xff]  }
 0xabd   :  { %9962 = vrsqrt.f32 %v7192_v14  ;;  %v9940_v14 = vld [vmem:[%s13539_s4 + $0x178] sm:$0xff]  }
 0xaca   :  { %v9963_v23 = vpop.eup %9962 }
 0xacb   :  { %v7194_v49 = vmul.f32 %v9963_v23, %v7191_v4 }
 0xacd   :  { %7199 = vrot.lane.b32.xlu0 %v7194_v49, %s9995_s0  ;;  %v7196_v21 = vmul.f32 %v7194_v49, %v7186_v32 }
 0xacf   :  { %v7197_v33 = vsub.f32 %v7195_v1, %v7196_v21 }
 0xad1   :  { %7204 = vrot.lane.b32.xlu1 %v7197_v33, %s9995_s0 }
 0xb3f   :  { %v7200_v8 = vpop.permute.xlu0 %7199 }
 0xb40   :  { %v7202_v42 = vsel %vm1324_vm4, %v7194_v49, %v7200_v8 }
 0xb41   :  { %v7211_v60 = vrot.slane %v7202_v42, %v13659_v62 }
 0xb43   :  { %v7205_v53 = vpop.permute.xlu1 %7204  ;;  %v7212_v48 = vmul.f32 %v7211_v60, %v7146_v26  ;;  %v7213_v45 = vmul.f32 %v7211_v60, %v7147_v29  ;;  %v9905_v26 = vld [vmem:[%s13539_s4 + $0xf8] sm:$0xff]   ;;  %v9909_v29 = vld [vmem:[%s13539_s4 + $0xf0] sm:$0xff]  }
 0xb44   :  { %v7207_v22 = vsel %vm1324_vm4, %v7197_v33, %v7205_v53  ;;  %8689 = vmatprep.subr.bf16.mxu1 %v9905_v26  ;;  %v9950_v26 = vld [vmem:[%s13539_s4 + $0x158] sm:$0xff]  }
 0xb45   :  { %v7217_v37 = vrot.slane %v7207_v22, %v13659_v62  ;;  %8690 = vmatpush3.bf16.msra.mxu1 %v9907_v7  ;;  %v9952_v7 = vld [vmem:[%s13539_s4 + $0x150] sm:$0xff]  }
 0xb46   :  { %8691 = vmatprep.subr.bf16.mxu1 %v9909_v29  ;;  %v9954_v29 = vld [vmem:[%s13539_s4 + $0x148] sm:$0xff]  }
 0xb47   :  { %v7219_v12 = vadd.f32 %v7217_v37, %v7213_v45  ;;  %v7218_v18 = vadd.f32 %v7217_v37, %v7212_v48  ;;  %v9941_v37 = vld [vmem:[%s13539_s4 + $0x138] sm:$0xff]  }
 0xb49   :  { %v7221_v0 = vmax.f32 %v7219_v12, 0.0  ;;  %v7220_v43 = vmax.f32 %v7218_v18, 0.0  ;;  %8692 = vmatpush3.bf16.msra.mxu1 %v9911_v13  ;;  %v9944_v12 = vld [vmem:[%s13539_s4 + $0x170] sm:$0xff]   ;;  %v9956_v13 = vld [vmem:[%s13539_s4 + $0x140] sm:$0xff]  }
 0xb4a   :  { %8693 = vmatprep.subr.bf16.mxu1 %v9913_v27 }
 0xb4b   :  { %7228 = vrot.lane.b32.xlu0 %v7221_v0, %s9995_s0  ;;  %7223 = vrot.lane.b32.xlu1 %v7220_v43, %s9995_s0 }
 0xb4d   :  { %8694 = vmatpush3.bf16.msra.mxu1 %v9915_v59 }
 0xb4e   :  { %8695 = vmatprep.subr.bf16.mxu1 %v9917_v56 }
 0xb51   :  { %8696 = vmatpush3.bf16.msra.mxu1 %v9919_v44 }
 0xb52   :  { %8697 = vmatprep.subr.bf16.mxu1 %v9921_v16 }
 0xb55   :  { %8698 = vmatpush3.bf16.msra.mxu1 %v9923_v38 }
 0xb56   :  { %8699 = vmatprep.subr.bf16.mxu1 %v9925_v40 }
 0xb59   :  { %8700 = vmatpush3.bf16.msra.mxu1 %v9927_v6 }
 0xb5a   :  { %8701 = vmatprep.subr.bf16.mxu1 %v9929_v39 }
 0xb5d   :  { %8702 = vmatpush3.bf16.msra.mxu1 %v9931_v57 }
 0xb5e   :  { %8703 = vmatprep.subr.bf16.mxu1 %v9933_v47 }
 0xb61   :  { %8704 = vmatpush3.bf16.msra.mxu1 %v9935_v41 }
 0xb62   :  { %8733 = vmatprep.subr.bf16.mxu1 %v9940_v14 }
 0xbbd   :  { %v7229_v2 = vpop.permute.xlu0 %7228  ;;  %v7224_v28 = vpop.permute.xlu1 %7223 }
 0xbbe   :  { %v7231_v50 = vmax.f32 %v7221_v0, %v7229_v2  ;;  %v7226_v61 = vmax.f32 %v7220_v43, %v7224_v28  ;;  %v9945_v0 = vld [vmem:[%s13539_s4 + $0x130] sm:$0xff]   ;;  %v9946_v43 = vld [vmem:[%s13539_s4 + $0x168] sm:$0xff]  }
 0xbbf   :  { %v9947_v2 = vld [vmem:[%s13539_s4 + $0x128] sm:$0xff]  }
 0xbc0   :  { %7233 = vrot.lane.b32.xlu0 %v7231_v50, %s9995_s0  ;;  %v9948_v50 = vld [vmem:[%s13539_s4 + $0x160] sm:$0xff]  }
 0xc32   :  { %v7234_v54 = vpop.permute.xlu0 %7233 }
 0xc33   :  { %v7236_v17 = vsel %vm1324_vm4, %v7226_v61, %v7234_v54 }
 0xc34   :  { %v7238_v46 = vrot.slane %v7236_v17, 2 }
 0xc36   :  { %v7240_v15 = vmax.f32 %v7236_v17, %v7238_v46 }
 0xc38   :  { %v7242_v19 = vrot.slane %v7240_v15, 2 }
 0xc3a   :  { %v7244_v32 = vsel %vm1803_vm5, %v7240_v15, %v7242_v19  ;;  %vm7257_vm5 = vmor %vm7256_vm3, %vm7255_vm1 }
 0xc3b   :  { %v8688_v36 = vpack.c.bf16 %v7244_v32, %v7244_v32 }
 0xc3d   :  { %v7249_v24 = vrot.slane %v8688_v36, 7 }
 0xc3f   :  { %7250 = vrot.lane.b32.xlu1 %v7249_v24, %s9995_s0 }
 0xcb1   :  { %v7251_v4 = vpop.permute.xlu1 %7250 }
 0xcb2   :  { %v7252_v23 = vrot.slane %v7251_v4, 4 }
 0xcb4   :  { %v7253_v49 = vsel %vm1324_vm4, %v7252_v23, %v7251_v4 }
 0xcb5   :  { %7258 = vst.msk [vmem:[#allocation4] sm:$0x66] %vm7257_vm5, %v7253_v49 }
 0xcbc   :  { %v7259_v1 = vld [vmem:[#allocation4] sm:$0x33]  ;;  %v7613_v33 = vld [vmem:[#allocation4] sm:$0xcc] }
 0xcbd   :  { %v7292_v21 = vld [vmem:[#allocation4] sm:$0x66]  ;;  %v8647_v8 = vcombine.low %v7259_v1, %v7259_v1  ;;  %v8648_v42 = vcombine.high %v7259_v1, %v7259_v1  ;;  %v8666_v22 = vcombine.high %v7613_v33, %v7613_v33  ;;  %v8665_v27 = vcombine.low %v7613_v33, %v7613_v33 }
 0xcbe   :  { %v8629_v60 = vcombine.low %v7292_v21, %v7292_v21  ;;  %v8630_v53 = vcombine.high %v7292_v21, %v7292_v21 }
 0xcbf   :  { %7605 = vmatprep.mubr.bf16.mxu0 %v8648_v42  ;;  %v7652_v18 = vrot.slane %v8666_v22, 2  ;;  %v7651_v25 = vrot.slane %v8665_v27, 2  ;;  %v7822_v22 = vld [vmem:[%s13540_s5 + $0x3] sm:$0x1]  ;;  %s9996_s5 = smov [#allocation5]  }
 0xcc0   :  { %v7330_v48 = vrot.slane %v8629_v60, 1  ;;  %v7331_v45 = vrot.slane %v8630_v53, 1  ;;  %7606 = vmatmul.mubr.bf16.vlgmr.msra.gmra.mxu0 %v8647_v8 }
 0xcc2   :  { %7462 = vmatprep.mubr.bf16.mxu1 %v7331_v45 }
 0xcc3   :  { %7463 = vmatmul.mubr.bf16.vlgmr.msra.gmra.mxu1 %v7330_v48 }
 0xcc4   :  { %8734 = vmatpush3.bf16.msra.mxu1 %v9941_v37  ;;  %7783 = vmatprep.mubr.bf16.mxu1 %v7652_v18  ;;  %v7826_v37 = vld [vmem:[%s13541_s6 + $0x3] sm:$0x1]  ;;  %s7867_s6 = sshll.u32 %s9996_s5, 4  ;;  %s7868_s6 = int_to_ptr.vmem [resolvable:$true] %s7867_s6 }
 0xcc5   :  { %8735 = vmatprep.subr.bf16.mxu1 %v9944_v12  ;;  %s9972_s13 = scalar_lea.vmem %s7868_s6, 32  ;;  %p9977_p1 = scmp.lt.s32.totalorder %s7868_s6, %s7868_s6 }
 0xcc6   :  { %p9973_p0 = scmp.ne.s32.totalorder %s7868_s6, %s9972_s13  ;;  %p9978_p2 = scmp.lt.s32.totalorder %s9972_s13, %s9972_s13 }
 0xcc8   :  { %8736 = vmatpush3.bf16.msra.mxu1 %v9945_v0  ;;  %p9979_p3 = por %p9978_p2, %p9977_p1 }
 0xcc9   :  { %8737 = vmatprep.subr.bf16.mxu1 %v9946_v43 }
 0xcca   :  { %p9980_p4 = pnand %p9979_p3, %p9973_p0 }
 0xccc   :  { %8738 = vmatpush3.bf16.msra.mxu1 %v9947_v2 }
 0xccd   :  { %8739 = vmatprep.subr.bf16.mxu1 %v9948_v50 }
 0xcd0   :  { %8740 = vmatpush3.bf16.msra.mxu1 %v9949_v10 }
 0xcd1   :  { %8741 = vmatprep.subr.bf16.mxu1 %v9950_v26 }
 0xcd4   :  { %8742 = vmatpush3.bf16.msra.mxu1 %v9951_v3 }
 0xcd5   :  { %8743 = vmatprep.subr.bf16.mxu1 %v9952_v7 }
 0xcd8   :  { %8744 = vmatpush3.bf16.msra.mxu1 %v9953_v51 }
 0xcd9   :  { %8745 = vmatprep.subr.bf16.mxu1 %v9954_v29 }
 0xcdc   :  { %8746 = vmatpush3.bf16.msra.mxu1 %v9955_v20 }
 0xcdd   :  { %8747 = vmatprep.subr.bf16.mxu1 %v9956_v13 }
 0xce0   :  { %8748 = vmatpush3.bf16.msra.mxu1 %v9957_v63 }
 0xce3   :  { %7784 = vmatmul.mubr.bf16.vlgmr.msra.gmra.mxu1 %v7651_v25 }
 0xd80   :  { %v8727_v59 = vpop.f32.mrf.mxu0 }
 0xd82   :  { %v8728_v56 = vpop.f32.mrf.mxu0 }
 0xd83   :  { %v8705_v34 = vpop.f32.mrf.mxu1  ;;  %v8729_v54 = vadd.f32 %v8728_v56, %v8727_v59 }
 0xd84   :  { %v8730_v44 = vpop.f32.mrf.mxu0 }
 0xd85   :  { %v8706_v58 = vpop.f32.mrf.mxu1 }
 0xd86   :  { %v8731_v16 = vpop.f32.mrf.mxu0  ;;  %v8707_v28 = vadd.f32 %v8706_v58, %v8705_v34 }
 0xd87   :  { %v8708_v35 = vpop.f32.mrf.mxu1 }
 0xd88   :  { %v7608_v38 = vadd.f32 %v8729_v54, %v8707_v28 }
 0xd89   :  { %v8709_v9 = vpop.f32.mrf.mxu1 }
 0xda3   :  { %v8749_v61 = vpop.f32.mrf.mxu1 }
 0xda5   :  { %v8750_v17 = vpop.f32.mrf.mxu1 }
 0xda6   :  { %v8751_v46 = vadd.f32 %v8750_v17, %v8749_v61 }
 0xda7   :  { %v8752_v52 = vpop.f32.mrf.mxu1 }
 0xda8   :  { %v7791_v40 = vadd.f32 %v8751_v46, %v7608_v38 }
 0xda9   :  { %v8753_v31 = vpop.f32.mrf.mxu1 }
 0xdaa   :  { %v7792_v15 = vsel %vm1808_vm6, %v7791_v40, 0.0  ;;  %v7799_v6 = vmul.f32 %v7791_v40, %v7791_v40 }
 0xdab   :  { %v7793_v55 = vrot.slane %v7792_v15, 4 }
 0xdac   :  { %v7800_v39 = vsel %vm1808_vm6, %v7799_v6, 0.0  ;;  %vm7859_vm6 = vcmask 517120  }
 0xdad   :  { %v7794_v19 = vadd.f32 %v7793_v55, %v7792_v15  ;;  %v7801_v5 = vrot.slane %v7800_v39, 4 }
 0xdaf   :  { %v7795_v57 = vrot.slane %v7794_v19, 2  ;;  %v7802_v11 = vadd.f32 %v7801_v5, %v7800_v39 }
 0xdb1   :  { %v7796_v32 = vadd.f32 %v7795_v57, %v7794_v19  ;;  %v7803_v47 = vrot.slane %v7802_v11, 2 }
 0xdb3   :  { %v7797_v36 = vrot.slane %v7796_v32, 1  ;;  %v7804_v30 = vadd.f32 %v7803_v47, %v7802_v11 }
 0xdb5   :  { %v7798_v24 = vadd.f32 %v7797_v36, %v7796_v32  ;;  %v7805_v41 = vrot.slane %v7804_v30, 1 }
 0xdb7   :  { %7808 = vrot.lane.b32.xlu0 %v7798_v24, %s9995_s0  ;;  %v7806_v14 = vadd.f32 %v7805_v41, %v7804_v30 }
 0xdb9   :  { %7813 = vrot.lane.b32.xlu1 %v7806_v14, %s9995_s0 }
 0xe29   :  { %v7809_v4 = vpop.permute.xlu0 %7808 }
 0xe2a   :  { %v7811_v23 = vadd.f32 %v7809_v4, %v7798_v24 }
 0xe2b   :  { %v7814_v49 = vpop.permute.xlu1 %7813 }
 0xe2c   :  { %v7817_v1 = vmul.f32 0.125, %v7811_v23  ;;  %v7816_v21 = vadd.f32 %v7814_v49, %v7806_v14 }
 0xe2e   :  { %v7819_v33 = vmul.f32 %v7817_v1, %v7817_v1  ;;  %v7818_v8 = vmul.f32 0.125, %v7816_v21 }
 0xe30   :  { %v7820_v42 = vsub.f32 %v7818_v8, %v7819_v33 }
 0xe32   :  { %v7821_v60 = vmax.f32 %v7820_v42, 0.0 }
 0xe34   :  { %v7823_v53 = vadd.f32 1e-05, %v7821_v60 }
 0xe36   :  { %9964 = vrsqrt.f32 %v7823_v53 }
 0xe43   :  { %v9965_v48 = vpop.eup %9964 }
 0xe44   :  { %v7825_v45 = vmul.f32 %v9965_v48, %v7822_v22 }
 0xe46   :  { %7830 = vrot.lane.b32.xlu0 %v7825_v45, %s9995_s0  ;;  %v7827_v12 = vmul.f32 %v7825_v45, %v7817_v1 }
 0xe48   :  { %v7828_v18 = vsub.f32 %v7826_v37, %v7827_v12 }
 0xe4a   :  { %7835 = vrot.lane.b32.xlu1 %v7828_v18, %s9995_s0 }
 0xeb8   :  { %v7831_v0 = vpop.permute.xlu0 %7830 }
 0xeb9   :  { %v7833_v43 = vsel %vm1324_vm4, %v7825_v45, %v7831_v0 }
 0xeba   :  { %v7842_v2 = vrot.slane %v7833_v43, %v13659_v62 }
 0xebc   :  { %v7836_v50 = vpop.permute.xlu1 %7835  ;;  %v7843_v26 = vmul.f32 %v7842_v2, %v7791_v40 }
 0xebd   :  { %v7838_v10 = vsel %vm1324_vm4, %v7828_v18, %v7836_v50 }
 0xebe   :  { %v7847_v3 = vrot.slane %v7838_v10, %v13659_v62 }
 0xec0   :  { %v7848_v7 = vadd.f32 %v7847_v3, %v7843_v26 }
 0xec2   :  { %v7849_v51 = vmax.f32 %v7848_v7, 0.0 }
 0xec4   :  { %7851 = vrot.lane.b32.xlu0 %v7849_v51, %s9995_s0 }
 0xf36   :  { %v7852_v29 = vpop.permute.xlu0 %7851 }
 0xf37   :  { %v7854_v20 = vmax.f32 %v7849_v51, %v7852_v29 }
 0xf39   :  { %v7856_v13 = vrot.slane %v7854_v20, 2 }
 0xf3b   :  { %v7858_v63 = vmax.f32 %v7854_v20, %v7856_v13 }
 0xf3d   :  { %7860 = vst.msk [vmem:[#allocation5] sm:$0x3] %vm7859_vm6, %v7858_v63 }
 0xf3e   :  { %9983 = shalt.err (!%p9980_p4)
}
 0xf3f   :  { %7870 = dma.vmem_to_hbm [thread:$0]  %s7868_s6, 32, %s13542_s7, [#allocation6]  }
 0xf40   :  { %9992 = dma.done.wait [#allocation6], 32  }
 0xf41   :  { %9993 = vsyncadd [#allocation6], 4294967264 }
 0xf42   :  { %7874 = vsyncpa [#allocation6], 1 }

</bundles_post_ra>
